<compile_context>
chip_gen: v5e
topology: v5e:2x2
jax: 0.10.0
libtpu: 0.0.40
codegen_flags: <defaults>
</compile_context>

<pallas_src>
import functools

import jax
import jax.numpy as jnp
from jax.experimental import pallas as pl
from jax.experimental.pallas import tpu as pltpu


_VMEM_BUDGET_BYTES = 12 * 1024 * 1024   # conservative per-step footprint target (all chips)
_VMEM_LIMIT_BYTES = 32 * 1024 * 1024    # scoped VMEM request (<= physical on v5e/v6e/v7x)


# ----------------------------------------------------------------------------
# Conv(3x3, stride 1, pad 1) + bias + ReLU (+ optional fused 2x2 maxpool) kernel.
# Grid: (batch, row-tile).
# ----------------------------------------------------------------------------
def _conv_kernel(xm_ref, ha_ref, hb_ref, w_ref, b_ref, o_ref, acc_ref, *,
                 th, w, cin, cout, fuse_pool):
    # xm_ref: (1, th, w+2, cin)         main row-tile of the padded input
    # ha_ref, hb_ref: (1, 1, w+2, cin)  the 2 halo rows just below the tile
    # w_ref:  (3, 3*cin, cout)          weights with kw folded into the contraction
    # b_ref:  (1, cout)
    # o_ref:  (1, th, w, cout)  or  (1, th//2, w//2, cout) when fuse_pool
    # acc_ref: VMEM scratch (th*w, cout) fp32

    # (th+2, w+2, cin) window for this tile; concat along the outer (untiled) dim is cheap.
    x = jnp.concatenate([xm_ref[0], ha_ref[0], hb_ref[0]], axis=0)

    def tap_operand(kh):
        rows = x[kh:kh + th]                                      # (th, w+2, cin) leading-dim slice
        cols = [rows[:, kw:kw + w, :] for kw in range(3)]         # 3 x (th, w, cin)
        return jnp.concatenate(cols, axis=-1).reshape(th * w, 3 * cin)

    # 3 MXU matmuls with K = 3*cin, fp32 accumulation in VMEM scratch, bias folded into init.
    acc_ref[...] = (
        jnp.dot(tap_operand(0), w_ref[0], preferred_element_type=jnp.float32) + b_ref[...])
    for kh in (1, 2):
        acc_ref[...] += jnp.dot(tap_operand(kh), w_ref[kh],
                                preferred_element_type=jnp.float32)

    y = jnp.maximum(acc_ref[...], 0.0).reshape(th, w, cout)       # ReLU
    if fuse_pool:
        y = jnp.max(y.reshape(th // 2, 2, w, cout), axis=1)       # pool rows (outer dim: cheap)
        y = jnp.max(y.reshape(th // 2, w // 2, 2, cout), axis=2)  # pool cols (reshape + reduce)
    o_ref[...] = y[None].astype(o_ref.dtype)


def _pick_tile_h(H, W, cin, cout, itemsize, fuse_pool):
    """Largest row-tile TH (divisor of H, even if pooling is fused) that fits the VMEM budget."""
    fallback = None
    for th in range(H, 0, -1):
        if H % th:
            continue
        if fuse_pool and th % 2:
            continue
        in_b = (th + 2) * (W + 2) * cin * itemsize * 2            # double-buffered input (+halo)
        out_elems = (th // 2) * (W // 2) if fuse_pool else th * W
        out_b = out_elems * cout * itemsize * 2                   # double-buffered output
        w_b = 9 * cin * cout * itemsize * 2                       # weights
        acc_b = th * W * cout * 4                                 # fp32 accumulator scratch
        opnd_b = th * W * 3 * cin * itemsize * 2                  # live matmul operand headroom
        if in_b + out_b + w_b + acc_b + opnd_b <= _VMEM_BUDGET_BYTES:
            return th
        fallback = th
    return fallback if fallback is not None else H


def conv3x3_relu(x_nhwc, w_hwio, b, *, fuse_pool=False, tile_h=None):
    """x_nhwc: (N,H,W,Cin)  w_hwio: (3,3,Cin,Cout)  b: (Cout,)
    -> (N,H,W,Cout), or (N,H//2,W//2,Cout) if fuse_pool."""
    N, H, W, cin = x_nhwc.shape
    cout = w_hwio.shape[3]
    if fuse_pool:
        assert H % 2 == 0 and W % 2 == 0, "fused maxpool requires even H and W"

    # TODO(synk): fuse this pad into the producer layer to save an HBM round trip.
    x_pad = jnp.pad(x_nhwc, ((0, 0), (1, 1), (1, 1), (0, 0)))
    w3 = w_hwio.astype(x_nhwc.dtype).reshape(3, 3 * cin, cout)    # kw folded into K
    b2 = b.astype(jnp.float32).reshape(1, cout)

    itemsize = jnp.dtype(x_nhwc.dtype).itemsize
    th = tile_h or _pick_tile_h(H, W, cin, cout, itemsize, fuse_pool)
    n_tiles = H // th

    if fuse_pool:
        out_shape = (N, H // 2, W // 2, cout)
        out_block = (1, th // 2, W // 2, cout)
    else:
        out_shape = (N, H, W, cout)
        out_block = (1, th, W, cout)

    kernel = functools.partial(_conv_kernel, th=th, w=W, cin=cin, cout=cout,
                               fuse_pool=fuse_pool)

    return pl.pallas_call(
        kernel,
        out_shape=jax.ShapeDtypeStruct(out_shape, x_nhwc.dtype),
        grid_spec=pltpu.PrefetchScalarGridSpec(
            num_scalar_prefetch=0,
            grid=(N, n_tiles),
            in_specs=[
                # main row-tile: rows [i*th, i*th+th) of the padded input
                pl.BlockSpec((1, th, W + 2, cin), lambda n, i: (n, i, 0, 0)),
                # 2 halo rows below the tile (1-row blocks => block index == row index)
                pl.BlockSpec((1, 1, W + 2, cin), lambda n, i: (n, i * th + th, 0, 0)),
                pl.BlockSpec((1, 1, W + 2, cin), lambda n, i: (n, i * th + th + 1, 0, 0)),
                # weights / bias: constant block index => stays resident, no re-DMA
                pl.BlockSpec((3, 3 * cin, cout), lambda n, i: (0, 0, 0)),
                pl.BlockSpec((1, cout), lambda n, i: (0, 0)),
            ],
            out_specs=pl.BlockSpec(out_block, lambda n, i: (n, i, 0, 0)),
            scratch_shapes=[pltpu.VMEM((th * W, cout), jnp.float32)],
        ),
        compiler_params=pltpu.CompilerParams(
            dimension_semantics=("parallel", "parallel"),
            vmem_limit_bytes=_VMEM_LIMIT_BYTES),
    )(x_pad, x_pad, x_pad, w3, b2)


# ----------------------------------------------------------------------------
# Standalone MaxPool2d(2,2) kernel (floor mode) — used only when H or W is odd
# (otherwise the pool is fused into the last conv).
# ----------------------------------------------------------------------------
def _maxpool2_kernel(x_ref, o_ref):
    ho, wo, c = o_ref.shape[1], o_ref.shape[2], o_ref.shape[3]
    x = x_ref[0, :2 * ho, :2 * wo, :]
    y = jnp.max(x.reshape(ho, 2, 2 * wo, c), axis=1)
    y = jnp.max(y.reshape(ho, wo, 2, c), axis=2)
    o_ref[...] = y[None].astype(o_ref.dtype)


def maxpool2(x_nhwc):
    N, H, W, C = x_nhwc.shape
    Ho, Wo = H // 2, W // 2
    return pl.pallas_call(
        _maxpool2_kernel,
        out_shape=jax.ShapeDtypeStruct((N, Ho, Wo, C), x_nhwc.dtype),
        grid_spec=pltpu.PrefetchScalarGridSpec(
            num_scalar_prefetch=0,
            grid=(N,),
            in_specs=[pl.BlockSpec((1, H, W, C), lambda n: (n, 0, 0, 0))],
            out_specs=pl.BlockSpec((1, Ho, Wo, C), lambda n: (n, 0, 0, 0)),
        ),
        compiler_params=pltpu.CompilerParams(
            dimension_semantics=("parallel",),
            vmem_limit_bytes=_VMEM_LIMIT_BYTES),
    )(x_nhwc)


# ----------------------------------------------------------------------------
# VGGConvBlock: parameters + forward
# ----------------------------------------------------------------------------
def init_vgg_conv_block(key, num_conv, in_dim, out_dim, kernel_size=3, dtype=jnp.float32):
    """Weights stored HWIO: (kh, kw, Cin, Cout)."""
    params = []
    c_in = in_dim
    for _ in range(num_conv):
        key, kw_key, kb_key = jax.random.split(key, 3)
        fan_in = c_in * kernel_size * kernel_size
        scale = 1.0 / jnp.sqrt(jnp.float32(fan_in))
        w = jax.random.uniform(kw_key, (kernel_size, kernel_size, c_in, out_dim),
                               jnp.float32, -scale, scale).astype(dtype)
        b = jax.random.uniform(kb_key, (out_dim,), jnp.float32, -scale, scale).astype(dtype)
        params.append((w, b))
        c_in = out_dim
    return params


def vgg_conv_block_nhwc(x_nhwc, params):
    """Channels-last forward; chainable without NCHW<->NHWC transposes between blocks."""
    H, W = x_nhwc.shape[1], x_nhwc.shape[2]
    n_layers = len(params)
    fuse = n_layers > 0 and H % 2 == 0 and W % 2 == 0
    x = x_nhwc
    for li, (w, b) in enumerate(params):
        x = conv3x3_relu(x, w, b, fuse_pool=(fuse and li == n_layers - 1))
    if not fuse:
        x = maxpool2(x)
    return x


def vgg_conv_block(x_nchw, params):
    """PyTorch-layout entry point. x_nchw: (N, Cin, H, W) -> (N, Cout, H//2, W//2)."""
    x = jnp.transpose(x_nchw, (0, 2, 3, 1))     # NCHW -> NHWC (once, at the block boundary)
    x = vgg_conv_block_nhwc(x, params)
    return jnp.transpose(x, (0, 3, 1, 2))       # NHWC -> NCHW


# ----------------------------------------------------------------------------
# Pure-JAX reference (correctness check only).
# ----------------------------------------------------------------------------
def vgg_conv_block_ref(x_nchw, params):
    x = x_nchw
    for (w, b) in params:
        y = jax.lax.conv_general_dilated(
            x, w.astype(jnp.float32), window_strides=(1, 1), padding=((1, 1), (1, 1)),
            dimension_numbers=("NCHW", "HWIO", "NCHW"))
        x = jnp.maximum(y + b.astype(jnp.float32).reshape(1, -1, 1, 1), 0.0)
    x = jax.lax.reduce_window(
        x, -jnp.inf, jax.lax.max,
        window_dimensions=(1, 1, 2, 2), window_strides=(1, 1, 2, 2),
        padding="VALID")
    return x


if __name__ == "__main__":
    num_conv = 2
    in_dim, out_dim = 4, 8
    N, H, W = 2, 16, 16

    key = jax.random.PRNGKey(0)
    key, xkey = jax.random.split(key)
    x = jax.random.normal(xkey, (N, in_dim, H, W), jnp.float32)
    params = init_vgg_conv_block(key, num_conv, in_dim, out_dim)

    out = jax.block_until_ready(jax.jit(vgg_conv_block)(x, params))
    ref = jax.block_until_ready(vgg_conv_block_ref(x, params))
    assert out.shape == (N, out_dim, H // 2, W // 2), out.shape
    assert jnp.allclose(out, ref, atol=1e-4, rtol=1e-4), "mismatch (even H/W, fused pool path)"

    # Odd spatial size exercises the unfused conv + standalone floor-mode maxpool fallback.
    x_odd = jax.random.normal(jax.random.PRNGKey(1), (1, in_dim, 7, 10), jnp.float32)
    out_odd = jax.block_until_ready(vgg_conv_block(x_odd, params))
    ref_odd = jax.block_until_ready(vgg_conv_block_ref(x_odd, params))
    assert out_odd.shape == (1, out_dim, 3, 5), out_odd.shape
    assert jnp.allclose(out_odd, ref_odd, atol=1e-4, rtol=1e-4), "mismatch (odd H fallback path)"

    print("KERNEL_OK")
</pallas_src>

<mosaic_0001>
module attributes {stable_mosaic.version = 11 : i64} {
  func.func @_conv_kernel(%arg0: i32, %arg1: i32, %arg2: memref<1x16x18x4xf32, #tpu.memory_space<vmem>>, %arg3: memref<1x1x18x4xf32, #tpu.memory_space<vmem>>, %arg4: memref<1x1x18x4xf32, #tpu.memory_space<vmem>>, %arg5: memref<3x12x8xf32, #tpu.memory_space<vmem>>, %arg6: memref<1x8xf32, #tpu.memory_space<vmem>>, %arg7: memref<1x16x16x8xf32, #tpu.memory_space<vmem>>, %arg8: memref<256x8xf32, #tpu.memory_space<vmem>>) attributes {dimension_semantics = [#tpu.dimension_semantics<parallel>, #tpu.dimension_semantics<parallel>], iteration_bounds = array<i64: 2, 1>, scalar_prefetch = 0 : i64, scratch_operands = 1 : i64, tpu.core_type = #tpu.core_type<tc>, window_params = [{transform_indices = @transform_0, window_bounds = array<i64: 1, 16, 18, 4>}, {transform_indices = @transform_1, window_bounds = array<i64: 1, 1, 18, 4>}, {transform_indices = @transform_2, window_bounds = array<i64: 1, 1, 18, 4>}, {pipeline_mode = #tpu.pipeline_mode<synchronous>, transform_indices = @transform_3, window_bounds = array<i64: 3, 12, 8>}, {pipeline_mode = #tpu.pipeline_mode<synchronous>, transform_indices = @transform_4, window_bounds = array<i64: 1, 8>}, {transform_indices = @transform_5, window_bounds = array<i64: 1, 16, 16, 8>}]} {
    %c0 = arith.constant 0 : index
    %c0_0 = arith.constant 0 : index
    %c0_1 = arith.constant 0 : index
    %c0_2 = arith.constant 0 : index
    %0 = vector.load %arg2[%c0, %c0_0, %c0_1, %c0_2] : memref<1x16x18x4xf32, #tpu.memory_space<vmem>>, vector<1x16x18x4xf32>
    %1 = vector.shape_cast %0 : vector<1x16x18x4xf32> to vector<16x18x4xf32>
    %c0_3 = arith.constant 0 : index
    %c0_4 = arith.constant 0 : index
    %c0_5 = arith.constant 0 : index
    %c0_6 = arith.constant 0 : index
    %2 = vector.load %arg3[%c0_3, %c0_4, %c0_5, %c0_6] : memref<1x1x18x4xf32, #tpu.memory_space<vmem>>, vector<1x1x18x4xf32>
    %3 = vector.shape_cast %2 : vector<1x1x18x4xf32> to vector<1x18x4xf32>
    %c0_7 = arith.constant 0 : index
    %c0_8 = arith.constant 0 : index
    %c0_9 = arith.constant 0 : index
    %c0_10 = arith.constant 0 : index
    %4 = vector.load %arg4[%c0_7, %c0_8, %c0_9, %c0_10] : memref<1x1x18x4xf32, #tpu.memory_space<vmem>>, vector<1x1x18x4xf32>
    %5 = vector.shape_cast %4 : vector<1x1x18x4xf32> to vector<1x18x4xf32>
    %6 = tpu.concatenate %1, %3, %5 in 0 : vector<16x18x4xf32>, vector<1x18x4xf32>, vector<1x18x4xf32> -> vector<18x18x4xf32>
    %7 = vector.extract_strided_slice %6 {offsets = [0, 0, 0], sizes = [16, 18, 4], strides = [1, 1, 1]} : vector<18x18x4xf32> to vector<16x18x4xf32>
    %8 = vector.extract_strided_slice %7 {offsets = [0, 0, 0], sizes = [16, 16, 4], strides = [1, 1, 1]} : vector<16x18x4xf32> to vector<16x16x4xf32>
    %9 = vector.extract_strided_slice %7 {offsets = [0, 1, 0], sizes = [16, 16, 4], strides = [1, 1, 1]} : vector<16x18x4xf32> to vector<16x16x4xf32>
    %10 = vector.extract_strided_slice %7 {offsets = [0, 2, 0], sizes = [16, 16, 4], strides = [1, 1, 1]} : vector<16x18x4xf32> to vector<16x16x4xf32>
    %11 = tpu.concatenate %8, %9, %10 in 2 : vector<16x16x4xf32>, vector<16x16x4xf32>, vector<16x16x4xf32> -> vector<16x16x12xf32>
    %12 = vector.shape_cast %11 : vector<16x16x12xf32> to vector<256x12xf32>
    %c0_11 = arith.constant 0 : index
    %c0_12 = arith.constant 0 : index
    %c0_13 = arith.constant 0 : index
    %13 = vector.load %arg5[%c0_11, %c0_12, %c0_13] : memref<3x12x8xf32, #tpu.memory_space<vmem>>, vector<1x12x8xf32>
    %14 = vector.shape_cast %13 : vector<1x12x8xf32> to vector<12x8xf32>
    %cst = arith.constant dense<0.000000e+00> : vector<256x8xf32>
    %15 = tpu.matmul %12, %14, %cst {dimension_numbers = #tpu.dot_dimension_numbers<[1], [0], [0], [1], [0, 0, 1, 1], [], []>} : vector<256x12xf32>, vector<12x8xf32>, vector<256x8xf32> -> vector<256x8xf32>
    %c0_14 = arith.constant 0 : index
    %c0_15 = arith.constant 0 : index
    %16 = vector.load %arg6[%c0_14, %c0_15] : memref<1x8xf32, #tpu.memory_space<vmem>>, vector<1x8xf32>
    %17 = vector.broadcast %16 : vector<1x8xf32> to vector<256x8xf32>
    %18 = arith.addf %15, %17 : vector<256x8xf32>
    %c0_16 = arith.constant 0 : index
    %c0_17 = arith.constant 0 : index
    %19 = vector.load %arg8[%c0_16, %c0_17] : memref<256x8xf32, #tpu.memory_space<vmem>>, vector<256x8xf32>
    tpu.vector_store %arg8[%c0_16, %c0_17], %18 {strides = array<i32>} : memref<256x8xf32, #tpu.memory_space<vmem>>, vector<256x8xf32>,
    %c0_18 = arith.constant 0 : index
    %c0_19 = arith.constant 0 : index
    %20 = vector.load %arg8[%c0_18, %c0_19] : memref<256x8xf32, #tpu.memory_space<vmem>>, vector<256x8xf32>
    %21 = vector.extract_strided_slice %6 {offsets = [1, 0, 0], sizes = [16, 18, 4], strides = [1, 1, 1]} : vector<18x18x4xf32> to vector<16x18x4xf32>
    %22 = vector.extract_strided_slice %21 {offsets = [0, 0, 0], sizes = [16, 16, 4], strides = [1, 1, 1]} : vector<16x18x4xf32> to vector<16x16x4xf32>
    %23 = vector.extract_strided_slice %21 {offsets = [0, 1, 0], sizes = [16, 16, 4], strides = [1, 1, 1]} : vector<16x18x4xf32> to vector<16x16x4xf32>
    %24 = vector.extract_strided_slice %21 {offsets = [0, 2, 0], sizes = [16, 16, 4], strides = [1, 1, 1]} : vector<16x18x4xf32> to vector<16x16x4xf32>
    %25 = tpu.concatenate %22, %23, %24 in 2 : vector<16x16x4xf32>, vector<16x16x4xf32>, vector<16x16x4xf32> -> vector<16x16x12xf32>
    %26 = vector.shape_cast %25 : vector<16x16x12xf32> to vector<256x12xf32>
    %c1 = arith.constant 1 : index
    %c0_20 = arith.constant 0 : index
    %c0_21 = arith.constant 0 : index
    %27 = vector.load %arg5[%c1, %c0_20, %c0_21] : memref<3x12x8xf32, #tpu.memory_space<vmem>>, vector<1x12x8xf32>
    %28 = vector.shape_cast %27 : vector<1x12x8xf32> to vector<12x8xf32>
    %cst_22 = arith.constant dense<0.000000e+00> : vector<256x8xf32>
    %29 = tpu.matmul %26, %28, %cst_22 {dimension_numbers = #tpu.dot_dimension_numbers<[1], [0], [0], [1], [0, 0, 1, 1], [], []>} : vector<256x12xf32>, vector<12x8xf32>, vector<256x8xf32> -> vector<256x8xf32>
    %30 = arith.addf %20, %29 : vector<256x8xf32>
    %c0_23 = arith.constant 0 : index
    %c0_24 = arith.constant 0 : index
    %31 = vector.load %arg8[%c0_23, %c0_24] : memref<256x8xf32, #tpu.memory_space<vmem>>, vector<256x8xf32>
    tpu.vector_store %arg8[%c0_23, %c0_24], %30 {strides = array<i32>} : memref<256x8xf32, #tpu.memory_space<vmem>>, vector<256x8xf32>,
    %c0_25 = arith.constant 0 : index
    %c0_26 = arith.constant 0 : index
    %32 = vector.load %arg8[%c0_25, %c0_26] : memref<256x8xf32, #tpu.memory_space<vmem>>, vector<256x8xf32>
    %33 = vector.extract_strided_slice %6 {offsets = [2, 0, 0], sizes = [16, 18, 4], strides = [1, 1, 1]} : vector<18x18x4xf32> to vector<16x18x4xf32>
    %34 = vector.extract_strided_slice %33 {offsets = [0, 0, 0], sizes = [16, 16, 4], strides = [1, 1, 1]} : vector<16x18x4xf32> to vector<16x16x4xf32>
    %35 = vector.extract_strided_slice %33 {offsets = [0, 1, 0], sizes = [16, 16, 4], strides = [1, 1, 1]} : vector<16x18x4xf32> to vector<16x16x4xf32>
    %36 = vector.extract_strided_slice %33 {offsets = [0, 2, 0], sizes = [16, 16, 4], strides = [1, 1, 1]} : vector<16x18x4xf32> to vector<16x16x4xf32>
    %37 = tpu.concatenate %34, %35, %36 in 2 : vector<16x16x4xf32>, vector<16x16x4xf32>, vector<16x16x4xf32> -> vector<16x16x12xf32>
    %38 = vector.shape_cast %37 : vector<16x16x12xf32> to vector<256x12xf32>
    %c2 = arith.constant 2 : index
    %c0_27 = arith.constant 0 : index
    %c0_28 = arith.constant 0 : index
    %39 = vector.load %arg5[%c2, %c0_27, %c0_28] : memref<3x12x8xf32, #tpu.memory_space<vmem>>, vector<1x12x8xf32>
    %40 = vector.shape_cast %39 : vector<1x12x8xf32> to vector<12x8xf32>
    %cst_29 = arith.constant dense<0.000000e+00> : vector<256x8xf32>
    %41 = tpu.matmul %38, %40, %cst_29 {dimension_numbers = #tpu.dot_dimension_numbers<[1], [0], [0], [1], [0, 0, 1, 1], [], []>} : vector<256x12xf32>, vector<12x8xf32>, vector<256x8xf32> -> vector<256x8xf32>
    %42 = arith.addf %32, %41 : vector<256x8xf32>
    %c0_30 = arith.constant 0 : index
    %c0_31 = arith.constant 0 : index
    %43 = vector.load %arg8[%c0_30, %c0_31] : memref<256x8xf32, #tpu.memory_space<vmem>>, vector<256x8xf32>
    tpu.vector_store %arg8[%c0_30, %c0_31], %42 {strides = array<i32>} : memref<256x8xf32, #tpu.memory_space<vmem>>, vector<256x8xf32>,
    %c0_32 = arith.constant 0 : index
    %c0_33 = arith.constant 0 : index
    %44 = vector.load %arg8[%c0_32, %c0_33] : memref<256x8xf32, #tpu.memory_space<vmem>>, vector<256x8xf32>
    %cst_34 = arith.constant 0.000000e+00 : f32
    %45 = vector.broadcast %cst_34 : f32 to vector<256x8xf32>
    %46 = arith.maximumf %44, %45 : vector<256x8xf32>
    %47 = vector.shape_cast %46 : vector<256x8xf32> to vector<16x16x8xf32>
    %48 = vector.shape_cast %47 : vector<16x16x8xf32> to vector<1x16x16x8xf32>
    %c0_35 = arith.constant 0 : index
    %c0_36 = arith.constant 0 : index
    %c0_37 = arith.constant 0 : index
    %c0_38 = arith.constant 0 : index
    %49 = vector.load %arg7[%c0_35, %c0_36, %c0_37, %c0_38] : memref<1x16x16x8xf32, #tpu.memory_space<vmem>>, vector<1x16x16x8xf32>
    tpu.vector_store %arg7[%c0_35, %c0_36, %c0_37, %c0_38], %48 {strides = array<i32>} : memref<1x16x16x8xf32, #tpu.memory_space<vmem>>, vector<1x16x16x8xf32>,
    return
  }
  func.func @transform_0(%arg0: i32, %arg1: i32) -> (i32, i32, i32, i32) {
    %c0_i32 = arith.constant 0 : i32
    %c0_i32_0 = arith.constant 0 : i32
    %c0_i32_1 = arith.constant 0 : i32
    return %arg0, %arg1, %c0_i32, %c0_i32_0 : i32, i32, i32, i32
  }
  func.func @transform_1(%arg0: i32, %arg1: i32) -> (i32, i32, i32, i32) {
    %c16_i32 = arith.constant 16 : i32
    %0 = arith.muli %arg1, %c16_i32 : i32
    %c16_i32_0 = arith.constant 16 : i32
    %1 = arith.addi %0, %c16_i32_0 : i32
    %c0_i32 = arith.constant 0 : i32
    %c0_i32_1 = arith.constant 0 : i32
    %c0_i32_2 = arith.constant 0 : i32
    return %arg0, %1, %c0_i32, %c0_i32_1 : i32, i32, i32, i32
  }
  func.func @transform_2(%arg0: i32, %arg1: i32) -> (i32, i32, i32, i32) {
    %c16_i32 = arith.constant 16 : i32
    %0 = arith.muli %arg1, %c16_i32 : i32
    %c16_i32_0 = arith.constant 16 : i32
    %1 = arith.addi %0, %c16_i32_0 : i32
    %c1_i32 = arith.constant 1 : i32
    %2 = arith.addi %1, %c1_i32 : i32
    %c0_i32 = arith.constant 0 : i32
    %c0_i32_1 = arith.constant 0 : i32
    %c0_i32_2 = arith.constant 0 : i32
    return %arg0, %2, %c0_i32, %c0_i32_1 : i32, i32, i32, i32
  }
  func.func @transform_3(%arg0: i32, %arg1: i32) -> (i32, i32, i32) {
    %c0_i32 = arith.constant 0 : i32
    %c0_i32_0 = arith.constant 0 : i32
    %c0_i32_1 = arith.constant 0 : i32
    %c0_i32_2 = arith.constant 0 : i32
    return %c0_i32, %c0_i32_0, %c0_i32_1 : i32, i32, i32
  }
  func.func @transform_4(%arg0: i32, %arg1: i32) -> (i32, i32) {
    %c0_i32 = arith.constant 0 : i32
    %c0_i32_0 = arith.constant 0 : i32
    %c0_i32_1 = arith.constant 0 : i32
    return %c0_i32, %c0_i32_0 : i32, i32
  }
  func.func @transform_5(%arg0: i32, %arg1: i32) -> (i32, i32, i32, i32) {
    %c0_i32 = arith.constant 0 : i32
    %c0_i32_0 = arith.constant 0 : i32
    %c0_i32_1 = arith.constant 0 : i32
    return %arg0, %arg1, %c0_i32, %c0_i32_0 : i32, i32, i32, i32
  }
}

module attributes {stable_mosaic.version = 11 : i64} {
  func.func @_conv_kernel(%arg0: i32, %arg1: i32, %arg2: memref<1x16x18x8xf32, #tpu.memory_space<vmem>>, %arg3: memref<1x1x18x8xf32, #tpu.memory_space<vmem>>, %arg4: memref<1x1x18x8xf32, #tpu.memory_space<vmem>>, %arg5: memref<3x24x8xf32, #tpu.memory_space<vmem>>, %arg6: memref<1x8xf32, #tpu.memory_space<vmem>>, %arg7: memref<1x8x8x8xf32, #tpu.memory_space<vmem>>, %arg8: memref<256x8xf32, #tpu.memory_space<vmem>>) attributes {dimension_semantics = [#tpu.dimension_semantics<parallel>, #tpu.dimension_semantics<parallel>], iteration_bounds = array<i64: 2, 1>, scalar_prefetch = 0 : i64, scratch_operands = 1 : i64, tpu.core_type = #tpu.core_type<tc>, window_params = [{transform_indices = @transform_0, window_bounds = array<i64: 1, 16, 18, 8>}, {transform_indices = @transform_1, window_bounds = array<i64: 1, 1, 18, 8>}, {transform_indices = @transform_2, window_bounds = array<i64: 1, 1, 18, 8>}, {pipeline_mode = #tpu.pipeline_mode<synchronous>, transform_indices = @transform_3, window_bounds = array<i64: 3, 24, 8>}, {pipeline_mode = #tpu.pipeline_mode<synchronous>, transform_indices = @transform_4, window_bounds = array<i64: 1, 8>}, {transform_indices = @transform_5, window_bounds = array<i64: 1, 8, 8, 8>}]} {
    %c0 = arith.constant 0 : index
    %c0_0 = arith.constant 0 : index
    %c0_1 = arith.constant 0 : index
    %c0_2 = arith.constant 0 : index
    %0 = vector.load %arg2[%c0, %c0_0, %c0_1, %c0_2] : memref<1x16x18x8xf32, #tpu.memory_space<vmem>>, vector<1x16x18x8xf32>
    %1 = vector.shape_cast %0 : vector<1x16x18x8xf32> to vector<16x18x8xf32>
    %c0_3 = arith.constant 0 : index
    %c0_4 = arith.constant 0 : index
    %c0_5 = arith.constant 0 : index
    %c0_6 = arith.constant 0 : index
    %2 = vector.load %arg3[%c0_3, %c0_4, %c0_5, %c0_6] : memref<1x1x18x8xf32, #tpu.memory_space<vmem>>, vector<1x1x18x8xf32>
    %3 = vector.shape_cast %2 : vector<1x1x18x8xf32> to vector<1x18x8xf32>
    %c0_7 = arith.constant 0 : index
    %c0_8 = arith.constant 0 : index
    %c0_9 = arith.constant 0 : index
    %c0_10 = arith.constant 0 : index
    %4 = vector.load %arg4[%c0_7, %c0_8, %c0_9, %c0_10] : memref<1x1x18x8xf32, #tpu.memory_space<vmem>>, vector<1x1x18x8xf32>
    %5 = vector.shape_cast %4 : vector<1x1x18x8xf32> to vector<1x18x8xf32>
    %6 = tpu.concatenate %1, %3, %5 in 0 : vector<16x18x8xf32>, vector<1x18x8xf32>, vector<1x18x8xf32> -> vector<18x18x8xf32>
    %7 = vector.extract_strided_slice %6 {offsets = [0, 0, 0], sizes = [16, 18, 8], strides = [1, 1, 1]} : vector<18x18x8xf32> to vector<16x18x8xf32>
    %8 = vector.extract_strided_slice %7 {offsets = [0, 0, 0], sizes = [16, 16, 8], strides = [1, 1, 1]} : vector<16x18x8xf32> to vector<16x16x8xf32>
    %9 = vector.extract_strided_slice %7 {offsets = [0, 1, 0], sizes = [16, 16, 8], strides = [1, 1, 1]} : vector<16x18x8xf32> to vector<16x16x8xf32>
    %10 = vector.extract_strided_slice %7 {offsets = [0, 2, 0], sizes = [16, 16, 8], strides = [1, 1, 1]} : vector<16x18x8xf32> to vector<16x16x8xf32>
    %11 = tpu.concatenate %8, %9, %10 in 2 : vector<16x16x8xf32>, vector<16x16x8xf32>, vector<16x16x8xf32> -> vector<16x16x24xf32>
    %12 = vector.shape_cast %11 : vector<16x16x24xf32> to vector<256x24xf32>
    %c0_11 = arith.constant 0 : index
    %c0_12 = arith.constant 0 : index
    %c0_13 = arith.constant 0 : index
    %13 = vector.load %arg5[%c0_11, %c0_12, %c0_13] : memref<3x24x8xf32, #tpu.memory_space<vmem>>, vector<1x24x8xf32>
    %14 = vector.shape_cast %13 : vector<1x24x8xf32> to vector<24x8xf32>
    %cst = arith.constant dense<0.000000e+00> : vector<256x8xf32>
    %15 = tpu.matmul %12, %14, %cst {dimension_numbers = #tpu.dot_dimension_numbers<[1], [0], [0], [1], [0, 0, 1, 1], [], []>} : vector<256x24xf32>, vector<24x8xf32>, vector<256x8xf32> -> vector<256x8xf32>
    %c0_14 = arith.constant 0 : index
    %c0_15 = arith.constant 0 : index
    %16 = vector.load %arg6[%c0_14, %c0_15] : memref<1x8xf32, #tpu.memory_space<vmem>>, vector<1x8xf32>
    %17 = vector.broadcast %16 : vector<1x8xf32> to vector<256x8xf32>
    %18 = arith.addf %15, %17 : vector<256x8xf32>
    %c0_16 = arith.constant 0 : index
    %c0_17 = arith.constant 0 : index
    %19 = vector.load %arg8[%c0_16, %c0_17] : memref<256x8xf32, #tpu.memory_space<vmem>>, vector<256x8xf32>
    tpu.vector_store %arg8[%c0_16, %c0_17], %18 {strides = array<i32>} : memref<256x8xf32, #tpu.memory_space<vmem>>, vector<256x8xf32>,
    %c0_18 = arith.constant 0 : index
    %c0_19 = arith.constant 0 : index
    %20 = vector.load %arg8[%c0_18, %c0_19] : memref<256x8xf32, #tpu.memory_space<vmem>>, vector<256x8xf32>
    %21 = vector.extract_strided_slice %6 {offsets = [1, 0, 0], sizes = [16, 18, 8], strides = [1, 1, 1]} : vector<18x18x8xf32> to vector<16x18x8xf32>
    %22 = vector.extract_strided_slice %21 {offsets = [0, 0, 0], sizes = [16, 16, 8], strides = [1, 1, 1]} : vector<16x18x8xf32> to vector<16x16x8xf32>
    %23 = vector.extract_strided_slice %21 {offsets = [0, 1, 0], sizes = [16, 16, 8], strides = [1, 1, 1]} : vector<16x18x8xf32> to vector<16x16x8xf32>
    %24 = vector.extract_strided_slice %21 {offsets = [0, 2, 0], sizes = [16, 16, 8], strides = [1, 1, 1]} : vector<16x18x8xf32> to vector<16x16x8xf32>
    %25 = tpu.concatenate %22, %23, %24 in 2 : vector<16x16x8xf32>, vector<16x16x8xf32>, vector<16x16x8xf32> -> vector<16x16x24xf32>
    %26 = vector.shape_cast %25 : vector<16x16x24xf32> to vector<256x24xf32>
    %c1 = arith.constant 1 : index
    %c0_20 = arith.constant 0 : index
    %c0_21 = arith.constant 0 : index
    %27 = vector.load %arg5[%c1, %c0_20, %c0_21] : memref<3x24x8xf32, #tpu.memory_space<vmem>>, vector<1x24x8xf32>
    %28 = vector.shape_cast %27 : vector<1x24x8xf32> to vector<24x8xf32>
    %cst_22 = arith.constant dense<0.000000e+00> : vector<256x8xf32>
    %29 = tpu.matmul %26, %28, %cst_22 {dimension_numbers = #tpu.dot_dimension_numbers<[1], [0], [0], [1], [0, 0, 1, 1], [], []>} : vector<256x24xf32>, vector<24x8xf32>, vector<256x8xf32> -> vector<256x8xf32>
    %30 = arith.addf %20, %29 : vector<256x8xf32>
    %c0_23 = arith.constant 0 : index
    %c0_24 = arith.constant 0 : index
    %31 = vector.load %arg8[%c0_23, %c0_24] : memref<256x8xf32, #tpu.memory_space<vmem>>, vector<256x8xf32>
    tpu.vector_store %arg8[%c0_23, %c0_24], %30 {strides = array<i32>} : memref<256x8xf32, #tpu.memory_space<vmem>>, vector<256x8xf32>,
    %c0_25 = arith.constant 0 : index
    %c0_26 = arith.constant 0 : index
    %32 = vector.load %arg8[%c0_25, %c0_26] : memref<256x8xf32, #tpu.memory_space<vmem>>, vector<256x8xf32>
    %33 = vector.extract_strided_slice %6 {offsets = [2, 0, 0], sizes = [16, 18, 8], strides = [1, 1, 1]} : vector<18x18x8xf32> to vector<16x18x8xf32>
    %34 = vector.extract_strided_slice %33 {offsets = [0, 0, 0], sizes = [16, 16, 8], strides = [1, 1, 1]} : vector<16x18x8xf32> to vector<16x16x8xf32>
    %35 = vector.extract_strided_slice %33 {offsets = [0, 1, 0], sizes = [16, 16, 8], strides = [1, 1, 1]} : vector<16x18x8xf32> to vector<16x16x8xf32>
    %36 = vector.extract_strided_slice %33 {offsets = [0, 2, 0], sizes = [16, 16, 8], strides = [1, 1, 1]} : vector<16x18x8xf32> to vector<16x16x8xf32>
    %37 = tpu.concatenate %34, %35, %36 in 2 : vector<16x16x8xf32>, vector<16x16x8xf32>, vector<16x16x8xf32> -> vector<16x16x24xf32>
    %38 = vector.shape_cast %37 : vector<16x16x24xf32> to vector<256x24xf32>
    %c2 = arith.constant 2 : index
    %c0_27 = arith.constant 0 : index
    %c0_28 = arith.constant 0 : index
    %39 = vector.load %arg5[%c2, %c0_27, %c0_28] : memref<3x24x8xf32, #tpu.memory_space<vmem>>, vector<1x24x8xf32>
    %40 = vector.shape_cast %39 : vector<1x24x8xf32> to vector<24x8xf32>
    %cst_29 = arith.constant dense<0.000000e+00> : vector<256x8xf32>
    %41 = tpu.matmul %38, %40, %cst_29 {dimension_numbers = #tpu.dot_dimension_numbers<[1], [0], [0], [1], [0, 0, 1, 1], [], []>} : vector<256x24xf32>, vector<24x8xf32>, vector<256x8xf32> -> vector<256x8xf32>
    %42 = arith.addf %32, %41 : vector<256x8xf32>
    %c0_30 = arith.constant 0 : index
    %c0_31 = arith.constant 0 : index
    %43 = vector.load %arg8[%c0_30, %c0_31] : memref<256x8xf32, #tpu.memory_space<vmem>>, vector<256x8xf32>
    tpu.vector_store %arg8[%c0_30, %c0_31], %42 {strides = array<i32>} : memref<256x8xf32, #tpu.memory_space<vmem>>, vector<256x8xf32>,
    %c0_32 = arith.constant 0 : index
    %c0_33 = arith.constant 0 : index
    %44 = vector.load %arg8[%c0_32, %c0_33] : memref<256x8xf32, #tpu.memory_space<vmem>>, vector<256x8xf32>
    %cst_34 = arith.constant 0.000000e+00 : f32
    %45 = vector.broadcast %cst_34 : f32 to vector<256x8xf32>
    %46 = arith.maximumf %44, %45 : vector<256x8xf32>
    %47 = vector.shape_cast %46 : vector<256x8xf32> to vector<16x16x8xf32>
    %48 = vector.shape_cast %47 : vector<16x16x8xf32> to vector<8x2x16x8xf32>
    %cst_35 = arith.constant dense<0xFF800000> : vector<8x16x8xf32>
    %49 = vector.multi_reduction <maximumf>, %48, %cst_35 [1] : vector<8x2x16x8xf32> to vector<8x16x8xf32>
    %50 = vector.shape_cast %49 : vector<8x16x8xf32> to vector<8x8x2x8xf32>
    %cst_36 = arith.constant dense<0xFF800000> : vector<8x8x8xf32>
    %51 = vector.multi_reduction <maximumf>, %50, %cst_36 [2] : vector<8x8x2x8xf32> to vector<8x8x8xf32>
    %52 = vector.shape_cast %51 : vector<8x8x8xf32> to vector<1x8x8x8xf32>
    %c0_37 = arith.constant 0 : index
    %c0_38 = arith.constant 0 : index
    %c0_39 = arith.constant 0 : index
    %c0_40 = arith.constant 0 : index
    %53 = vector.load %arg7[%c0_37, %c0_38, %c0_39, %c0_40] : memref<1x8x8x8xf32, #tpu.memory_space<vmem>>, vector<1x8x8x8xf32>
    tpu.vector_store %arg7[%c0_37, %c0_38, %c0_39, %c0_40], %52 {strides = array<i32>} : memref<1x8x8x8xf32, #tpu.memory_space<vmem>>, vector<1x8x8x8xf32>,
    return
  }
  func.func @transform_0(%arg0: i32, %arg1: i32) -> (i32, i32, i32, i32) {
    %c0_i32 = arith.constant 0 : i32
    %c0_i32_0 = arith.constant 0 : i32
    %c0_i32_1 = arith.constant 0 : i32
    return %arg0, %arg1, %c0_i32, %c0_i32_0 : i32, i32, i32, i32
  }
  func.func @transform_1(%arg0: i32, %arg1: i32) -> (i32, i32, i32, i32) {
    %c16_i32 = arith.constant 16 : i32
    %0 = arith.muli %arg1, %c16_i32 : i32
    %c16_i32_0 = arith.constant 16 : i32
    %1 = arith.addi %0, %c16_i32_0 : i32
    %c0_i32 = arith.constant 0 : i32
    %c0_i32_1 = arith.constant 0 : i32
    %c0_i32_2 = arith.constant 0 : i32
    return %arg0, %1, %c0_i32, %c0_i32_1 : i32, i32, i32, i32
  }
  func.func @transform_2(%arg0: i32, %arg1: i32) -> (i32, i32, i32, i32) {
    %c16_i32 = arith.constant 16 : i32
    %0 = arith.muli %arg1, %c16_i32 : i32
    %c16_i32_0 = arith.constant 16 : i32
    %1 = arith.addi %0, %c16_i32_0 : i32
    %c1_i32 = arith.constant 1 : i32
    %2 = arith.addi %1, %c1_i32 : i32
    %c0_i32 = arith.constant 0 : i32
    %c0_i32_1 = arith.constant 0 : i32
    %c0_i32_2 = arith.constant 0 : i32
    return %arg0, %2, %c0_i32, %c0_i32_1 : i32, i32, i32, i32
  }
  func.func @transform_3(%arg0: i32, %arg1: i32) -> (i32, i32, i32) {
    %c0_i32 = arith.constant 0 : i32
    %c0_i32_0 = arith.constant 0 : i32
    %c0_i32_1 = arith.constant 0 : i32
    %c0_i32_2 = arith.constant 0 : i32
    return %c0_i32, %c0_i32_0, %c0_i32_1 : i32, i32, i32
  }
  func.func @transform_4(%arg0: i32, %arg1: i32) -> (i32, i32) {
    %c0_i32 = arith.constant 0 : i32
    %c0_i32_0 = arith.constant 0 : i32
    %c0_i32_1 = arith.constant 0 : i32
    return %c0_i32, %c0_i32_0 : i32, i32
  }
  func.func @transform_5(%arg0: i32, %arg1: i32) -> (i32, i32, i32, i32) {
    %c0_i32 = arith.constant 0 : i32
    %c0_i32_0 = arith.constant 0 : i32
    %c0_i32_1 = arith.constant 0 : i32
    return %arg0, %arg1, %c0_i32, %c0_i32_0 : i32, i32, i32, i32
  }
}

</mosaic_0001>

<bundles_post_ra>
// kernel: vgg_conv_block.2
= control target key start
LH: loop header
LB: loop body
LE: loop exit
PB: predicated region body
PF: predicated region fallthrough
CT: control target
= control target key end

     0   :  { %s2110_s18 = smov 0   ;;  %s2112_s19 = smov 0   ;;  %s2993_s0 = inlined_call_operand.vmem [shape: f32[2,18,18,4], index: 0, kind: input, shape index: {}, may-alias: {0,1,2}]   ;;  %s2994_s1 = inlined_call_operand.vmem [shape: f32[2,18,18,4], index: 1, kind: input, shape index: {}, may-alias: {0,1,2}]   ;;  %s2995_s2 = inlined_call_operand.vmem [shape: f32[2,18,18,4], index: 2, kind: input, shape index: {}, may-alias: {0,1,2}]   ;;  %s2996_s3 = inlined_call_operand.vmem [shape: f32[3,12,8], index: 3, kind: input, shape index: {}]   ;;  %s2997_s4 = inlined_call_operand.vmem [shape: f32[1,8], index: 4, kind: input, shape index: {}]   ;;  %s2998_s5 = inlined_call_operand.vmem [shape: f32[2,16,16,8], index: 5, kind: output, shape index: {}]  }
   0x1   :  { %s2114_s20 = smov 0  }
   0x2 LB: > { %s27_s21 = sadd.s32 1, %s2072_s19  ;;  %p1902_p0 = scmp.ge.s32.totalorder %s2076_s20, 1  ;;  %s2076_s20 = sphi %s2114_s20, %s15_s20   ;;  %s2072_s19 = sphi %s2112_s19, %s3000_s19   ;;  %s2068_s18 = sphi %s2110_s18, %s2999_s18  }
   0x3   : > { %p29_p1 = scmp.ge.s32.totalorder %s27_s21, 2  ;;  %p267_p2 = scmp.lt.s32.totalorder %s2076_s20, 3 }
   0x5   : > { %s3002_s21 = smov (%p29_p1, %s27_s21), 0  ;;  %p268_p3 = pnand %p1902_p0, %p267_p2 }
   0x6   : > { %p338_p4 = scmp.lt.s32.totalorder (!%p268_p3), %s2068_s18, 1  ;;  %s2078_s26 = smov (!%p268_p3), 4  }
   0x7   : > { %271 = sbr.rel (%p268_p3) target bundleno = 513 (0x201), region = 40  ;;  %s2079_s27 = smov (!%p268_p3), 8  }
   0xc   : > { %s3004_s18 = smov (!%p338_p4, %s2068_s18), 1  ;;  %vm492_vm0 = vcmask 1046528   ;;  %vm669_vm1 = vcmask 1045504   ;;  %vm1015_vm2 = vcmask 1043456   ;;  %vm846_vm3 = vcmask 31744  }
   0xd   : > { %s2131_s22 = smul.u32 432, %s3004_s18  ;;  %vm879_vm4 = vcmask 64512   ;;  %vm918_vm5 = vcmask 97280  }
   0xf   : > { %s2137_s25 = scalar_lea.vmem %s2993_s0, %s2131_s22  ;;  %s2014_s15 = sadd.s32 384, %s2131_s22 }
  0x10   : > { %v2140_v0 = vld [vmem:[%s2137_s25 + $0x8] sm:$0xff]  ;;  %v392_v1 = vld [vmem:[%s2137_s25 + $0x10] sm:$0x3]  ;;  %v2144_v2 = vld [vmem:[%s2137_s25] sm:$0xff]  ;;  %s2439_s23 = scalar_lea.vmem %s2994_s1, %s2014_s15  ;;  %s2016_s24 = sadd.s32 408, %s2131_s22 }
  0x11   : > { %v494_v3 = vrot.slane %v2140_v0, 1  ;;  %v496_v4 = vrot.slane %v392_v1, 1  ;;  %v493_v5 = vrot.slane %v2144_v2, 1  ;;  %v2151_v8 = vld [vmem:[%s2137_s25 + $0x20] sm:$0xff]  ;;  %v2154_v9 = vld [vmem:[%s2137_s25 + $0x18] sm:$0xff]  ;;  %v671_v11 = vrot.slane %v2140_v0, 2  ;;  %s376_s29 = scalar_lea.vmem %s2995_s2, %s2016_s24 }
  0x12   : > { %v499_v10 = vrot.slane %v2151_v8, 1  ;;  %v673_v12 = vrot.slane %v392_v1, 2  ;;  %v670_v13 = vrot.slane %v2144_v2, 2  ;;  %v498_v14 = vrot.slane %v2154_v9, 1  ;;  %v2166_v18 = vld [vmem:[%s2137_s25 + $0x120] sm:$0xff]  ;;  %v2170_v19 = vld [vmem:[%s2137_s25 + $0x128] sm:$0xff] }
  0x13   : > { %v497_v6 = vsel %vm492_vm0, %v494_v3, %v496_v4  ;;  %v495_v7 = vsel %vm492_vm0, %v493_v5, %v494_v3  ;;  %v2173_v20 = vld [vmem:[%s2137_s25 + $0x30] sm:$0xff]  ;;  %v2176_v21 = vld [vmem:[%s2137_s25 + $0x38] sm:$0xff]  ;;  %v675_v22 = vrot.slane %v2154_v9, 2  ;;  %v676_v23 = vrot.slane %v2151_v8, 2  ;;  %v395_v31 = vld [vmem:[%s2137_s25 + $0x28] sm:$0x3] }
  0x14   : > { %575 = vrot.lane.b32.xlu1 %v497_v6, %s2078_s26  ;;  %573 = vrot.lane.b32.xlu0 %v495_v7, %s2078_s26  ;;  %v500_v15 = vsel %vm492_vm0, %v498_v14, %v499_v10  ;;  %v674_v16 = vsel %vm669_vm1, %v671_v11, %v673_v12  ;;  %v672_v17 = vsel %vm669_vm1, %v670_v13, %v671_v11  ;;  %v553_v24 = vrot.slane %v2166_v18, 1  ;;  %v428_v40 = vld [vmem:[%s2137_s25 + $0x130] sm:$0x3]  ;;  %v398_v41 = vld [vmem:[%s2137_s25 + $0x40] sm:$0x3] }
  0x15   : > { %577 = vrot.lane.b32.xlu2 %v500_v15, %s2078_s26  ;;  %v554_v25 = vrot.slane %v2170_v19, 1  ;;  %v503_v26 = vrot.slane %v2173_v20, 1  ;;  %v504_v27 = vrot.slane %v2176_v21, 1  ;;  %v677_v28 = vsel %vm669_vm1, %v675_v22, %v676_v23  ;;  %v2210_v48 = vld [vmem:[%s2137_s25 + $0x48] sm:$0xff]  ;;  %v2213_v49 = vld [vmem:[%s2137_s25 + $0x50] sm:$0xff]  ;;  %v2223_v57 = vld [vmem:[%s2137_s25 + $0x138] sm:$0xff] }
  0x16   : > { %v680_v32 = vrot.slane %v2173_v20, 2  ;;  %v681_v33 = vrot.slane %v2176_v21, 2  ;;  %v501_v34 = vrot.slane %v395_v31, 1  ;;  %v730_v35 = vrot.slane %v2166_v18, 2  ;;  %v2227_v58 = vld [vmem:[%s2137_s25 + $0x140] sm:$0xff] }
  0x17   : > { %v555_v29 = vsel %vm492_vm0, %v553_v24, %v554_v25  ;;  %v505_v30 = vsel %vm492_vm0, %v503_v26, %v504_v27  ;;  %v731_v36 = vrot.slane %v2170_v19, 2  ;;  %v678_v42 = vrot.slane %v395_v31, 2  ;;  %v401_v6 = vld [vmem:[%s2137_s25 + $0x58] sm:$0x3]  ;;  %v431_v7 = vld [vmem:[%s2137_s25 + $0x148] sm:$0x3] }
  0x18   : > { %v682_v37 = vsel %vm669_vm1, %v680_v32, %v681_v33  ;;  %v502_v38 = vsel %vm492_vm0, %v499_v10, %v501_v34  ;;  %v556_v43 = vrot.slane %v428_v40, 1  ;;  %v506_v44 = vrot.slane %v398_v41, 1  ;;  %v2256_v22 = vld [vmem:[%s2137_s25 + $0x60] sm:$0xff]  ;;  %v404_v32 = vld [vmem:[%s2137_s25 + $0x70] sm:$0x3] }
  0x19   : > { %v732_v39 = vsel %vm669_vm1, %v730_v35, %v731_v36  ;;  %v679_v45 = vsel %vm669_vm1, %v676_v23, %v678_v42  ;;  %v683_v50 = vrot.slane %v398_v41, 2  ;;  %v508_v51 = vrot.slane %v2210_v48, 1  ;;  %v2259_v23 = vld [vmem:[%s2137_s25 + $0x68] sm:$0xff]  ;;  %v434_v41 = vld [vmem:[%s2137_s25 + $0x160] sm:$0x3] }
  0x1a   : > { %v557_v46 = vsel %vm492_vm0, %v554_v25, %v556_v43  ;;  %v507_v47 = vsel %vm492_vm0, %v504_v27, %v506_v44  ;;  %v509_v52 = vrot.slane %v2213_v49, 1  ;;  %v733_v53 = vrot.slane %v428_v40, 2 }
  0x1b   : > { %v684_v54 = vsel %vm669_vm1, %v681_v33, %v683_v50  ;;  %v558_v59 = vrot.slane %v2223_v57, 1  ;;  %v559_v60 = vrot.slane %v2227_v58, 1  ;;  %v735_v61 = vrot.slane %v2223_v57, 2  ;;  %v2289_v50 = vld [vmem:[%s2137_s25 + $0x78] sm:$0xff] }
  0x1c   : > { %752 = vrot.lane.b32.xlu1 %v674_v16, %s2079_s27  ;;  %750 = vrot.lane.b32.xlu0 %v672_v17, %s2079_s27  ;;  %v510_v55 = vsel %vm492_vm0, %v508_v51, %v509_v52  ;;  %v734_v56 = vsel %vm669_vm1, %v731_v36, %v733_v53  ;;  %v736_v62 = vrot.slane %v2227_v58, 2  ;;  %v685_v63 = vrot.slane %v2210_v48, 2  ;;  %v2249_v16 = vld [vmem:[%s2137_s25 + $0x150] sm:$0xff]  ;;  %v2253_v17 = vld [vmem:[%s2137_s25 + $0x158] sm:$0xff] }
  0x1d   : > { %754 = vrot.lane.b32.xlu2 %v677_v28, %s2079_s27  ;;  %v686_v1 = vrot.slane %v2213_v49, 2  ;;  %v560_v3 = vsel %vm492_vm0, %v558_v59, %v559_v60  ;;  %v511_v10 = vrot.slane %v401_v6, 1  ;;  %v688_v11 = vrot.slane %v401_v6, 2  ;;  %v2293_v51 = vld [vmem:[%s2137_s25 + $0x80] sm:$0xff]  ;;  %v2299_v53 = vld [vmem:[%s2137_s25 + $0x170] sm:$0xff] }
  0x1e   : > { %v737_v4 = vsel %vm669_vm1, %v735_v61, %v736_v62  ;;  %v561_v12 = vrot.slane %v431_v7, 1  ;;  %v738_v24 = vrot.slane %v431_v7, 2  ;;  %v563_v25 = vrot.slane %v2249_v16, 1 }
  0x1f   : > { %v687_v5 = vsel %vm669_vm1, %v685_v63, %v686_v1  ;;  %v512_v13 = vsel %vm492_vm0, %v509_v52, %v511_v10  ;;  %v689_v14 = vsel %vm669_vm1, %v686_v1, %v688_v11  ;;  %v564_v26 = vrot.slane %v2253_v17, 1  ;;  %v2296_v52 = vld [vmem:[%s2137_s25 + $0x168] sm:$0xff]  ;;  %v1942_v10 = vld [vmem:[%s2996_s3 + $0x18] sm:$0xf] }
  0x20   : > { %v562_v15 = vsel %vm492_vm0, %v559_v60, %v561_v12  ;;  %v513_v27 = vrot.slane %v2256_v22, 1  ;;  %v514_v28 = vrot.slane %v2259_v23, 1  ;;  %v690_v33 = vrot.slane %v2256_v22, 2  ;;  %v913_v63 = vld [vmem:[%s2996_s3 + $0x8] sm:$0xf]  ;;  %1943 = vmatpush.msk.msra.mxu1 %vm1015_vm2, %v1942_v10 }
  0x21   : > { %v691_v34 = vrot.slane %v2259_v23, 2  ;;  %v516_v35 = vrot.slane %v404_v32, 1  ;;  %v740_v36 = vrot.slane %v2249_v16, 2  ;;  %v566_v42 = vrot.slane %v434_v41, 1  ;;  %1908 = vmatpush.msk.msra.mxu0 %vm1015_vm2, %v913_v63  ;;  %2018 = vmatpush.msk.msra.mxu3 %vm1015_vm2, %v913_v63 }
  0x22   : > { %v515_v31 = vsel %vm492_vm0, %v513_v27, %v514_v28  ;;  %v743_v43 = vrot.slane %v434_v41, 2  ;;  %v693_v44 = vrot.slane %v404_v32, 2  ;;  %v696_v59 = vrot.slane %v2293_v51, 2  ;;  %v2347_v27 = vld [vmem:[%s2137_s25 + $0x90] sm:$0xff] }
  0x23   : > { %v568_v60 = vrot.slane %v2296_v52, 1  ;;  %v569_v61 = vrot.slane %v2299_v53, 1  ;;  %v745_v6 = vrot.slane %v2296_v52, 2  ;;  %v746_v7 = vrot.slane %v2299_v53, 2 }
  0x24   : > { %621 = vrot.lane.b32.xlu1 %v555_v29, %s2078_s26  ;;  %581 = vrot.lane.b32.xlu0 %v505_v30, %s2078_s26  ;;  %v739_v29 = vsel %vm669_vm1, %v736_v62, %v738_v24  ;;  %v565_v30 = vsel %vm492_vm0, %v563_v25, %v564_v26  ;;  %v2338_v24 = vld [vmem:[%s2996_s3 + $0x28] sm:$0xf] }
  0x25   : > { %758 = vrot.lane.b32.xlu2 %v682_v37, %s2079_s27  ;;  %v741_v37 = vrot.slane %v2253_v17, 2  ;;  %1978 = vmatpush.msk.msra.mxu2 %vm1015_vm2, %v2338_v24 }
  0x27   : > { %v742_v40 = vsel %vm669_vm1, %v740_v36, %v741_v37 }
  0x2c   : > { %579 = vrot.lane.b32.xlu1 %v502_v38, %s2078_s26  ;;  %798 = vrot.lane.b32.xlu0 %v732_v39, %s2079_s27  ;;  %v692_v38 = vsel %vm669_vm1, %v690_v33, %v691_v34  ;;  %v517_v39 = vsel %vm492_vm0, %v514_v28, %v516_v35  ;;  %v2350_v28 = vld [vmem:[%s2137_s25 + $0x98] sm:$0xff]  ;;  %v2360_v35 = vld [vmem:[%s2996_s3 + $0x20] sm:$0xff] }
  0x2d   : > { %756 = vrot.lane.b32.xlu2 %v679_v45, %s2079_s27  ;;  %v567_v45 = vsel %vm492_vm0, %v564_v26, %v566_v42  ;;  %v524_v32 = vrot.slane %v2350_v28, 1  ;;  %1502 = vmatpush.msra.mxu2 %v2360_v35  ;;  %v701_v42 = vrot.slane %v2350_v28, 2 }
  0x34   : > { %623 = vrot.lane.b32.xlu1 %v557_v46, %s2078_s26  ;;  %583 = vrot.lane.b32.xlu0 %v507_v47, %s2078_s26  ;;  %v744_v46 = vsel %vm669_vm1, %v741_v37, %v743_v43  ;;  %v694_v47 = vsel %vm669_vm1, %v691_v34, %v693_v44 }
  0x35   : > { %760 = vrot.lane.b32.xlu2 %v684_v54, %s2079_s27  ;;  %v518_v54 = vrot.slane %v2289_v50, 1 }
  0x3c   : > { %585 = vrot.lane.b32.xlu1 %v510_v55, %s2078_s26  ;;  %800 = vrot.lane.b32.xlu0 %v734_v56, %s2079_s27  ;;  %v519_v55 = vrot.slane %v2293_v51, 1  ;;  %v695_v56 = vrot.slane %v2289_v50, 2 }
  0x3d   : > { %625 = vrot.lane.b32.xlu2 %v560_v3, %s2078_s26  ;;  %v570_v3 = vsel %vm492_vm0, %v568_v60, %v569_v61 }
  0x3e   : > { %v520_v62 = vsel %vm492_vm0, %v518_v54, %v519_v55  ;;  %v697_v1 = vsel %vm669_vm1, %v695_v56, %v696_v59  ;;  %v2382_v54 = vld [vmem:[%s2137_s25 + $0xa8] sm:$0xff]  ;;  %v413_v56 = vld [vmem:[%s2137_s25 + $0xb8] sm:$0x3] }
  0x44   : > { %802 = vrot.lane.b32.xlu1 %v737_v4, %s2079_s27  ;;  %762 = vrot.lane.b32.xlu0 %v687_v5, %s2079_s27  ;;  %v437_v4 = vld [vmem:[%s2137_s25 + $0x178] sm:$0x3]  ;;  %v407_v5 = vld [vmem:[%s2137_s25 + $0x88] sm:$0x3] }
  0x45   : > { %587 = vrot.lane.b32.xlu2 %v512_v13, %s2078_s26  ;;  %v571_v11 = vrot.slane %v437_v4, 1  ;;  %v521_v12 = vrot.slane %v407_v5, 1  ;;  %v747_v13 = vsel %vm669_vm1, %v745_v6, %v746_v7  ;;  %v748_v33 = vrot.slane %v437_v4, 2 }
  0x47   : > { %v572_v25 = vsel %vm492_vm0, %v569_v61, %v571_v11  ;;  %v522_v26 = vsel %vm492_vm0, %v519_v55, %v521_v12  ;;  %v749_v37 = vsel %vm669_vm1, %v746_v7, %v748_v33  ;;  %v2386_v55 = vld [vmem:[%s2137_s25 + $0xb0] sm:$0xff]  ;;  %v2403_v11 = vld [vmem:[%s2137_s25 + $0xc8] sm:$0xff]  ;;  %v708_v12 = vrot.slane %v413_v56, 2 }
  0x48   : > { %v529_v61 = vrot.slane %v2386_v55, 1  ;;  %v706_v63 = vrot.slane %v2386_v55, 2 }
  0x4c   : > { %764 = vrot.lane.b32.xlu1 %v689_v14, %s2079_s27  ;;  %627 = vrot.lane.b32.xlu0 %v562_v15, %s2078_s26  ;;  %v912_v14 = vld [vmem:[%s2996_s3] sm:$0xff]  ;;  %v1941_v15 = vld [vmem:[%s2996_s3 + $0x10] sm:$0xff] }
  0x4d   : > { %804 = vrot.lane.b32.xlu2 %v739_v29, %s2079_s27  ;;  %1034 = vmatpush.msra.mxu0 %v912_v14  ;;  %v698_v29 = vrot.slane %v407_v5, 2 }
  0x4e   : > { %2019 = vmatpush.msra.mxu3 %v912_v14  ;;  %1252 = vmatpush.msra.mxu1 %v1941_v15 }
  0x4f   : > { %v699_v34 = vsel %vm669_vm1, %v696_v59, %v698_v29  ;;  %v528_v59 = vrot.slane %v2382_v54, 1 }
  0x50   : > { %2020 = vmatpush.msk.msrb.mxu3 %vm1015_vm2, %v1942_v10  ;;  %v2400_v10 = vld [vmem:[%s2137_s25 + $0xc0] sm:$0xff] }
  0x51   : > { %v530_v5 = vsel %vm492_vm0, %v528_v59, %v529_v61  ;;  %v533_v14 = vrot.slane %v2400_v10, 1 }
  0x52   : > { %2021 = vmatpush.msrb.mxu3 %v1941_v15  ;;  %v534_v15 = vrot.slane %v2403_v11, 1 }
  0x54   : > { %629 = vrot.lane.b32.xlu1 %v565_v30, %s2078_s26  ;;  %589 = vrot.lane.b32.xlu0 %v515_v31, %s2078_s26  ;;  %v523_v31 = vrot.slane %v2347_v27, 1 }
  0x55   : > { %766 = vrot.lane.b32.xlu2 %v692_v38, %s2079_s27 }
  0x56   : > { %v525_v36 = vsel %vm492_vm0, %v523_v31, %v524_v32 }
  0x5c   : > { %591 = vrot.lane.b32.xlu1 %v517_v39, %s2078_s26  ;;  %806 = vrot.lane.b32.xlu0 %v742_v40, %s2079_s27  ;;  %v410_v39 = vld [vmem:[%s2137_s25 + $0xa0] sm:$0x3]  ;;  %v700_v40 = vrot.slane %v2347_v27, 2 }
  0x5d   : > { %631 = vrot.lane.b32.xlu2 %v567_v45, %s2078_s26  ;;  %v703_v44 = vrot.slane %v410_v39, 2 }
  0x5e   : > { %v702_v45 = vsel %vm669_vm1, %v700_v40, %v701_v42 }
  0x64   : > { %808 = vrot.lane.b32.xlu1 %v744_v46, %s2079_s27  ;;  %768 = vrot.lane.b32.xlu0 %v694_v47, %s2079_s27  ;;  %v704_v47 = vsel %vm669_vm1, %v701_v42, %v703_v44 }
  0x65   : > { %593 = vrot.lane.b32.xlu2 %v520_v62, %s2078_s26  ;;  %v705_v62 = vrot.slane %v2382_v54, 2 }
  0x67   : > { %v707_v6 = vsel %vm669_vm1, %v705_v62, %v706_v63  ;;  %v2453_v62 = vld [vmem:[%s2439_s23 + $0x8] sm:$0xff] }
  0x6c   : > { %770 = vrot.lane.b32.xlu1 %v697_v1, %s2079_s27  ;;  %633 = vrot.lane.b32.xlu0 %v570_v3, %s2078_s26  ;;  %v531_v1 = vrot.slane %v413_v56, 1 }
  0x6d   : > { %810 = vrot.lane.b32.xlu2 %v747_v13, %s2079_s27 }
  0x6e   : > { %v532_v7 = vsel %vm492_vm0, %v529_v61, %v531_v1  ;;  %v2450_v61 = vld [vmem:[%s2439_s23] sm:$0xff] }
  0x6f   : > { %v578_v30 = vpop.permute.xlu2 %577 }
  0x70   : > { %v849_v38 = vsel %vm846_vm3, %v2154_v9, %v578_v30  ;;  %v526_v9 = vrot.slane %v410_v39, 1  ;;  %v2424_v39 = vld [vmem:[%s2137_s25 + $0xe0] sm:$0xff] }
  0x72   : > { %v527_v46 = vsel %vm492_vm0, %v524_v32, %v526_v9  ;;  %v709_v32 = vsel %vm669_vm1, %v706_v63, %v708_v12  ;;  %v539_v9 = vrot.slane %v2424_v39, 1 }
  0x74   : > { %635 = vrot.lane.b32.xlu1 %v572_v25, %s2078_s26  ;;  %595 = vrot.lane.b32.xlu0 %v522_v26, %s2078_s26  ;;  %v710_v25 = vrot.slane %v2400_v10, 2  ;;  %v711_v26 = vrot.slane %v2403_v11, 2 }
  0x75   : > { %772 = vrot.lane.b32.xlu2 %v699_v34, %s2079_s27  ;;  %v535_v34 = vsel %vm492_vm0, %v533_v14, %v534_v15 }
  0x77   : > { %v755_v41 = vpop.permute.xlu2 %754 }
  0x78   : > { %v2374_v43 = vsel %vm879_vm4, %v849_v38, %v755_v41  ;;  %v2421_v38 = vld [vmem:[%s2137_s25 + $0xd8] sm:$0xff] }
  0x79   : > { %1944 = vmatmul.msk.f32.vlgmr.msra.gmra.mxu1 %vm918_vm5, %v2374_v43  ;;  %v538_v42 = vrot.slane %v2421_v38, 1 }
  0x7c   : > { %597 = vrot.lane.b32.xlu1 %v525_v36, %s2078_s26  ;;  %812 = vrot.lane.b32.xlu0 %v749_v37, %s2079_s27  ;;  %v712_v36 = vsel %vm669_vm1, %v710_v25, %v711_v26  ;;  %v416_v37 = vld [vmem:[%s2137_s25 + $0xd0] sm:$0x3] }
  0x7d   : > { %774 = vrot.lane.b32.xlu2 %v702_v45, %s2079_s27  ;;  %v713_v41 = vrot.slane %v416_v37, 2  ;;  %v536_v59 = vrot.slane %v416_v37, 1 }
  0x7f   : > { %v759_v60 = vpop.permute.xlu2 %758  ;;  %v714_v56 = vsel %vm669_vm1, %v711_v26, %v713_v41  ;;  %v537_v63 = vsel %vm492_vm0, %v534_v15, %v536_v59 }
  0x84   : > { %599 = vrot.lane.b32.xlu0 %v527_v46, %s2078_s26  ;;  %776 = vrot.lane.b32.xlu1 %v704_v47, %s2079_s27 }
  0x85   : > { %601 = vrot.lane.b32.xlu2 %v530_v5, %s2078_s26  ;;  %v1211_v5 = vrot.slane %v2453_v62, 2 }
  0x86   : > { %v576_v3 = vpop.permute.xlu1 %575  ;;  %v574_v4 = vpop.permute.xlu0 %573 }
  0x87   : > { %v757_v13 = vpop.permute.xlu2 %756  ;;  %v847_v29 = vsel %vm846_vm3, %v2144_v2, %v574_v4  ;;  %v848_v40 = vsel %vm846_vm3, %v2140_v0, %v576_v3  ;;  %v716_v3 = vrot.slane %v2424_v39, 2  ;;  %v1210_v4 = vrot.slane %v2450_v61, 2 }
  0x89   : > { %v1212_v26 = vsel %vm669_vm1, %v1210_v4, %v1211_v5  ;;  %v2526_v4 = vld [vmem:[%s2137_s25 + $0x108] sm:$0xff] }
  0x8c   : > { %778 = vrot.lane.b32.xlu0 %v707_v6, %s2079_s27  ;;  %603 = vrot.lane.b32.xlu1 %v532_v7, %s2078_s26 }
  0x8d   : > { %780 = vrot.lane.b32.xlu2 %v709_v32, %s2079_s27 }
  0x8e   : > { %v753_v30 = vpop.permute.xlu1 %752  ;;  %v751_v31 = vpop.permute.xlu0 %750 }
  0x8f   : > { %v880_v33 = vsel %vm879_vm4, %v847_v29, %v751_v31  ;;  %v761_v2 = vpop.permute.xlu2 %760  ;;  %v881_v47 = vsel %vm879_vm4, %v848_v40, %v753_v30  ;;  %v1200_v29 = vrot.slane %v2453_v62, 1  ;;  %v440_v30 = vld [vmem:[%s2439_s23 + $0x10] sm:$0x3] }
  0x90   : > { %1909 = vmatmul.msk.f32.vlgmr.msra.gmra.mxu0 %vm918_vm5, %v880_v33  ;;  %v1213_v59 = vrot.slane %v440_v30, 2 }
  0x94   : > { %605 = vrot.lane.b32.xlu0 %v535_v34, %s2078_s26  ;;  %782 = vrot.lane.b32.xlu1 %v712_v36, %s2079_s27 }
  0x95   : > { %607 = vrot.lane.b32.xlu2 %v537_v63, %s2078_s26 }
  0x96   : > { %v622_v44 = vpop.permute.xlu1 %621  ;;  %v582_v45 = vpop.permute.xlu0 %581 }
  0x97   : > { %v851_v46 = vsel %vm846_vm3, %v2173_v20, %v582_v45  ;;  %v540_v20 = vsel %vm492_vm0, %v538_v42, %v539_v9  ;;  %v871_v1 = vsel %vm846_vm3, %v2166_v18, %v622_v44  ;;  %v626_v6 = vpop.permute.xlu2 %625  ;;  %v2499_v42 = vld [vmem:[%s2137_s25 + $0xf0] sm:$0xff]  ;;  %v2502_v44 = vld [vmem:[%s2137_s25 + $0xf8] sm:$0xff] }
  0x98   : > { %1910 = vmatmul.msk.f32.gmra.mxu0 %vm918_vm5, %v881_v47  ;;  %v2443_v0 = vsel %vm879_vm4, %v851_v46, %v759_v60  ;;  %v715_v60 = vrot.slane %v2421_v38, 2  ;;  %v544_v46 = vrot.slane %v2502_v44, 1  ;;  %v720_v47 = vrot.slane %v2499_v42, 2 }
  0x99   : > { %1979 = vmatmul.msk.f32.vlgmr.msra.gmra.mxu2 %vm918_vm5, %v2443_v0 }
  0x9a   : > { %v717_v25 = vsel %vm669_vm1, %v715_v60, %v716_v3 }
  0x9c   : > { %784 = vrot.lane.b32.xlu0 %v714_v56, %s2079_s27  ;;  %609 = vrot.lane.b32.xlu1 %v540_v20, %s2078_s26  ;;  %v721_v56 = vrot.slane %v2502_v44, 2 }
  0x9e   : > { %v580_v7 = vpop.permute.xlu1 %579  ;;  %v799_v12 = vpop.permute.xlu0 %798 }
  0x9f   : > { %v850_v18 = vsel %vm846_vm3, %v2151_v8, %v580_v7  ;;  %v2468_v14 = vsel %vm879_vm4, %v871_v1, %v799_v12  ;;  %v1199_v8 = vrot.slane %v2450_v61, 1  ;;  %v588_v36 = vpop.permute.xlu2 %587  ;;  %v722_v1 = vsel %vm669_vm1, %v720_v47, %v721_v56  ;;  %v2529_v7 = vld [vmem:[%s2137_s25 + $0x110] sm:$0xff] }
  0xa0   : > { %1911 = vmatmul.msk.f32.gmra.mxu0 %vm918_vm5, %v2374_v43  ;;  %1933 = vmatmul.msk.f32.vlgmr.msra.gmra.mxu3 %vm918_vm5, %v2468_v14  ;;  %v883_v15 = vsel %vm879_vm4, %v850_v18, %v757_v13  ;;  %v419_v43 = vld [vmem:[%s2137_s25 + $0xe8] sm:$0x3]  ;;  %v1202_v13 = vrot.slane %v440_v30, 1  ;;  %v1214_v12 = vsel %vm669_vm1, %v1211_v5, %v1213_v59  ;;  %v873_v18 = vsel %vm846_vm3, %v2223_v57, %v626_v6 }
  0xa1   : > { %1945 = vmatmul.msk.f32.gmra.mxu1 %vm918_vm5, %v883_v15  ;;  %2022 = vmatpush.msk.msra.mxu3 %vm1015_vm2, %v2338_v24  ;;  %v1201_v31 = vsel %vm492_vm0, %v1199_v8, %v1200_v29  ;;  %v718_v32 = vrot.slane %v419_v43, 2  ;;  %v541_v41 = vrot.slane %v419_v43, 1  ;;  %v425_v43 = vld [vmem:[%s2137_s25 + $0x118] sm:$0x3] }
  0xa2   : > { %1204 = vrot.lane.b32.xlu2 %v1201_v31, %s2078_s26  ;;  %v1203_v37 = vsel %vm492_vm0, %v1200_v29, %v1202_v13 }
  0xa3   : > { %2023 = vmatpush.msra.mxu3 %v2360_v35  ;;  %v719_v40 = vsel %vm669_vm1, %v716_v3, %v718_v32  ;;  %v422_v3 = vld [vmem:[%s2137_s25 + $0x100] sm:$0x3]  ;;  %v854_v32 = vsel %vm846_vm3, %v2213_v49, %v588_v36 }
  0xa4   : > { %786 = vrot.lane.b32.xlu0 %v717_v25, %s2079_s27  ;;  %1215 = vrot.lane.b32.xlu1 %v1212_v26, %s2079_s27  ;;  %v548_v25 = vrot.slane %v2526_v4, 1  ;;  %v549_v26 = vrot.slane %v2529_v7, 1  ;;  %v546_v30 = vrot.slane %v422_v3, 1 }
  0xa6   : > { %v624_v33 = vpop.permute.xlu1 %623  ;;  %v584_v34 = vpop.permute.xlu0 %583  ;;  %v550_v6 = vsel %vm492_vm0, %v548_v25, %v549_v26  ;;  %v547_v13 = vsel %vm492_vm0, %v544_v46, %v546_v30 }
  0xa7   : > { %v852_v24 = vsel %vm846_vm3, %v2176_v21, %v584_v34  ;;  %v542_v21 = vsel %vm492_vm0, %v539_v9, %v541_v41  ;;  %v872_v45 = vsel %vm846_vm3, %v2170_v19, %v624_v33  ;;  %v805_v60 = vpop.permute.xlu2 %804  ;;  %v551_v33 = vrot.slane %v425_v43, 1 }
  0xa8   : > { %1912 = vmatmul.msk.f32.gmra.mxu0 %vm918_vm5, %v883_v15  ;;  %v885_v35 = vsel %vm879_vm4, %v852_v24, %v761_v2  ;;  %v543_v2 = vrot.slane %v2499_v42, 1  ;;  %v723_v15 = vrot.slane %v422_v3, 2  ;;  %v726_v34 = vrot.slane %v2529_v7, 2  ;;  %v2598_v3 = vld [vmem:[%s376_s29 + $0x8] sm:$0xff] }
  0xa9   : > { %1946 = vmatmul.msk.f32.gmra.mxu1 %vm918_vm5, %v2443_v0  ;;  %1980 = vmatmul.msk.f32.gmra.mxu2 %vm918_vm5, %v885_v35  ;;  %v728_v24 = vrot.slane %v425_v43, 2  ;;  %v552_v36 = vsel %vm492_vm0, %v549_v26, %v551_v33 }
  0xaa   : > { %611 = vrot.lane.b32.xlu2 %v542_v21, %s2078_s26  ;;  %v545_v63 = vsel %vm492_vm0, %v543_v2, %v544_v46  ;;  %v724_v57 = vsel %vm669_vm1, %v721_v56, %v723_v15 }
  0xab   : > { %v729_v21 = vsel %vm669_vm1, %v726_v34, %v728_v24 }
  0xac   : > { %1206 = vrot.lane.b32.xlu0 %v1203_v37, %s2078_s26  ;;  %788 = vrot.lane.b32.xlu1 %v719_v40, %s2079_s27 }
  0xae   : > { %v586_v9 = vpop.permute.xlu1 %585  ;;  %v801_v20 = vpop.permute.xlu0 %800 }
  0xaf   : > { %v2515_v19 = vsel %vm879_vm4, %v872_v45, %v801_v20  ;;  %v767_v31 = vpop.permute.xlu2 %766 }
  0xb0   : > { %1913 = vmatmul.msk.f32.gmra.mxu0 %vm918_vm5, %v2443_v0  ;;  %1934 = vmatmul.msk.f32.gmra.mxu3 %vm918_vm5, %v2515_v19  ;;  %v853_v0 = vsel %vm846_vm3, %v2210_v48, %v586_v9 }
  0xb1   : > { %1947 = vmatmul.msk.f32.gmra.mxu1 %vm918_vm5, %v885_v35 }
  0xb2   : > { %1217 = vrot.lane.b32.xlu2 %v1214_v12, %s2079_s27  ;;  %v1461_v12 = vrot.slane %v2598_v3, 2 }
  0xb4   : > { %613 = vrot.lane.b32.xlu0 %v545_v63, %s2078_s26  ;;  %790 = vrot.lane.b32.xlu1 %v722_v1, %s2079_s27 }
  0xb6   : > { %v803_v29 = vpop.permute.xlu1 %802  ;;  %v763_v5 = vpop.permute.xlu0 %762 }
  0xb7   : > { %v886_v8 = vsel %vm879_vm4, %v853_v0, %v763_v5  ;;  %v2543_v48 = vsel %vm879_vm4, %v873_v18, %v803_v29  ;;  %v632_v2 = vpop.permute.xlu2 %631 }
  0xb8   : > { %1914 = vmatmul.msk.f32.gmra.mxu0 %vm918_vm5, %v885_v35  ;;  %1981 = vmatmul.msk.f32.gmra.mxu2 %vm918_vm5, %v886_v8  ;;  %v876_v18 = vsel %vm846_vm3, %v2253_v17, %v632_v2 }
  0xb9   : > { %1935 = vmatmul.msk.f32.gmra.mxu3 %vm918_vm5, %v2543_v48  ;;  %1948 = vmatmul.msk.f32.gmra.mxu1 %vm918_vm5, %v886_v8 }
  0xba   : > { %615 = vrot.lane.b32.xlu2 %v547_v13, %s2078_s26 }
  0xbc   : > { %792 = vrot.lane.b32.xlu0 %v724_v57, %s2079_s27  ;;  %617 = vrot.lane.b32.xlu1 %v550_v6, %s2078_s26 }
  0xbe   : > { %v765_v35 = vpop.permute.xlu1 %764  ;;  %v628_v37 = vpop.permute.xlu0 %627 }
  0xbf   : > { %v874_v40 = vsel %vm846_vm3, %v2227_v58, %v628_v37  ;;  %v887_v41 = vsel %vm879_vm4, %v854_v32, %v765_v35  ;;  %v725_v58 = vrot.slane %v2526_v4, 2  ;;  %v594_v1 = vpop.permute.xlu2 %593 }
  0xc0   : > { %1915 = vmatmul.msk.f32.gmra.mxu0 %vm918_vm5, %v886_v8  ;;  %1982 = vmatmul.msk.f32.gmra.mxu2 %vm918_vm5, %v887_v41  ;;  %v2566_v49 = vsel %vm879_vm4, %v874_v40, %v805_v60  ;;  %v2596_v60 = vld [vmem:[%s376_s29] sm:$0xff]  ;;  %v443_v8 = vld [vmem:[%s376_s29 + $0x10] sm:$0x3]  ;;  %v857_v30 = vsel %vm846_vm3, %v2289_v50, %v594_v1 }
  0xc1   : > { %1936 = vmatmul.msk.f32.gmra.mxu3 %vm918_vm5, %v2566_v49  ;;  %1949 = vmatmul.msk.f32.gmra.mxu1 %vm918_vm5, %v887_v41  ;;  %v727_v45 = vsel %vm669_vm1, %v725_v58, %v726_v34  ;;  %v1452_v57 = vrot.slane %v443_v8, 1  ;;  %v1449_v37 = vrot.slane %v2596_v60, 1 }
  0xc2   : > { %794 = vrot.lane.b32.xlu2 %v727_v45, %s2079_s27 }
  0xc4   : > { %619 = vrot.lane.b32.xlu0 %v552_v36, %s2078_s26  ;;  %796 = vrot.lane.b32.xlu1 %v729_v21, %s2079_s27 }
  0xc6   : > { %v630_v46 = vpop.permute.xlu1 %629  ;;  %v590_v47 = vpop.permute.xlu0 %589 }
  0xc7   : > { %v855_v56 = vsel %vm846_vm3, %v2256_v22, %v590_v47  ;;  %v875_v20 = vsel %vm846_vm3, %v2249_v16, %v630_v46  ;;  %v1460_v16 = vrot.slane %v2596_v60, 2  ;;  %v811_v17 = vpop.permute.xlu2 %810 }
  0xc8   : > { %1916 = vmatmul.msk.f32.gmra.mxu0 %vm918_vm5, %v887_v41  ;;  %v888_v9 = vsel %vm879_vm4, %v855_v56, %v767_v31 }
  0xc9   : > { %1950 = vmatmul.msk.f32.gmra.mxu1 %vm918_vm5, %v888_v9  ;;  %1983 = vmatmul.msk.f32.gmra.mxu2 %vm918_vm5, %v888_v9  ;;  %v1462_v15 = vsel %vm669_vm1, %v1460_v16, %v1461_v12 }
  0xcc   : > { %1465 = vrot.lane.b32.xlu0 %v1462_v15, %s2079_s27 }
  0xce   : > { %v592_v59 = vpop.permute.xlu1 %591  ;;  %v807_v63 = vpop.permute.xlu0 %806 }
  0xcf   : > { %v2591_v22 = vsel %vm879_vm4, %v875_v20, %v807_v63  ;;  %v856_v0 = vsel %vm846_vm3, %v2259_v23, %v592_v59  ;;  %v1450_v23 = vrot.slane %v2598_v3, 1  ;;  %v773_v50 = vpop.permute.xlu2 %772 }
  0xd0   : > { %1917 = vmatmul.msk.f32.gmra.mxu0 %vm918_vm5, %v888_v9  ;;  %1937 = vmatmul.msk.f32.gmra.mxu3 %vm918_vm5, %v2591_v22 }
  0xd1   : > { %v1453_v6 = vsel %vm492_vm0, %v1450_v23, %v1452_v57  ;;  %v1451_v40 = vsel %vm492_vm0, %v1449_v37, %v1450_v23 }
  0xd2   : > { %1456 = vrot.lane.b32.xlu1 %v1453_v6, %s2078_s26  ;;  %1454 = vrot.lane.b32.xlu2 %v1451_v40, %s2078_s26 }
  0xd6   : > { %v809_v25 = vpop.permute.xlu1 %808  ;;  %v769_v26 = vpop.permute.xlu0 %768 }
  0xd7   : > { %v889_v29 = vsel %vm879_vm4, %v856_v0, %v769_v26  ;;  %v2610_v5 = vsel %vm879_vm4, %v876_v18, %v809_v25  ;;  %v775_v36 = vpop.permute.xlu2 %774  ;;  %v2684_v25 = vld [vmem:[%s2997_s4] ss:$0 sm:$0xff] }
  0xd8   : > { %1918 = vmatmul.msk.f32.gmra.mxu0 %vm918_vm5, %v889_v29  ;;  %1951 = vmatmul.msk.f32.gmra.mxu1 %vm918_vm5, %v889_v29 }
  0xd9   : > { %1984 = vmatmul.msk.f32.gmra.mxu2 %vm918_vm5, %v889_v29  ;;  %1938 = vmatmul.msk.f32.gmra.mxu3 %vm918_vm5, %v2610_v5 }
  0xde   : > { %v771_v43 = vpop.permute.xlu1 %770  ;;  %v634_v31 = vpop.permute.xlu0 %633 }
  0xdf   : > { %v877_v13 = vsel %vm846_vm3, %v2296_v52, %v634_v31  ;;  %v890_v32 = vsel %vm879_vm4, %v857_v30, %v771_v43  ;;  %v602_v47 = vpop.permute.xlu2 %601 }
  0xe0   : > { %1952 = vmatmul.msk.f32.gmra.mxu1 %vm918_vm5, %v890_v32  ;;  %1919 = vmatmul.msk.f32.gmra.mxu0 %vm918_vm5, %v890_v32  ;;  %v2628_v33 = vsel %vm879_vm4, %v877_v13, %v811_v17  ;;  %v861_v59 = vsel %vm846_vm3, %v2382_v54, %v602_v47 }
  0xe1   : > { %1985 = vmatmul.msk.f32.gmra.mxu2 %vm918_vm5, %v890_v32  ;;  %1939 = vmatmul.msk.f32.gmra.mxu3 %vm918_vm5, %v2628_v33 }
  0xe6   : > { %v636_v34 = vpop.permute.xlu1 %635  ;;  %v596_v24 = vpop.permute.xlu0 %595 }
  0xe7   : > { %v858_v52 = vsel %vm846_vm3, %v2293_v51, %v596_v24  ;;  %v878_v41 = vsel %vm846_vm3, %v2299_v53, %v636_v34  ;;  %v1463_v53 = vrot.slane %v443_v8, 2 }
  0xe8   : > { %v891_v35 = vsel %vm879_vm4, %v858_v52, %v773_v50 }
  0xe9   : > { %1920 = vmatmul.msk.f32.gmra.mxu0 %vm918_vm5, %v891_v35  ;;  %1953 = vmatmul.msk.f32.gmra.mxu1 %vm918_vm5, %v891_v35  ;;  %v1464_v46 = vsel %vm669_vm1, %v1461_v12, %v1463_v53 }
  0xea   : > { %1986 = vmatmul.msk.f32.gmra.mxu2 %vm918_vm5, %v891_v35  ;;  %1467 = vrot.lane.b32.xlu2 %v1464_v46, %s2079_s27  ;;  %s2017_s27 = sshll.u32 %s3004_s18, 8 }
  0xeb   : > { %s2743_s6 = scalar_lea.vmem %s2998_s5, %s2017_s27 }
  0xee   : > { %v598_v21 = vpop.permute.xlu1 %597  ;;  %v813_v51 = vpop.permute.xlu0 %812 }
  0xef   : > { %v859_v58 = vsel %vm846_vm3, %v2347_v27, %v598_v21  ;;  %v2647_v45 = vsel %vm879_vm4, %v878_v41, %v813_v51 }
  0xf0   : > { %1940 = vmatmul.msk.f32.gmra.mxu3 %vm918_vm5, %v2647_v45  ;;  %v892_v2 = vsel %vm879_vm4, %v859_v58, %v775_v36 }
  0xf1   : > { %1921 = vmatmul.msk.f32.gmra.mxu0 %vm918_vm5, %v892_v2  ;;  %1954 = vmatmul.msk.f32.gmra.mxu1 %vm918_vm5, %v892_v2 }
  0xf2   : > { %1987 = vmatmul.msk.f32.gmra.mxu2 %vm918_vm5, %v892_v2 }
  0xf6   : > { %v600_v27 = vpop.permute.xlu0 %599  ;;  %v777_v56 = vpop.permute.xlu1 %776 }
  0xf7   : > { %v860_v9 = vsel %vm846_vm3, %v2350_v28, %v600_v27  ;;  %v781_v28 = vpop.permute.xlu2 %780  ;;  %v1254_v30 = vpop.f32.mrf.mxu1 }
  0xf8   : > { %1968 = vmatmul.msk.f32.vlgmr.msrb.gmra.mxu3 %vm918_vm5, %v2543_v48  ;;  %v893_v20 = vsel %vm879_vm4, %v860_v9, %v777_v56 }
  0xf9   : > { %1922 = vmatmul.msk.f32.gmra.mxu0 %vm918_vm5, %v893_v20  ;;  %1955 = vmatmul.msk.f32.gmra.mxu1 %vm918_vm5, %v893_v20 }
  0xfa   : > { %1988 = vmatmul.msk.f32.gmra.mxu2 %vm918_vm5, %v893_v20 }
  0xfe   : > { %v779_v63 = vpop.permute.xlu0 %778  ;;  %v604_v1 = vpop.permute.xlu1 %603 }
  0xff   : > { %v894_v16 = vsel %vm879_vm4, %v861_v59, %v779_v63  ;;  %v862_v12 = vsel %vm846_vm3, %v2386_v55, %v604_v1  ;;  %v608_v15 = vpop.permute.xlu2 %607 }
 0x100   : > { %1969 = vmatmul.msk.f32.gmra.mxu3 %vm918_vm5, %v2566_v49  ;;  %v895_v0 = vsel %vm879_vm4, %v862_v12, %v781_v28 }
 0x101   : > { %1923 = vmatmul.msk.f32.gmra.mxu0 %vm918_vm5, %v894_v16  ;;  %1956 = vmatmul.msk.f32.gmra.mxu1 %vm918_vm5, %v894_v16 }
 0x102   : > { %1989 = vmatmul.msk.f32.gmra.mxu2 %vm918_vm5, %v894_v16 }
 0x106   : > { %v606_v54 = vpop.permute.xlu0 %605  ;;  %v783_v18 = vpop.permute.xlu1 %782 }
 0x107   : > { %v863_v55 = vsel %vm846_vm3, %v2400_v10, %v606_v54  ;;  %v1205_v57 = vpop.permute.xlu2 %1204  ;;  %v864_v10 = vsel %vm846_vm3, %v2403_v11, %v608_v15 }
 0x108   : > { %1970 = vmatmul.msk.f32.gmra.mxu3 %vm918_vm5, %v2591_v22  ;;  %v896_v8 = vsel %vm879_vm4, %v863_v55, %v783_v18  ;;  %v1221_v47 = vsel %vm846_vm3, %v2450_v61, %v1205_v57 }
 0x109   : > { %1924 = vmatmul.msk.f32.gmra.mxu0 %vm918_vm5, %v895_v0  ;;  %1957 = vmatmul.msk.f32.gmra.mxu1 %vm918_vm5, %v895_v0 }
 0x10a   : > { %1990 = vmatmul.msk.f32.gmra.mxu2 %vm918_vm5, %v895_v0 }
 0x10d   : > { %v1036_v26 = vpop.f32.mrf.mxu0 }
 0x10e   : > { %v1037_v29 = vadd.f32 %v2684_v25, %v1036_v26  ;;  %v785_v17 = vpop.permute.xlu0 %784  ;;  %v610_v23 = vpop.permute.xlu1 %609 }
 0x10f   : > { %v897_v31 = vsel %vm879_vm4, %v864_v10, %v785_v17  ;;  %v865_v11 = vsel %vm846_vm3, %v2421_v38, %v610_v23  ;;  %v612_v24 = vpop.permute.xlu2 %611 }
 0x110   : > { %1132 = vst.msk [vmem:[#allocation2] sm:$0xff] %vm879_vm4, %v1037_v29  ;;  %1971 = vmatmul.msk.f32.gmra.mxu3 %vm918_vm5, %v2610_v5  ;;  %v866_v46 = vsel %vm846_vm3, %v2424_v39, %v612_v24 }
 0x111   : > { %1925 = vmatmul.msk.f32.gmra.mxu0 %vm918_vm5, %v896_v8  ;;  %1958 = vmatmul.msk.f32.gmra.mxu1 %vm918_vm5, %v896_v8 }
 0x112   : > { %1991 = vmatmul.msk.f32.gmra.mxu2 %vm918_vm5, %v896_v8 }
 0x115   : > { %v1039_v6 = vpop.f32.mrf.mxu0 }
 0x116   : > { %v1040_v43 = vadd.f32 %v2684_v25, %v1039_v6  ;;  %v787_v13 = vpop.permute.xlu0 %786  ;;  %v1216_v50 = vpop.permute.xlu1 %1215 }
 0x117   : > { %v1164_v32 = vld [vmem:[#allocation2] sm:$0xff]  ;;  %v898_v40 = vsel %vm879_vm4, %v865_v11, %v787_v13  ;;  %v1218_v63 = vpop.permute.xlu2 %1217  ;;  %v2728_v16 = vsel %vm879_vm4, %v1221_v47, %v1216_v50 }
 0x118   : > { %v1350_v34 = vadd.f32 %v1254_v30, %v1164_v32  ;;  %1133 = vst.msk [vmem:[#allocation2 + $0x8] sm:$0xff] %vm879_vm4, %v1040_v43  ;;  %1972 = vmatmul.msk.f32.gmra.mxu3 %vm918_vm5, %v2628_v33 }
 0x119   : > { %1926 = vmatmul.msk.f32.gmra.mxu0 %vm918_vm5, %v897_v31  ;;  %1959 = vmatmul.msk.f32.gmra.mxu1 %vm918_vm5, %v897_v31 }
 0x11a   : > { %1382 = vst.msk [vmem:[#allocation2] sm:$0xff] %vm879_vm4, %v1350_v34  ;;  %1992 = vmatmul.msk.f32.gmra.mxu2 %vm918_vm5, %v897_v31 }
 0x11c   : > { %v1504_v58 = vpop.f32.mrf.mxu2 }
 0x11d   : > { %v1042_v52 = vpop.f32.mrf.mxu0 }
 0x11e   : > { %v1043_v35 = vadd.f32 %v2684_v25, %v1042_v52  ;;  %v1257_v37 = vpop.f32.mrf.mxu1  ;;  %v1207_v41 = vpop.permute.xlu0 %1206 }
 0x11f   : > { %v1165_v36 = vld [vmem:[#allocation2 + $0x8] sm:$0xff]  ;;  %v789_v38 = vpop.permute.xlu1 %788  ;;  %v1222_v28 = vsel %vm846_vm3, %v2453_v62, %v1207_v41  ;;  %v616_v10 = vpop.permute.xlu2 %615 }
 0x120   : > { %1134 = vst.msk [vmem:[#allocation2 + $0x10] sm:$0xff] %vm879_vm4, %v1043_v35  ;;  %v1351_v21 = vadd.f32 %v1257_v37, %v1165_v36  ;;  %1973 = vmatmul.msk.f32.gmra.mxu3 %vm918_vm5, %v2647_v45  ;;  %v899_v59 = vsel %vm879_vm4, %v866_v46, %v789_v38  ;;  %v2748_v62 = vsel %vm879_vm4, %v1222_v28, %v1218_v63 }
 0x121   : > { %v1414_v51 = vld [vmem:[#allocation2] sm:$0xff]  ;;  %1927 = vmatmul.msk.f32.gmra.mxu0 %vm918_vm5, %v898_v40  ;;  %1960 = vmatmul.msk.f32.gmra.mxu1 %vm918_vm5, %v898_v40  ;;  %v868_v30 = vsel %vm846_vm3, %v2502_v44, %v616_v10 }
 0x122   : > { %v1600_v2 = vadd.f32 %v1504_v58, %v1414_v51  ;;  %1383 = vst.msk [vmem:[#allocation2 + $0x8] sm:$0xff] %vm879_vm4, %v1351_v21  ;;  %1993 = vmatmul.msk.f32.gmra.mxu2 %vm918_vm5, %v898_v40 }
 0x123   : > { %v1108_v53 = vpop.f32.mrf.mxu3 }
 0x124   : > { %1632 = vst.msk [vmem:[#allocation2] sm:$0xff] %vm879_vm4, %v1600_v2  ;;  %v1109_v27 = vadd.f32 %v2684_v25, %v1108_v53 }
 0x125   : > { %v1045_v56 = vpop.f32.mrf.mxu0 }
 0x126   : > { %1156 = vst.msk [vmem:[#allocation2 + $0xc0] sm:$0xff] %vm879_vm4, %v1109_v27  ;;  %v1046_v9 = vadd.f32 %v2684_v25, %v1045_v56  ;;  %v1260_v20 = vpop.f32.mrf.mxu1  ;;  %v614_v61 = vpop.permute.xlu0 %613 }
 0x127   : > { %v1166_v1 = vld [vmem:[#allocation2 + $0x10] sm:$0xff]  ;;  %v867_v0 = vsel %vm846_vm3, %v2499_v42, %v614_v61  ;;  %v791_v54 = vpop.permute.xlu1 %790  ;;  %v795_v36 = vpop.permute.xlu2 %794 }
 0x128   : > { %1135 = vst.msk [vmem:[#allocation2 + $0x18] sm:$0xff] %vm879_vm4, %v1046_v9  ;;  %v1352_v39 = vadd.f32 %v1260_v20, %v1166_v1  ;;  %1974 = vmatmul.msk.f32.gmra.mxu3 %vm918_vm5, %v2728_v16  ;;  %v900_v23 = vsel %vm879_vm4, %v867_v0, %v791_v54 }
 0x129   : > { %1928 = vmatmul.msk.f32.gmra.mxu0 %vm918_vm5, %v899_v59  ;;  %1961 = vmatmul.msk.f32.gmra.mxu1 %vm918_vm5, %v899_v59  ;;  %v1415_v15 = vld [vmem:[#allocation2 + $0x8] sm:$0xff] }
 0x12a   : > { %1384 = vst.msk [vmem:[#allocation2 + $0x10] sm:$0xff] %vm879_vm4, %v1352_v39  ;;  %1994 = vmatmul.msk.f32.gmra.mxu2 %vm918_vm5, %v899_v59 }
 0x12b   : > { %v1664_v12 = vld [vmem:[#allocation2] sm:$0xff] }
 0x12c   : > { %v1696_v18 = vmax.f32 %v1664_v12, 0.0  ;;  %v1507_v55 = vpop.f32.mrf.mxu2 }
 0x12d   : > { %v1601_v26 = vadd.f32 %v1507_v55, %v1415_v15  ;;  %v1048_v29 = vpop.f32.mrf.mxu0 }
 0x12e   : > { %1728 = vst.msk [vmem:[%s2743_s6] sm:$0xff] %vm879_vm4, %v1696_v18  ;;  %v1049_v8 = vadd.f32 %v2684_v25, %v1048_v29  ;;  %v1263_v17 = vpop.f32.mrf.mxu1  ;;  %v793_v43 = vpop.permute.xlu0 %792 }
 0x12f   : > { %1633 = vst.msk [vmem:[#allocation2 + $0x8] sm:$0xff] %vm879_vm4, %v1601_v26  ;;  %v1167_v57 = vld [vmem:[#allocation2 + $0x18] sm:$0xff]  ;;  %v901_v11 = vsel %vm879_vm4, %v868_v30, %v793_v43  ;;  %v618_v44 = vpop.permute.xlu1 %617 }
 0x130   : > { %1136 = vst.msk [vmem:[#allocation2 + $0x20] sm:$0xff] %vm879_vm4, %v1049_v8  ;;  %v1353_v42 = vadd.f32 %v1263_v17, %v1167_v57  ;;  %1975 = vmatmul.msk.f32.gmra.mxu3 %vm918_vm5, %v2748_v62  ;;  %v869_v41 = vsel %vm846_vm3, %v2526_v4, %v618_v44 }
 0x131   : > { %1962 = vmatmul.msk.f32.gmra.mxu1 %vm918_vm5, %v900_v23  ;;  %1929 = vmatmul.msk.f32.gmra.mxu0 %vm918_vm5, %v900_v23  ;;  %v1416_v37 = vld [vmem:[#allocation2 + $0x10] sm:$0xff]  ;;  %v902_v53 = vsel %vm879_vm4, %v869_v41, %v795_v36 }
 0x132   : > { %1385 = vst.msk [vmem:[#allocation2 + $0x18] sm:$0xff] %vm879_vm4, %v1353_v42  ;;  %1995 = vmatmul.msk.f32.gmra.mxu2 %vm918_vm5, %v900_v23 }
 0x133   : > { %v1111_v6 = vpop.f32.mrf.mxu3 }
 0x134   : > { %v1112_v31 = vadd.f32 %v2684_v25, %v1111_v6 }
 0x135   : > { %v1051_v13 = vpop.f32.mrf.mxu0 }
 0x136   : > { %v1665_v32 = vld [vmem:[#allocation2 + $0x8] sm:$0xff]  ;;  %1157 = vst.msk [vmem:[#allocation2 + $0xc8] sm:$0xff] %vm879_vm4, %v1112_v31  ;;  %v1052_v50 = vadd.f32 %v2684_v25, %v1051_v13  ;;  %v1266_v34 = vpop.f32.mrf.mxu1  ;;  %v620_v4 = vpop.permute.xlu0 %619 }
 0x137   : > { %v1697_v24 = vmax.f32 %v1665_v32, 0.0  ;;  %v1168_v52 = vld [vmem:[#allocation2 + $0x20] sm:$0xff]  ;;  %v870_v9 = vsel %vm846_vm3, %v2529_v7, %v620_v4  ;;  %v797_v20 = vpop.permute.xlu1 %796 }
 0x138   : > { %1137 = vst.msk [vmem:[#allocation2 + $0x28] sm:$0xff] %vm879_vm4, %v1052_v50  ;;  %v1354_v35 = vadd.f32 %v1266_v34, %v1168_v52  ;;  %2003 = vmatmul.msk.f32.vlgmr.msra.gmra.mxu3 %vm918_vm5, %v2591_v22  ;;  %v903_v0 = vsel %vm879_vm4, %v870_v9, %v797_v20 }
 0x139   : > { %1729 = vst.msk [vmem:[%s2743_s6 + $0x8] sm:$0xff] %vm879_vm4, %v1697_v24  ;;  %1963 = vmatmul.msk.f32.gmra.mxu1 %vm918_vm5, %v901_v11  ;;  %1930 = vmatmul.msk.f32.gmra.mxu0 %vm918_vm5, %v901_v11  ;;  %v1417_v27 = vld [vmem:[#allocation2 + $0x18] sm:$0xff] }
 0x13a   : > { %1386 = vst.msk [vmem:[#allocation2 + $0x20] sm:$0xff] %vm879_vm4, %v1354_v35  ;;  %1996 = vmatmul.msk.f32.gmra.mxu2 %vm918_vm5, %v901_v11  ;;  %v1455_v35 = vpop.permute.xlu2 %1454 }
 0x13b   : > { %v1510_v40 = vpop.f32.mrf.mxu2 }
 0x13c   : > { %v1602_v21 = vadd.f32 %v1510_v40, %v1416_v37  ;;  %v1114_v51 = vpop.f32.mrf.mxu3 }
 0x13d   : > { %v1115_v22 = vadd.f32 %v2684_v25, %v1114_v51  ;;  %v1054_v58 = vpop.f32.mrf.mxu0 }
 0x13e   : > { %1634 = vst.msk [vmem:[#allocation2 + $0x10] sm:$0xff] %vm879_vm4, %v1602_v21  ;;  %v1055_v38 = vadd.f32 %v2684_v25, %v1054_v58  ;;  %v1269_v2 = vpop.f32.mrf.mxu1  ;;  %v1466_v44 = vpop.permute.xlu0 %1465 }
 0x13f   : > { %1158 = vst.msk [vmem:[#allocation2 + $0xd0] sm:$0xff] %vm879_vm4, %v1115_v22  ;;  %v1169_v46 = vld [vmem:[#allocation2 + $0x28] sm:$0xff] }
 0x140   : > { %1138 = vst.msk [vmem:[#allocation2 + $0x30] sm:$0xff] %vm879_vm4, %v1055_v38  ;;  %v1355_v47 = vadd.f32 %v1269_v2, %v1169_v46  ;;  %2004 = vmatmul.msk.f32.gmra.mxu3 %vm918_vm5, %v2610_v5 }
 0x141   : > { %1964 = vmatmul.msk.f32.gmra.mxu1 %vm918_vm5, %v902_v53  ;;  %1931 = vmatmul.msk.f32.gmra.mxu0 %vm918_vm5, %v902_v53  ;;  %v1418_v18 = vld [vmem:[#allocation2 + $0x20] sm:$0xff] }
 0x142   : > { %1387 = vst.msk [vmem:[#allocation2 + $0x28] sm:$0xff] %vm879_vm4, %v1355_v47  ;;  %1997 = vmatmul.msk.f32.gmra.mxu2 %vm918_vm5, %v902_v53 }
 0x143   : > { %v1513_v56 = vpop.f32.mrf.mxu2 }
 0x144   : > { %v1603_v59 = vadd.f32 %v1513_v56, %v1417_v27  ;;  %v1117_v63 = vpop.f32.mrf.mxu3  ;;  %v1457_v53 = vpop.permute.xlu1 %1456 }
 0x145   : > { %v1666_v1 = vld [vmem:[#allocation2 + $0x10] sm:$0xff]  ;;  %v1118_v5 = vadd.f32 %v2684_v25, %v1117_v63  ;;  %v1057_v39 = vpop.f32.mrf.mxu0  ;;  %v1472_v46 = vsel %vm846_vm3, %v2598_v3, %v1457_v53  ;;  %v1468_v47 = vpop.permute.xlu2 %1467 }
 0x146   : > { %v1698_v61 = vmax.f32 %v1666_v1, 0.0  ;;  %1635 = vst.msk [vmem:[#allocation2 + $0x18] sm:$0xff] %vm879_vm4, %v1603_v59  ;;  %v1058_v28 = vadd.f32 %v2684_v25, %v1057_v39  ;;  %v1272_v12 = vpop.f32.mrf.mxu1  ;;  %v1474_v56 = vsel %vm879_vm4, %v1472_v46, %v1468_v47 }
 0x147   : > { %1159 = vst.msk [vmem:[#allocation2 + $0xd8] sm:$0xff] %vm879_vm4, %v1118_v5  ;;  %v1170_v54 = vld [vmem:[#allocation2 + $0x30] sm:$0xff] }
 0x148   : > { %1730 = vst.msk [vmem:[%s2743_s6 + $0x10] sm:$0xff] %vm879_vm4, %v1698_v61  ;;  %v1356_v7 = vadd.f32 %v1272_v12, %v1170_v54  ;;  %2005 = vmatmul.msk.f32.gmra.mxu3 %vm918_vm5, %v2628_v33 }
 0x149   : > { %1139 = vst.msk [vmem:[#allocation2 + $0x38] sm:$0xff] %vm879_vm4, %v1058_v28  ;;  %1965 = vmatmul.msk.f32.gmra.mxu1 %vm918_vm5, %v903_v0  ;;  %1932 = vmatmul.msk.f32.gmra.mxu0 %vm918_vm5, %v903_v0 }
 0x14a   : > { %1388 = vst.msk [vmem:[#allocation2 + $0x30] sm:$0xff] %vm879_vm4, %v1356_v7  ;;  %1998 = vmatmul.msk.f32.gmra.mxu2 %vm918_vm5, %v903_v0 }
 0x14c   : > { %v1516_v15 = vpop.f32.mrf.mxu2 }
 0x14d   : > { %v1667_v55 = vld [vmem:[#allocation2 + $0x18] sm:$0xff]  ;;  %v1604_v26 = vadd.f32 %v1516_v15, %v1418_v18  ;;  %v1060_v29 = vpop.f32.mrf.mxu0 }
 0x14e   : > { %v1699_v8 = vmax.f32 %v1667_v55, 0.0  ;;  %v1061_v17 = vadd.f32 %v2684_v25, %v1060_v29  ;;  %v1191_v47 = vld [vmem:[#allocation2 + $0xd8] sm:$0xff] }
 0x14f   : > { %1636 = vst.msk [vmem:[#allocation2 + $0x20] sm:$0xff] %vm879_vm4, %v1604_v26 }
 0x150   : > { %1731 = vst.msk [vmem:[%s2743_s6 + $0x18] sm:$0xff] %vm879_vm4, %v1699_v8  ;;  %2006 = vmatmul.msk.f32.gmra.mxu3 %vm918_vm5, %v2647_v45  ;;  %v1171_v42 = vld [vmem:[#allocation2 + $0x38] sm:$0xff]  ;;  %v1188_v8 = vld [vmem:[#allocation2 + $0xc0] sm:$0xff] }
 0x151   : > { %1140 = vst.msk [vmem:[#allocation2 + $0x40] sm:$0xff] %vm879_vm4, %v1061_v17  ;;  %1966 = vmatmul.msk.f32.gmra.mxu1 %vm918_vm5, %v2468_v14  ;;  %v1420_v37 = vld [vmem:[#allocation2 + $0x30] sm:$0xff] }
 0x152   : > { %1999 = vmatmul.msk.f32.gmra.mxu2 %vm918_vm5, %v2468_v14  ;;  %v1419_v14 = vld [vmem:[#allocation2 + $0x28] sm:$0xff] }
 0x153   : > { %v1120_v33 = vpop.f32.mrf.mxu3 }
 0x154   : > { %v1121_v23 = vadd.f32 %v2684_v25, %v1120_v33 }
 0x155   : > { %v1063_v57 = vpop.f32.mrf.mxu0  ;;  %v1275_v10 = vpop.f32.mrf.mxu1 }
 0x156   : > { %v1668_v6 = vld [vmem:[#allocation2 + $0x20] sm:$0xff]  ;;  %1160 = vst.msk [vmem:[#allocation2 + $0xe0] sm:$0xff] %vm879_vm4, %v1121_v23  ;;  %v1064_v45 = vadd.f32 %v2684_v25, %v1063_v57  ;;  %v1357_v30 = vadd.f32 %v1275_v10, %v1171_v42 }
 0x157   : > { %v1700_v43 = vmax.f32 %v1668_v6, 0.0 }
 0x158   : > { %1141 = vst.msk [vmem:[#allocation2 + $0x48] sm:$0xff] %vm879_vm4, %v1064_v45  ;;  %2007 = vmatmul.msk.f32.gmra.mxu3 %vm918_vm5, %v2728_v16  ;;  %v1172_v34 = vld [vmem:[#allocation2 + $0x40] sm:$0xff] }
 0x159   : > { %1732 = vst.msk [vmem:[%s2743_s6 + $0x20] sm:$0xff] %vm879_vm4, %v1700_v43  ;;  %1967 = vmatmul.msk.f32.gmra.mxu1 %vm918_vm5, %v2515_v19 }
 0x15a   : > { %1389 = vst.msk [vmem:[#allocation2 + $0x38] sm:$0xff] %vm879_vm4, %v1357_v30  ;;  %2000 = vmatmul.msk.f32.gmra.mxu2 %vm918_vm5, %v2515_v19  ;;  %v1471_v19 = vsel %vm846_vm3, %v2596_v60, %v1455_v35 }
 0x15c   : > { %v1519_v31 = vpop.f32.mrf.mxu2  ;;  %v1123_v13 = vpop.f32.mrf.mxu3 }
 0x15d   : > { %v1605_v32 = vadd.f32 %v1519_v31, %v1419_v14  ;;  %v1124_v50 = vadd.f32 %v2684_v25, %v1123_v13  ;;  %v1278_v11 = vpop.f32.mrf.mxu1  ;;  %v1066_v24 = vpop.f32.mrf.mxu0  ;;  %v1189_v13 = vld [vmem:[#allocation2 + $0xc8] sm:$0xff] }
 0x15e   : > { %v1358_v16 = vadd.f32 %v1278_v11, %v1172_v34  ;;  %v1067_v52 = vadd.f32 %v2684_v25, %v1066_v24 }
 0x15f   : > { %1637 = vst.msk [vmem:[#allocation2 + $0x28] sm:$0xff] %vm879_vm4, %v1605_v32  ;;  %v1173_v58 = vld [vmem:[#allocation2 + $0x48] sm:$0xff] }
 0x160   : > { %1161 = vst.msk [vmem:[#allocation2 + $0xe8] sm:$0xff] %vm879_vm4, %v1124_v50  ;;  %2008 = vmatmul.msk.f32.gmra.mxu3 %vm918_vm5, %v2748_v62  ;;  %v1473_v62 = vsel %vm879_vm4, %v1471_v19, %v1466_v44 }
 0x161   : > { %1390 = vst.msk [vmem:[#allocation2 + $0x40] sm:$0xff] %vm879_vm4, %v1358_v16  ;;  %v1421_v4 = vld [vmem:[#allocation2 + $0x38] sm:$0xff] }
 0x162   : > { %1142 = vst.msk [vmem:[#allocation2 + $0x50] sm:$0xff] %vm879_vm4, %v1067_v52  ;;  %2001 = vmatmul.msk.f32.gmra.mxu2 %vm918_vm5, %v2543_v48 }
 0x164   : > { %v1522_v40 = vpop.f32.mrf.mxu2  ;;  %v1126_v41 = vpop.f32.mrf.mxu3 }
 0x165   : > { %v1606_v36 = vadd.f32 %v1522_v40, %v1420_v37  ;;  %v1127_v21 = vadd.f32 %v2684_v25, %v1126_v41  ;;  %v1190_v41 = vld [vmem:[#allocation2 + $0xd0] sm:$0xff] }
 0x166   : > { %v1669_v51 = vld [vmem:[#allocation2 + $0x28] sm:$0xff]  ;;  %v1069_v22 = vpop.f32.mrf.mxu0  ;;  %v1281_v38 = vpop.f32.mrf.mxu1 }
 0x167   : > { %v1701_v2 = vmax.f32 %v1669_v51, 0.0  ;;  %1638 = vst.msk [vmem:[#allocation2 + $0x30] sm:$0xff] %vm879_vm4, %v1606_v36  ;;  %v1070_v48 = vadd.f32 %v2684_v25, %v1069_v22  ;;  %v1359_v60 = vadd.f32 %v1281_v38, %v1173_v58 }
 0x168   : > { %1162 = vst.msk [vmem:[#allocation2 + $0xf0] sm:$0xff] %vm879_vm4, %v1127_v21  ;;  %2009 = vmatmul.msk.f32.gmra.mxu3 %vm918_vm5, %v1473_v62  ;;  %v1422_v28 = vld [vmem:[#allocation2 + $0x40] sm:$0xff] }
 0x169   : > { %1733 = vst.msk [vmem:[%s2743_s6 + $0x28] sm:$0xff] %vm879_vm4, %v1701_v2  ;;  %v1174_v63 = vld [vmem:[#allocation2 + $0x50] sm:$0xff] }
 0x16a   : > { %1143 = vst.msk [vmem:[#allocation2 + $0x58] sm:$0xff] %vm879_vm4, %v1070_v48  ;;  %2002 = vmatmul.msk.f32.gmra.mxu2 %vm918_vm5, %v2566_v49 }
 0x16b   : > { %1391 = vst.msk [vmem:[#allocation2 + $0x48] sm:$0xff] %vm879_vm4, %v1359_v60 }
 0x16d   : > { %v1525_v27 = vpop.f32.mrf.mxu2 }
 0x16e   : > { %v1670_v9 = vld [vmem:[#allocation2 + $0x30] sm:$0xff]  ;;  %v1607_v20 = vadd.f32 %v1525_v27, %v1421_v4  ;;  %v1072_v59 = vpop.f32.mrf.mxu0  ;;  %v1284_v1 = vpop.f32.mrf.mxu1 }
 0x16f   : > { %v1702_v5 = vmax.f32 %v1670_v9, 0.0  ;;  %v1073_v39 = vadd.f32 %v2684_v25, %v1072_v59  ;;  %v1360_v49 = vadd.f32 %v1284_v1, %v1174_v63 }
 0x170   : > { %1639 = vst.msk [vmem:[#allocation2 + $0x38] sm:$0xff] %vm879_vm4, %v1607_v20  ;;  %2010 = vmatmul.msk.f32.gmra.mxu3 %vm918_vm5, %v1474_v56 }
 0x171   : > { %1734 = vst.msk [vmem:[%s2743_s6 + $0x30] sm:$0xff] %vm879_vm4, %v1702_v5  ;;  %v1175_v7 = vld [vmem:[#allocation2 + $0x58] sm:$0xff] }
 0x172   : > { %1144 = vst.msk [vmem:[#allocation2 + $0x60] sm:$0xff] %vm879_vm4, %v1073_v39  ;;  %v1423_v57 = vld [vmem:[#allocation2 + $0x48] sm:$0xff] }
 0x173   : > { %1392 = vst.msk [vmem:[#allocation2 + $0x50] sm:$0xff] %vm879_vm4, %v1360_v49  ;;  %v1129_v3 = vpop.f32.mrf.mxu3 }
 0x174   : > { %v1130_v61 = vadd.f32 %v2684_v25, %v1129_v3 }
 0x175   : > { %v1528_v12 = vpop.f32.mrf.mxu2 }
 0x176   : > { %1163 = vst.msk [vmem:[#allocation2 + $0xf8] sm:$0xff] %vm879_vm4, %v1130_v61  ;;  %v1608_v0 = vadd.f32 %v1528_v12, %v1422_v28  ;;  %v1075_v54 = vpop.f32.mrf.mxu0  ;;  %v1287_v18 = vpop.f32.mrf.mxu1  ;;  %v1192_v61 = vld [vmem:[#allocation2 + $0xe0] sm:$0xff] }
 0x177   : > { %v1671_v15 = vld [vmem:[#allocation2 + $0x38] sm:$0xff]  ;;  %v1076_v55 = vadd.f32 %v2684_v25, %v1075_v54  ;;  %v1361_v26 = vadd.f32 %v1287_v18, %v1175_v7 }
 0x178   : > { %v1703_v29 = vmax.f32 %v1671_v15, 0.0  ;;  %1640 = vst.msk [vmem:[#allocation2 + $0x40] sm:$0xff] %vm879_vm4, %v1608_v0 }
 0x179   : > { %1145 = vst.msk [vmem:[#allocation2 + $0x68] sm:$0xff] %vm879_vm4, %v1076_v55  ;;  %v1176_v23 = vld [vmem:[#allocation2 + $0x60] sm:$0xff] }
 0x17a   : > { %1735 = vst.msk [vmem:[%s2743_s6 + $0x38] sm:$0xff] %vm879_vm4, %v1703_v29  ;;  %v1424_v11 = vld [vmem:[#allocation2 + $0x50] sm:$0xff] }
 0x17b   : > { %1393 = vst.msk [vmem:[#allocation2 + $0x58] sm:$0xff] %vm879_vm4, %v1361_v26  ;;  %v1326_v17 = vpop.f32.mrf.mxu3 }
 0x17c   : > { %v1374_v33 = vadd.f32 %v1326_v17, %v1188_v8 }
 0x17d   : > { %v1531_v42 = vpop.f32.mrf.mxu2 }
 0x17e   : > { %1406 = vst.msk [vmem:[#allocation2 + $0xc0] sm:$0xff] %vm879_vm4, %v1374_v33  ;;  %v1609_v10 = vadd.f32 %v1531_v42, %v1423_v57  ;;  %v1078_v6 = vpop.f32.mrf.mxu0  ;;  %v1290_v45 = vpop.f32.mrf.mxu1  ;;  %v1193_v33 = vld [vmem:[#allocation2 + $0xe8] sm:$0xff] }
 0x17f   : > { %v1672_v30 = vld [vmem:[#allocation2 + $0x40] sm:$0xff]  ;;  %v1079_v43 = vadd.f32 %v2684_v25, %v1078_v6  ;;  %v1362_v14 = vadd.f32 %v1290_v45, %v1176_v23 }
 0x180   : > { %v1704_v31 = vmax.f32 %v1672_v30, 0.0  ;;  %1641 = vst.msk [vmem:[#allocation2 + $0x48] sm:$0xff] %vm879_vm4, %v1609_v10  ;;  %v1177_v34 = vld [vmem:[#allocation2 + $0x68] sm:$0xff] }
 0x181   : > { %1146 = vst.msk [vmem:[#allocation2 + $0x70] sm:$0xff] %vm879_vm4, %v1079_v43 }
 0x182   : > { %1736 = vst.msk [vmem:[%s2743_s6 + $0x40] sm:$0xff] %vm879_vm4, %v1704_v31  ;;  %v1425_v51 = vld [vmem:[#allocation2 + $0x58] sm:$0xff] }
 0x183   : > { %1394 = vst.msk [vmem:[#allocation2 + $0x60] sm:$0xff] %vm879_vm4, %v1362_v14  ;;  %v1329_v32 = vpop.f32.mrf.mxu3 }
 0x184   : > { %v1375_v50 = vadd.f32 %v1329_v32, %v1189_v13 }
 0x185   : > { %v1534_v24 = vpop.f32.mrf.mxu2 }
 0x186   : > { %1407 = vst.msk [vmem:[#allocation2 + $0xc8] sm:$0xff] %vm879_vm4, %v1375_v50  ;;  %v1610_v16 = vadd.f32 %v1534_v24, %v1424_v11  ;;  %v1081_v52 = vpop.f32.mrf.mxu0  ;;  %v1293_v35 = vpop.f32.mrf.mxu1  ;;  %v1194_v50 = vld [vmem:[#allocation2 + $0xf0] sm:$0xff] }
 0x187   : > { %v1673_v19 = vld [vmem:[#allocation2 + $0x48] sm:$0xff]  ;;  %v1082_v44 = vadd.f32 %v2684_v25, %v1081_v52  ;;  %v1363_v37 = vadd.f32 %v1293_v35, %v1177_v34 }
 0x188   : > { %v1705_v40 = vmax.f32 %v1673_v19, 0.0  ;;  %1642 = vst.msk [vmem:[#allocation2 + $0x50] sm:$0xff] %vm879_vm4, %v1610_v16  ;;  %v1178_v62 = vld [vmem:[#allocation2 + $0x70] sm:$0xff] }
 0x189   : > { %1147 = vst.msk [vmem:[#allocation2 + $0x78] sm:$0xff] %vm879_vm4, %v1082_v44 }
 0x18a   : > { %1737 = vst.msk [vmem:[%s2743_s6 + $0x48] sm:$0xff] %vm879_vm4, %v1705_v40  ;;  %v1426_v9 = vld [vmem:[#allocation2 + $0x60] sm:$0xff] }
 0x18b   : > { %1395 = vst.msk [vmem:[#allocation2 + $0x68] sm:$0xff] %vm879_vm4, %v1363_v37  ;;  %v1332_v36 = vpop.f32.mrf.mxu3 }
 0x18c   : > { %v1376_v21 = vadd.f32 %v1332_v36, %v1190_v41 }
 0x18d   : > { %v1537_v22 = vpop.f32.mrf.mxu2 }
 0x18e   : > { %1408 = vst.msk [vmem:[#allocation2 + $0xd0] sm:$0xff] %vm879_vm4, %v1376_v21  ;;  %v1611_v58 = vadd.f32 %v1537_v22, %v1425_v51  ;;  %v1084_v38 = vpop.f32.mrf.mxu0  ;;  %v1296_v2 = vpop.f32.mrf.mxu1  ;;  %v1195_v21 = vld [vmem:[#allocation2 + $0xf8] sm:$0xff] }
 0x18f   : > { %v1674_v48 = vld [vmem:[#allocation2 + $0x50] sm:$0xff]  ;;  %v1085_v60 = vadd.f32 %v2684_v25, %v1084_v38  ;;  %v1364_v53 = vadd.f32 %v1296_v2, %v1178_v62 }
 0x190   : > { %v1706_v46 = vmax.f32 %v1674_v48, 0.0  ;;  %1643 = vst.msk [vmem:[#allocation2 + $0x58] sm:$0xff] %vm879_vm4, %v1611_v58  ;;  %v1179_v56 = vld [vmem:[#allocation2 + $0x78] sm:$0xff] }
 0x191   : > { %1148 = vst.msk [vmem:[#allocation2 + $0x80] sm:$0xff] %vm879_vm4, %v1085_v60 }
 0x192   : > { %1738 = vst.msk [vmem:[%s2743_s6 + $0x50] sm:$0xff] %vm879_vm4, %v1706_v46  ;;  %v1427_v54 = vld [vmem:[#allocation2 + $0x68] sm:$0xff] }
 0x193   : > { %1396 = vst.msk [vmem:[#allocation2 + $0x70] sm:$0xff] %vm879_vm4, %v1364_v53  ;;  %v1335_v4 = vpop.f32.mrf.mxu3 }
 0x194   : > { %v1377_v27 = vadd.f32 %v1335_v4, %v1191_v47 }
 0x195   : > { %v1540_v20 = vpop.f32.mrf.mxu2 }
 0x196   : > { %1409 = vst.msk [vmem:[#allocation2 + $0xd8] sm:$0xff] %vm879_vm4, %v1377_v27  ;;  %v1612_v59 = vadd.f32 %v1540_v20, %v1426_v9  ;;  %v1087_v63 = vpop.f32.mrf.mxu0  ;;  %v1299_v1 = vpop.f32.mrf.mxu1  ;;  %v1438_v27 = vld [vmem:[#allocation2 + $0xc0] sm:$0xff] }
 0x197   : > { %v1675_v5 = vld [vmem:[#allocation2 + $0x58] sm:$0xff]  ;;  %v1088_v39 = vadd.f32 %v2684_v25, %v1087_v63  ;;  %v1365_v49 = vadd.f32 %v1299_v1, %v1179_v56 }
 0x198   : > { %v1707_v3 = vmax.f32 %v1675_v5, 0.0  ;;  %1644 = vst.msk [vmem:[#allocation2 + $0x60] sm:$0xff] %vm879_vm4, %v1612_v59  ;;  %v1180_v0 = vld [vmem:[#allocation2 + $0x80] sm:$0xff] }
 0x199   : > { %1149 = vst.msk [vmem:[#allocation2 + $0x88] sm:$0xff] %vm879_vm4, %v1088_v39 }
 0x19a   : > { %1739 = vst.msk [vmem:[%s2743_s6 + $0x58] sm:$0xff] %vm879_vm4, %v1707_v3  ;;  %v1428_v42 = vld [vmem:[#allocation2 + $0x70] sm:$0xff] }
 0x19b   : > { %1397 = vst.msk [vmem:[#allocation2 + $0x78] sm:$0xff] %vm879_vm4, %v1365_v49  ;;  %v1338_v28 = vpop.f32.mrf.mxu3 }
 0x19c   : > { %v1378_v12 = vadd.f32 %v1338_v28, %v1192_v61 }
 0x19d   : > { %v1543_v7 = vpop.f32.mrf.mxu2 }
 0x19e   : > { %1410 = vst.msk [vmem:[#allocation2 + $0xe0] sm:$0xff] %vm879_vm4, %v1378_v12  ;;  %v1613_v18 = vadd.f32 %v1543_v7, %v1427_v54  ;;  %v1090_v15 = vpop.f32.mrf.mxu0  ;;  %v1302_v55 = vpop.f32.mrf.mxu1  ;;  %v1439_v12 = vld [vmem:[#allocation2 + $0xc8] sm:$0xff] }
 0x19f   : > { %v1676_v26 = vld [vmem:[#allocation2 + $0x60] sm:$0xff]  ;;  %v1091_v29 = vadd.f32 %v2684_v25, %v1090_v15  ;;  %v1366_v8 = vadd.f32 %v1302_v55, %v1180_v0 }
 0x1a0   : > { %v1708_v17 = vmax.f32 %v1676_v26, 0.0  ;;  %1645 = vst.msk [vmem:[#allocation2 + $0x68] sm:$0xff] %vm879_vm4, %v1613_v18  ;;  %v1181_v30 = vld [vmem:[#allocation2 + $0x88] sm:$0xff] }
 0x1a1   : > { %1150 = vst.msk [vmem:[#allocation2 + $0x90] sm:$0xff] %vm879_vm4, %v1091_v29 }
 0x1a2   : > { %1740 = vst.msk [vmem:[%s2743_s6 + $0x60] sm:$0xff] %vm879_vm4, %v1708_v17  ;;  %v1429_v24 = vld [vmem:[#allocation2 + $0x78] sm:$0xff] }
 0x1a3   : > { %1398 = vst.msk [vmem:[#allocation2 + $0x80] sm:$0xff] %vm879_vm4, %v1366_v8  ;;  %v1341_v23 = vpop.f32.mrf.mxu3 }
 0x1a4   : > { %v1379_v57 = vadd.f32 %v1341_v23, %v1193_v33 }
 0x1a5   : > { %v1546_v10 = vpop.f32.mrf.mxu2 }
 0x1a6   : > { %1411 = vst.msk [vmem:[#allocation2 + $0xe8] sm:$0xff] %vm879_vm4, %v1379_v57  ;;  %v1614_v6 = vadd.f32 %v1546_v10, %v1428_v42  ;;  %v1093_v45 = vpop.f32.mrf.mxu0  ;;  %v1305_v43 = vpop.f32.mrf.mxu1  ;;  %v1440_v10 = vld [vmem:[#allocation2 + $0xd0] sm:$0xff] }
 0x1a7   : > { %v1677_v14 = vld [vmem:[#allocation2 + $0x68] sm:$0xff]  ;;  %v1094_v31 = vadd.f32 %v2684_v25, %v1093_v45  ;;  %v1367_v13 = vadd.f32 %v1305_v43, %v1181_v30 }
 0x1a8   : > { %v1709_v32 = vmax.f32 %v1677_v14, 0.0  ;;  %1646 = vst.msk [vmem:[#allocation2 + $0x70] sm:$0xff] %vm879_vm4, %v1614_v6  ;;  %v1182_v35 = vld [vmem:[#allocation2 + $0x90] sm:$0xff] }
 0x1a9   : > { %1151 = vst.msk [vmem:[#allocation2 + $0x98] sm:$0xff] %vm879_vm4, %v1094_v31 }
 0x1aa   : > { %1741 = vst.msk [vmem:[%s2743_s6 + $0x68] sm:$0xff] %vm879_vm4, %v1709_v32  ;;  %v1430_v22 = vld [vmem:[#allocation2 + $0x80] sm:$0xff] }
 0x1ab   : > { %1399 = vst.msk [vmem:[#allocation2 + $0x88] sm:$0xff] %vm879_vm4, %v1367_v13  ;;  %v1344_v34 = vpop.f32.mrf.mxu3 }
 0x1ac   : > { %v1380_v11 = vadd.f32 %v1344_v34, %v1194_v50 }
 0x1ad   : > { %v1549_v16 = vpop.f32.mrf.mxu2 }
 0x1ae   : > { %1412 = vst.msk [vmem:[#allocation2 + $0xf0] sm:$0xff] %vm879_vm4, %v1380_v11  ;;  %v1615_v52 = vadd.f32 %v1549_v16, %v1429_v24  ;;  %v1308_v19 = vpop.f32.mrf.mxu1  ;;  %v1096_v44 = vpop.f32.mrf.mxu0  ;;  %v1441_v24 = vld [vmem:[#allocation2 + $0xd8] sm:$0xff] }
 0x1af   : > { %v1678_v37 = vld [vmem:[#allocation2 + $0x70] sm:$0xff]  ;;  %v1368_v40 = vadd.f32 %v1308_v19, %v1182_v35  ;;  %v1097_v41 = vadd.f32 %v2684_v25, %v1096_v44 }
 0x1b0   : > { %v1710_v36 = vmax.f32 %v1678_v37, 0.0  ;;  %1647 = vst.msk [vmem:[#allocation2 + $0x78] sm:$0xff] %vm879_vm4, %v1615_v52  ;;  %v1183_v2 = vld [vmem:[#allocation2 + $0x98] sm:$0xff] }
 0x1b1   : > { %1400 = vst.msk [vmem:[#allocation2 + $0x90] sm:$0xff] %vm879_vm4, %v1368_v40 }
 0x1b2   : > { %1742 = vst.msk [vmem:[%s2743_s6 + $0x70] sm:$0xff] %vm879_vm4, %v1710_v36  ;;  %v1431_v59 = vld [vmem:[#allocation2 + $0x88] sm:$0xff] }
 0x1b3   : > { %v1347_v62 = vpop.f32.mrf.mxu3  ;;  %1152 = vst.msk [vmem:[#allocation2 + $0xa0] sm:$0xff] %vm879_vm4, %v1097_v41 }
 0x1b4   : > { %v1381_v51 = vadd.f32 %v1347_v62, %v1195_v21 }
 0x1b5   : > { %v1552_v58 = vpop.f32.mrf.mxu2 }
 0x1b6   : > { %1413 = vst.msk [vmem:[#allocation2 + $0xf8] sm:$0xff] %vm879_vm4, %v1381_v51  ;;  %v1616_v38 = vadd.f32 %v1552_v58, %v1430_v22  ;;  %v1311_v48 = vpop.f32.mrf.mxu1  ;;  %v1099_v60 = vpop.f32.mrf.mxu0  ;;  %v1442_v22 = vld [vmem:[#allocation2 + $0xe0] sm:$0xff] }
 0x1b7   : > { %v1679_v53 = vld [vmem:[#allocation2 + $0x78] sm:$0xff]  ;;  %v1369_v46 = vadd.f32 %v1311_v48, %v1183_v2  ;;  %v1100_v47 = vadd.f32 %v2684_v25, %v1099_v60 }
 0x1b8   : > { %v1711_v4 = vmax.f32 %v1679_v53, 0.0  ;;  %1648 = vst.msk [vmem:[#allocation2 + $0x80] sm:$0xff] %vm879_vm4, %v1616_v38  ;;  %v1432_v15 = vld [vmem:[#allocation2 + $0x90] sm:$0xff] }
 0x1b9   : > { %1401 = vst.msk [vmem:[#allocation2 + $0x98] sm:$0xff] %vm879_vm4, %v1369_v46 }
 0x1ba   : > { %1743 = vst.msk [vmem:[%s2743_s6 + $0x78] sm:$0xff] %vm879_vm4, %v1711_v4  ;;  %v1184_v20 = vld [vmem:[#allocation2 + $0xa0] sm:$0xff] }
 0x1bb   : > { %v1576_v56 = vpop.f32.mrf.mxu3  ;;  %1153 = vst.msk [vmem:[#allocation2 + $0xa8] sm:$0xff] %vm879_vm4, %v1100_v47 }
 0x1bc   : > { %v1624_v9 = vadd.f32 %v1576_v56, %v1438_v27  ;;  %v1443_v27 = vld [vmem:[#allocation2 + $0xe8] sm:$0xff] }
 0x1bd   : > { %v1555_v63 = vpop.f32.mrf.mxu2 }
 0x1be   : > { %1656 = vst.msk [vmem:[#allocation2 + $0xc0] sm:$0xff] %vm879_vm4, %v1624_v9  ;;  %v1617_v1 = vadd.f32 %v1555_v63, %v1431_v59  ;;  %v1314_v5 = vpop.f32.mrf.mxu1  ;;  %v1102_v39 = vpop.f32.mrf.mxu0 }
 0x1bf   : > { %v1680_v49 = vld [vmem:[#allocation2 + $0x80] sm:$0xff]  ;;  %v1370_v3 = vadd.f32 %v1314_v5, %v1184_v20  ;;  %v1103_v61 = vadd.f32 %v2684_v25, %v1102_v39 }
 0x1c0   : > { %v1712_v28 = vmax.f32 %v1680_v49, 0.0  ;;  %1649 = vst.msk [vmem:[#allocation2 + $0x88] sm:$0xff] %vm879_vm4, %v1617_v1  ;;  %v1433_v14 = vld [vmem:[#allocation2 + $0x98] sm:$0xff] }
 0x1c1   : > { %1402 = vst.msk [vmem:[#allocation2 + $0xa0] sm:$0xff] %vm879_vm4, %v1370_v3  ;;  %v1444_v3 = vld [vmem:[#allocation2 + $0xf0] sm:$0xff] }
 0x1c2   : > { %1744 = vst.msk [vmem:[%s2743_s6 + $0x80] sm:$0xff] %vm879_vm4, %v1712_v28  ;;  %v1185_v7 = vld [vmem:[#allocation2 + $0xa8] sm:$0xff] }
 0x1c3   : > { %v1579_v0 = vpop.f32.mrf.mxu3  ;;  %1154 = vst.msk [vmem:[#allocation2 + $0xb0] sm:$0xff] %vm879_vm4, %v1103_v61 }
 0x1c4   : > { %v1625_v54 = vadd.f32 %v1579_v0, %v1439_v12 }
 0x1c5   : > { %v1688_v18 = vld [vmem:[#allocation2 + $0xc0] sm:$0xff]  ;;  %v1558_v55 = vpop.f32.mrf.mxu2 }
 0x1c6   : > { %v1720_v26 = vmax.f32 %v1688_v18, 0.0  ;;  %1657 = vst.msk [vmem:[#allocation2 + $0xc8] sm:$0xff] %vm879_vm4, %v1625_v54  ;;  %v1618_v29 = vadd.f32 %v1558_v55, %v1432_v15  ;;  %v1317_v8 = vpop.f32.mrf.mxu1  ;;  %v1105_v17 = vpop.f32.mrf.mxu0 }
 0x1c7   : > { %v1681_v33 = vld [vmem:[#allocation2 + $0x88] sm:$0xff]  ;;  %v1371_v23 = vadd.f32 %v1317_v8, %v1185_v7  ;;  %v1106_v42 = vadd.f32 %v2684_v25, %v1105_v17 }
 0x1c8   : > { %1752 = vst.msk [vmem:[%s2743_s6 + $0xc0] sm:$0xff] %vm879_vm4, %v1720_v26  ;;  %v1713_v57 = vmax.f32 %v1681_v33, 0.0  ;;  %v1434_v44 = vld [vmem:[#allocation2 + $0xa0] sm:$0xff]  ;;  %v1445_v26 = vld [vmem:[#allocation2 + $0xf8] sm:$0xff] }
 0x1c9   : > { %1650 = vst.msk [vmem:[#allocation2 + $0x90] sm:$0xff] %vm879_vm4, %v1618_v29 }
 0x1ca   : > { %1745 = vst.msk [vmem:[%s2743_s6 + $0x88] sm:$0xff] %vm879_vm4, %v1713_v57  ;;  %v1186_v30 = vld [vmem:[#allocation2 + $0xb0] sm:$0xff] }
 0x1cb   : > { %1403 = vst.msk [vmem:[#allocation2 + $0xa8] sm:$0xff] %vm879_vm4, %v1371_v23  ;;  %v1582_v6 = vpop.f32.mrf.mxu3 }
 0x1cc   : > { %v1626_v45 = vadd.f32 %v1582_v6, %v1440_v10  ;;  %1155 = vst.msk [vmem:[#allocation2 + $0xb8] sm:$0xff] %vm879_vm4, %v1106_v42 }
 0x1cd   : > { %v1689_v43 = vld [vmem:[#allocation2 + $0xc8] sm:$0xff]  ;;  %v1561_v31 = vpop.f32.mrf.mxu2 }
 0x1ce   : > { %v1721_v13 = vmax.f32 %v1689_v43, 0.0  ;;  %1658 = vst.msk [vmem:[#allocation2 + $0xd0] sm:$0xff] %vm879_vm4, %v1626_v45  ;;  %v1619_v25 = vadd.f32 %v1561_v31, %v1433_v14  ;;  %v1320_v32 = vpop.f32.mrf.mxu1 }
 0x1cf   : > { %v1372_v50 = vadd.f32 %v1320_v32, %v1186_v30 }
 0x1d0   : > { %1753 = vst.msk [vmem:[%s2743_s6 + $0xc8] sm:$0xff] %vm879_vm4, %v1721_v13  ;;  %v1682_v34 = vld [vmem:[#allocation2 + $0x90] sm:$0xff] }
 0x1d1   : > { %v1714_v11 = vmax.f32 %v1682_v34, 0.0  ;;  %1651 = vst.msk [vmem:[#allocation2 + $0x98] sm:$0xff] %vm879_vm4, %v1619_v25 }
 0x1d2   : > { %1404 = vst.msk [vmem:[#allocation2 + $0xb0] sm:$0xff] %vm879_vm4, %v1372_v50  ;;  %v1435_v48 = vld [vmem:[#allocation2 + $0xa8] sm:$0xff] }
 0x1d3   : > { %1746 = vst.msk [vmem:[%s2743_s6 + $0x90] sm:$0xff] %vm879_vm4, %v1714_v11  ;;  %v1585_v16 = vpop.f32.mrf.mxu3  ;;  %v1187_v35 = vld [vmem:[#allocation2 + $0xb8] sm:$0xff] }
 0x1d4   : > { %v1627_v52 = vadd.f32 %v1585_v16, %v1441_v24 }
 0x1d5   : > { %v1690_v19 = vld [vmem:[#allocation2 + $0xd0] sm:$0xff]  ;;  %v1564_v37 = vpop.f32.mrf.mxu2 }
 0x1d6   : > { %v1722_v40 = vmax.f32 %v1690_v19, 0.0  ;;  %1659 = vst.msk [vmem:[#allocation2 + $0xd8] sm:$0xff] %vm879_vm4, %v1627_v52  ;;  %v1620_v41 = vadd.f32 %v1564_v37, %v1434_v44  ;;  %v1323_v36 = vpop.f32.mrf.mxu1 }
 0x1d7   : > { %v1373_v21 = vadd.f32 %v1323_v36, %v1187_v35 }
 0x1d8   : > { %1754 = vst.msk [vmem:[%s2743_s6 + $0xd0] sm:$0xff] %vm879_vm4, %v1722_v40  ;;  %v1683_v62 = vld [vmem:[#allocation2 + $0x98] sm:$0xff] }
 0x1d9   : > { %v1715_v51 = vmax.f32 %v1683_v62, 0.0  ;;  %1652 = vst.msk [vmem:[#allocation2 + $0xa0] sm:$0xff] %vm879_vm4, %v1620_v41  ;;  %v1436_v59 = vld [vmem:[#allocation2 + $0xb0] sm:$0xff] }
 0x1da   : > { %1405 = vst.msk [vmem:[#allocation2 + $0xb8] sm:$0xff] %vm879_vm4, %v1373_v21 }
 0x1db   : > { %1747 = vst.msk [vmem:[%s2743_s6 + $0x98] sm:$0xff] %vm879_vm4, %v1715_v51  ;;  %v1588_v58 = vpop.f32.mrf.mxu3 }
 0x1dc   : > { %v1628_v38 = vadd.f32 %v1588_v58, %v1442_v22 }
 0x1dd   : > { %v1691_v2 = vld [vmem:[#allocation2 + $0xd8] sm:$0xff]  ;;  %v1567_v60 = vpop.f32.mrf.mxu2 }
 0x1de   : > { %v1723_v53 = vmax.f32 %v1691_v2, 0.0  ;;  %1660 = vst.msk [vmem:[#allocation2 + $0xe0] sm:$0xff] %vm879_vm4, %v1628_v38  ;;  %v1621_v46 = vadd.f32 %v1567_v60, %v1435_v48 }
 0x1e0   : > { %1755 = vst.msk [vmem:[%s2743_s6 + $0xd8] sm:$0xff] %vm879_vm4, %v1723_v53  ;;  %v1684_v47 = vld [vmem:[#allocation2 + $0xa0] sm:$0xff] }
 0x1e1   : > { %v1716_v4 = vmax.f32 %v1684_v47, 0.0  ;;  %1653 = vst.msk [vmem:[#allocation2 + $0xa8] sm:$0xff] %vm879_vm4, %v1621_v46  ;;  %v1437_v0 = vld [vmem:[#allocation2 + $0xb8] sm:$0xff] }
 0x1e3   : > { %1748 = vst.msk [vmem:[%s2743_s6 + $0xa0] sm:$0xff] %vm879_vm4, %v1716_v4  ;;  %v1591_v56 = vpop.f32.mrf.mxu3 }
 0x1e4   : > { %v1629_v9 = vadd.f32 %v1591_v56, %v1443_v27 }
 0x1e5   : > { %v1692_v20 = vld [vmem:[#allocation2 + $0xe0] sm:$0xff]  ;;  %v1570_v63 = vpop.f32.mrf.mxu2 }
 0x1e6   : > { %v1724_v1 = vmax.f32 %v1692_v20, 0.0  ;;  %1661 = vst.msk [vmem:[#allocation2 + $0xe8] sm:$0xff] %vm879_vm4, %v1629_v9  ;;  %v1622_v5 = vadd.f32 %v1570_v63, %v1436_v59 }
 0x1e8   : > { %1756 = vst.msk [vmem:[%s2743_s6 + $0xe0] sm:$0xff] %vm879_vm4, %v1724_v1  ;;  %v1685_v39 = vld [vmem:[#allocation2 + $0xa8] sm:$0xff] }
 0x1e9   : > { %v1717_v49 = vmax.f32 %v1685_v39, 0.0  ;;  %1654 = vst.msk [vmem:[#allocation2 + $0xb0] sm:$0xff] %vm879_vm4, %v1622_v5 }
 0x1eb   : > { %1749 = vst.msk [vmem:[%s2743_s6 + $0xa8] sm:$0xff] %vm879_vm4, %v1717_v49  ;;  %v1594_v61 = vpop.f32.mrf.mxu3 }
 0x1ec   : > { %v1630_v28 = vadd.f32 %v1594_v61, %v1444_v3 }
 0x1ed   : > { %v1693_v12 = vld [vmem:[#allocation2 + $0xe8] sm:$0xff]  ;;  %v1573_v54 = vpop.f32.mrf.mxu2 }
 0x1ee   : > { %v1725_v7 = vmax.f32 %v1693_v12, 0.0  ;;  %1662 = vst.msk [vmem:[#allocation2 + $0xf0] sm:$0xff] %vm879_vm4, %v1630_v28  ;;  %v1623_v18 = vadd.f32 %v1573_v54, %v1437_v0 }
 0x1f0   : > { %1757 = vst.msk [vmem:[%s2743_s6 + $0xe8] sm:$0xff] %vm879_vm4, %v1725_v7  ;;  %v1686_v15 = vld [vmem:[#allocation2 + $0xb0] sm:$0xff] }
 0x1f1   : > { %v1718_v55 = vmax.f32 %v1686_v15, 0.0  ;;  %1655 = vst.msk [vmem:[#allocation2 + $0xb8] sm:$0xff] %vm879_vm4, %v1623_v18 }
 0x1f3   : > { %1750 = vst.msk [vmem:[%s2743_s6 + $0xb0] sm:$0xff] %vm879_vm4, %v1718_v55  ;;  %v1597_v29 = vpop.f32.mrf.mxu3 }
 0x1f4   : > { %v1631_v8 = vadd.f32 %v1597_v29, %v1445_v26 }
 0x1f5   : > { %v1694_v17 = vld [vmem:[#allocation2 + $0xf0] sm:$0xff] }
 0x1f6   : > { %v1726_v33 = vmax.f32 %v1694_v17, 0.0  ;;  %1663 = vst.msk [vmem:[#allocation2 + $0xf8] sm:$0xff] %vm879_vm4, %v1631_v8 }
 0x1f8   : > { %1758 = vst.msk [vmem:[%s2743_s6 + $0xf0] sm:$0xff] %vm879_vm4, %v1726_v33  ;;  %v1687_v23 = vld [vmem:[#allocation2 + $0xb8] sm:$0xff] }
 0x1f9   : > { %v1719_v57 = vmax.f32 %v1687_v23, 0.0 }
 0x1fb   : > { %1751 = vst.msk [vmem:[%s2743_s6 + $0xb8] sm:$0xff] %vm879_vm4, %v1719_v57 }
 0x1fd   : > { %v1695_v42 = vld [vmem:[#allocation2 + $0xf8] sm:$0xff] }
 0x1fe   : > { %v1727_v10 = vmax.f32 %v1695_v42, 0.0 }
 0x200   : > { %1759 = vst.msk [vmem:[%s2743_s6 + $0xf8] sm:$0xff] %vm879_vm4, %v1727_v10 }
 0x201 PF: > { %s15_s20 = sadd.s32 1, %s2076_s20   ;;  %s2999_s18 = smov %s2072_s19 }
 0x202   : > { %p12_p5 = scmp.ge.s32.totalorder %s15_s20, 4   ;;  %s3000_s19 = smov %s3002_s21 }
 0x204   :  { %14 = sbr.rel (!%p12_p5) target bundleno = 2 (0x2), region = 78 }

// kernel: vgg_conv_block.3
= control target key start
LH: loop header
LB: loop body
LE: loop exit
PB: predicated region body
PF: predicated region fallthrough
CT: control target
= control target key end

     0   :  { %s2818_s18 = smov 0   ;;  %s2820_s19 = smov 0   ;;  %s3841_s0 = inlined_call_operand.vmem [shape: f32[2,18,18,8], index: 0, kind: input, shape index: {}, may-alias: {0,1,2}]   ;;  %s3842_s1 = inlined_call_operand.vmem [shape: f32[2,18,18,8], index: 1, kind: input, shape index: {}, may-alias: {0,1,2}]   ;;  %s3843_s2 = inlined_call_operand.vmem [shape: f32[2,18,18,8], index: 2, kind: input, shape index: {}, may-alias: {0,1,2}]   ;;  %s3844_s3 = inlined_call_operand.vmem [shape: f32[3,24,8], index: 3, kind: input, shape index: {}]   ;;  %s3845_s4 = inlined_call_operand.vmem [shape: f32[1,8], index: 4, kind: input, shape index: {}]   ;;  %s3846_s5 = inlined_call_operand.vmem [shape: f32[2,8,8,8], index: 5, kind: output, shape index: {}]  }
   0x1   :  { %s2822_s20 = smov 0  }
   0x2 LB: > { %s27_s21 = sadd.s32 1, %s2780_s19  ;;  %p2607_p0 = scmp.ge.s32.totalorder %s2784_s20, 1  ;;  %s2784_s20 = sphi %s2822_s20, %s15_s20   ;;  %s2780_s19 = sphi %s2820_s19, %s3848_s19   ;;  %s2776_s18 = sphi %s2818_s18, %s3847_s18  }
   0x3   : > { %p29_p1 = scmp.ge.s32.totalorder %s27_s21, 2  ;;  %p267_p2 = scmp.lt.s32.totalorder %s2784_s20, 3 }
   0x5   : > { %s3850_s21 = smov (%p29_p1, %s27_s21), 0  ;;  %p268_p3 = pnand %p2607_p0, %p267_p2 }
   0x6   : > { %p337_p4 = scmp.lt.s32.totalorder (!%p268_p3), %s2776_s18, 1  ;;  %s2786_s26 = smov (!%p268_p3), 8  }
   0x7   : > { %271 = sbr.rel (%p268_p3) target bundleno = 564 (0x234), region = 40  ;;  %s2787_s27 = smov (!%p268_p3), 16  }
   0xc   : > { %s3852_s18 = smov (!%p337_p4, %s2776_s18), 1  ;;  %vm490_vm0 = vcmask 1046528   ;;  %vm667_vm1 = vcmask 1045504   ;;  %vm844_vm2 = vcmask 64512   ;;  %vm877_vm3 = vcmask 130048  }
   0xd   : > { %s2839_s22 = smul.u32 432, %s3852_s18  ;;  %vm917_vm4 = vcmask 195584   ;;  %vm1879_vm5 = vcmask 58368   ;;  %vm2392_vm6 = vcmask 1041409   ;;  %vm2394_vm7 = vcmask 1042434  }
   0xe   : > { %vm2396_vm8 = vcmask 1043459   ;;  %vm2398_vm9 = vcmask 1044484   ;;  %vm2400_vm10 = vcmask 1045509   ;;  %vm2402_vm11 = vcmask 1046534  }
   0xf   : > { %s2845_s25 = scalar_lea.vmem %s3841_s0, %s2839_s22  ;;  %s2718_s29 = sadd.s32 384, %s2839_s22  ;;  %vm2404_vm12 = vcmask 1047559  }
  0x10   : > { %v2848_v0 = vld [vmem:[%s2845_s25 + $0x8] sm:$0xff]  ;;  %v390_v1 = vld [vmem:[%s2845_s25 + $0x10] sm:$0x3]  ;;  %v2852_v2 = vld [vmem:[%s2845_s25] sm:$0xff]  ;;  %s3154_s7 = scalar_lea.vmem %s3842_s1, %s2718_s29 }
  0x11   : > { %v492_v3 = vrot.slane %v2848_v0, 1  ;;  %v494_v4 = vrot.slane %v390_v1, 1  ;;  %v491_v5 = vrot.slane %v2852_v2, 1  ;;  %v2859_v8 = vld [vmem:[%s2845_s25 + $0x20] sm:$0xff]  ;;  %v2862_v9 = vld [vmem:[%s2845_s25 + $0x18] sm:$0xff]  ;;  %v669_v11 = vrot.slane %v2848_v0, 2 }
  0x12   : > { %v497_v10 = vrot.slane %v2859_v8, 1  ;;  %v671_v12 = vrot.slane %v390_v1, 2  ;;  %v668_v13 = vrot.slane %v2852_v2, 2  ;;  %v496_v14 = vrot.slane %v2862_v9, 1  ;;  %v2874_v18 = vld [vmem:[%s2845_s25 + $0x120] sm:$0xff]  ;;  %v2878_v19 = vld [vmem:[%s2845_s25 + $0x128] sm:$0xff] }
  0x13   : > { %v495_v6 = vsel %vm490_vm0, %v492_v3, %v494_v4  ;;  %v493_v7 = vsel %vm490_vm0, %v491_v5, %v492_v3  ;;  %v2881_v20 = vld [vmem:[%s2845_s25 + $0x30] sm:$0xff]  ;;  %v2884_v21 = vld [vmem:[%s2845_s25 + $0x38] sm:$0xff]  ;;  %v673_v22 = vrot.slane %v2862_v9, 2  ;;  %v674_v23 = vrot.slane %v2859_v8, 2  ;;  %v393_v31 = vld [vmem:[%s2845_s25 + $0x28] sm:$0x3] }
  0x14   : > { %573 = vrot.lane.b32.xlu1 %v495_v6, %s2786_s26  ;;  %571 = vrot.lane.b32.xlu0 %v493_v7, %s2786_s26  ;;  %v498_v15 = vsel %vm490_vm0, %v496_v14, %v497_v10  ;;  %v672_v16 = vsel %vm667_vm1, %v669_v11, %v671_v12  ;;  %v670_v17 = vsel %vm667_vm1, %v668_v13, %v669_v11  ;;  %v551_v24 = vrot.slane %v2874_v18, 1  ;;  %v426_v40 = vld [vmem:[%s2845_s25 + $0x130] sm:$0x3]  ;;  %v396_v41 = vld [vmem:[%s2845_s25 + $0x40] sm:$0x3] }
  0x15   : > { %575 = vrot.lane.b32.xlu2 %v498_v15, %s2786_s26  ;;  %v552_v25 = vrot.slane %v2878_v19, 1  ;;  %v501_v26 = vrot.slane %v2881_v20, 1  ;;  %v502_v27 = vrot.slane %v2884_v21, 1  ;;  %v675_v28 = vsel %vm667_vm1, %v673_v22, %v674_v23  ;;  %v2918_v48 = vld [vmem:[%s2845_s25 + $0x48] sm:$0xff]  ;;  %v2921_v49 = vld [vmem:[%s2845_s25 + $0x50] sm:$0xff]  ;;  %v2931_v57 = vld [vmem:[%s2845_s25 + $0x138] sm:$0xff] }
  0x16   : > { %v678_v32 = vrot.slane %v2881_v20, 2  ;;  %v679_v33 = vrot.slane %v2884_v21, 2  ;;  %v499_v34 = vrot.slane %v393_v31, 1  ;;  %v728_v35 = vrot.slane %v2874_v18, 2  ;;  %v2935_v58 = vld [vmem:[%s2845_s25 + $0x140] sm:$0xff] }
  0x17   : > { %v553_v29 = vsel %vm490_vm0, %v551_v24, %v552_v25  ;;  %v503_v30 = vsel %vm490_vm0, %v501_v26, %v502_v27  ;;  %v729_v36 = vrot.slane %v2878_v19, 2  ;;  %v676_v42 = vrot.slane %v393_v31, 2  ;;  %v399_v6 = vld [vmem:[%s2845_s25 + $0x58] sm:$0x3]  ;;  %v429_v7 = vld [vmem:[%s2845_s25 + $0x148] sm:$0x3] }
  0x18   : > { %v680_v37 = vsel %vm667_vm1, %v678_v32, %v679_v33  ;;  %v500_v38 = vsel %vm490_vm0, %v497_v10, %v499_v34  ;;  %v554_v43 = vrot.slane %v426_v40, 1  ;;  %v504_v44 = vrot.slane %v396_v41, 1  ;;  %v2964_v22 = vld [vmem:[%s2845_s25 + $0x60] sm:$0xff]  ;;  %v402_v32 = vld [vmem:[%s2845_s25 + $0x70] sm:$0x3] }
  0x19   : > { %v730_v39 = vsel %vm667_vm1, %v728_v35, %v729_v36  ;;  %v677_v45 = vsel %vm667_vm1, %v674_v23, %v676_v42  ;;  %v681_v50 = vrot.slane %v396_v41, 2  ;;  %v506_v51 = vrot.slane %v2918_v48, 1  ;;  %v2967_v23 = vld [vmem:[%s2845_s25 + $0x68] sm:$0xff]  ;;  %v432_v41 = vld [vmem:[%s2845_s25 + $0x160] sm:$0x3] }
  0x1a   : > { %v555_v46 = vsel %vm490_vm0, %v552_v25, %v554_v43  ;;  %v505_v47 = vsel %vm490_vm0, %v502_v27, %v504_v44  ;;  %v507_v52 = vrot.slane %v2921_v49, 1  ;;  %v731_v53 = vrot.slane %v426_v40, 2 }
  0x1b   : > { %v682_v54 = vsel %vm667_vm1, %v679_v33, %v681_v50  ;;  %v556_v59 = vrot.slane %v2931_v57, 1  ;;  %v557_v60 = vrot.slane %v2935_v58, 1  ;;  %v733_v61 = vrot.slane %v2931_v57, 2  ;;  %v2997_v50 = vld [vmem:[%s2845_s25 + $0x78] sm:$0xff] }
  0x1c   : > { %750 = vrot.lane.b32.xlu1 %v672_v16, %s2787_s27  ;;  %748 = vrot.lane.b32.xlu0 %v670_v17, %s2787_s27  ;;  %v508_v55 = vsel %vm490_vm0, %v506_v51, %v507_v52  ;;  %v732_v56 = vsel %vm667_vm1, %v729_v36, %v731_v53  ;;  %v734_v62 = vrot.slane %v2935_v58, 2  ;;  %v683_v63 = vrot.slane %v2918_v48, 2  ;;  %v2957_v16 = vld [vmem:[%s2845_s25 + $0x150] sm:$0xff]  ;;  %v2961_v17 = vld [vmem:[%s2845_s25 + $0x158] sm:$0xff] }
  0x1d   : > { %752 = vrot.lane.b32.xlu2 %v675_v28, %s2787_s27  ;;  %v684_v1 = vrot.slane %v2921_v49, 2  ;;  %v558_v3 = vsel %vm490_vm0, %v556_v59, %v557_v60  ;;  %v509_v10 = vrot.slane %v399_v6, 1  ;;  %v686_v11 = vrot.slane %v399_v6, 2  ;;  %v3001_v51 = vld [vmem:[%s2845_s25 + $0x80] sm:$0xff]  ;;  %v3007_v53 = vld [vmem:[%s2845_s25 + $0x170] sm:$0xff] }
  0x1e   : > { %v735_v4 = vsel %vm667_vm1, %v733_v61, %v734_v62  ;;  %v559_v12 = vrot.slane %v429_v7, 1  ;;  %v736_v24 = vrot.slane %v429_v7, 2  ;;  %v561_v25 = vrot.slane %v2957_v16, 1  ;;  %v435_v6 = vld [vmem:[%s2845_s25 + $0x178] sm:$0x3] }
  0x1f   : > { %v685_v5 = vsel %vm667_vm1, %v683_v63, %v684_v1  ;;  %v510_v13 = vsel %vm490_vm0, %v507_v52, %v509_v10  ;;  %v687_v14 = vsel %vm667_vm1, %v684_v1, %v686_v11  ;;  %v562_v26 = vrot.slane %v2961_v17, 1  ;;  %v3004_v52 = vld [vmem:[%s2845_s25 + $0x168] sm:$0xff]  ;;  %v912_v63 = vld [vmem:[%s3844_s3 + $0x10] sm:$0xff] }
  0x20   : > { %v560_v15 = vsel %vm490_vm0, %v557_v60, %v559_v12  ;;  %v511_v27 = vrot.slane %v2964_v22, 1  ;;  %v512_v28 = vrot.slane %v2967_v23, 1  ;;  %v688_v33 = vrot.slane %v2964_v22, 2  ;;  %v2647_v1 = vld [vmem:[%s3844_s3 + $0x28] sm:$0xff]  ;;  %1027 = vmatpush.msra.mxu0 %v912_v63  ;;  %2722 = vmatpush.msra.mxu3 %v912_v63  ;;  %v2646_v12 = vld [vmem:[%s3844_s3 + $0x20] sm:$0xff] }
  0x21   : > { %v689_v34 = vrot.slane %v2967_v23, 2  ;;  %v514_v35 = vrot.slane %v402_v32, 1  ;;  %v738_v36 = vrot.slane %v2957_v16, 2  ;;  %v564_v42 = vrot.slane %v432_v41, 1  ;;  %1243 = vmatpush.msra.mxu1 %v2647_v1  ;;  %v405_v7 = vld [vmem:[%s2845_s25 + $0x88] sm:$0x3] }
  0x22   : > { %v513_v31 = vsel %vm490_vm0, %v511_v27, %v512_v28  ;;  %v741_v43 = vrot.slane %v432_v41, 2  ;;  %v691_v44 = vrot.slane %v402_v32, 2  ;;  %v694_v59 = vrot.slane %v3001_v51, 2  ;;  %v3054_v27 = vld [vmem:[%s3844_s3 + $0x38] sm:$0xff] }
  0x23   : > { %v566_v60 = vrot.slane %v3004_v52, 1  ;;  %v567_v61 = vrot.slane %v3007_v53, 1  ;;  %v743_v10 = vrot.slane %v3004_v52, 2  ;;  %v744_v11 = vrot.slane %v3007_v53, 2  ;;  %1244 = vmatpush.msra.mxu1 %v2646_v12 }
  0x24   : > { %619 = vrot.lane.b32.xlu1 %v553_v29, %s2786_s26  ;;  %579 = vrot.lane.b32.xlu0 %v503_v30, %s2786_s26  ;;  %v737_v29 = vsel %vm667_vm1, %v734_v62, %v736_v24  ;;  %v563_v30 = vsel %vm490_vm0, %v561_v25, %v562_v26  ;;  %v910_v24 = vld [vmem:[%s3844_s3] sm:$0xff]  ;;  %v2645_v25 = vld [vmem:[%s3844_s3 + $0x18] sm:$0xff]  ;;  %v696_v32 = vrot.slane %v405_v7, 2 }
  0x25   : > { %756 = vrot.lane.b32.xlu2 %v680_v37, %s2787_s27  ;;  %v739_v37 = vrot.slane %v2961_v17, 2  ;;  %1245 = vmatpush.msra.mxu1 %v2645_v25 }
  0x27   : > { %v740_v40 = vsel %vm667_vm1, %v738_v36, %v739_v37  ;;  %v746_v36 = vrot.slane %v435_v6, 2 }
  0x2c   : > { %577 = vrot.lane.b32.xlu1 %v500_v38, %s2786_s26  ;;  %796 = vrot.lane.b32.xlu0 %v730_v39, %s2787_s27  ;;  %v690_v38 = vsel %vm667_vm1, %v688_v33, %v689_v34  ;;  %v515_v39 = vsel %vm490_vm0, %v512_v28, %v514_v35 }
  0x2d   : > { %754 = vrot.lane.b32.xlu2 %v677_v45, %s2787_s27  ;;  %v565_v45 = vsel %vm490_vm0, %v562_v26, %v564_v42  ;;  %v3049_v26 = vld [vmem:[%s3844_s3 + $0x40] sm:$0xff] }
  0x2e   : > { %1491 = vmatpush.msra.mxu2 %v3049_v26  ;;  %v408_v42 = vld [vmem:[%s2845_s25 + $0xa0] sm:$0x3] }
  0x30   : > { %1492 = vmatpush.msra.mxu2 %v3054_v27 }
  0x34   : > { %621 = vrot.lane.b32.xlu1 %v555_v46, %s2786_s26  ;;  %581 = vrot.lane.b32.xlu0 %v505_v47, %s2786_s26  ;;  %v742_v46 = vsel %vm667_vm1, %v739_v37, %v741_v43  ;;  %v692_v47 = vsel %vm667_vm1, %v689_v34, %v691_v44  ;;  %v697_v37 = vsel %vm667_vm1, %v694_v59, %v696_v32 }
  0x35   : > { %758 = vrot.lane.b32.xlu2 %v682_v54, %s2787_s27  ;;  %v516_v54 = vrot.slane %v2997_v50, 1 }
  0x3c   : > { %583 = vrot.lane.b32.xlu1 %v508_v55, %s2786_s26  ;;  %798 = vrot.lane.b32.xlu0 %v732_v56, %s2787_s27  ;;  %v517_v55 = vrot.slane %v3001_v51, 1  ;;  %v693_v56 = vrot.slane %v2997_v50, 2 }
  0x3d   : > { %623 = vrot.lane.b32.xlu2 %v558_v3, %s2786_s26  ;;  %v911_v3 = vld [vmem:[%s3844_s3 + $0x8] sm:$0xff] }
  0x3e   : > { %v518_v62 = vsel %vm490_vm0, %v516_v54, %v517_v55  ;;  %1028 = vmatpush.msra.mxu0 %v911_v3  ;;  %2723 = vmatpush.msra.mxu3 %v911_v3 }
  0x40   : > { %1029 = vmatpush.msra.mxu0 %v910_v24  ;;  %2724 = vmatpush.msra.mxu3 %v910_v24 }
  0x42   : > { %2725 = vmatpush.msrb.mxu3 %v2647_v1 }
  0x44   : > { %800 = vrot.lane.b32.xlu1 %v735_v4, %s2787_s27  ;;  %760 = vrot.lane.b32.xlu0 %v685_v5, %s2787_s27  ;;  %v695_v4 = vsel %vm667_vm1, %v693_v56, %v694_v59  ;;  %v568_v5 = vsel %vm490_vm0, %v566_v60, %v567_v61  ;;  %v3097_v59 = vld [vmem:[%s2845_s25 + $0xa8] sm:$0xff]  ;;  %v3101_v60 = vld [vmem:[%s2845_s25 + $0xb0] sm:$0xff] }
  0x45   : > { %585 = vrot.lane.b32.xlu2 %v510_v13, %s2786_s26  ;;  %v569_v13 = vrot.slane %v435_v6, 1  ;;  %2726 = vmatpush.msrb.mxu3 %v2646_v12  ;;  %v527_v1 = vrot.slane %v3101_v60, 1  ;;  %v703_v3 = vrot.slane %v3097_v59, 2 }
  0x47   : > { %v570_v28 = vsel %vm490_vm0, %v567_v61, %v569_v13  ;;  %2727 = vmatpush.msrb.mxu3 %v2645_v25  ;;  %v411_v61 = vld [vmem:[%s2845_s25 + $0xb8] sm:$0x3]  ;;  %v3115_v13 = vld [vmem:[%s2845_s25 + $0xc0] sm:$0xff] }
  0x48   : > { %v531_v25 = vrot.slane %v3115_v13, 1 }
  0x4c   : > { %762 = vrot.lane.b32.xlu1 %v687_v14, %s2787_s27  ;;  %625 = vrot.lane.b32.xlu0 %v560_v15, %s2786_s26  ;;  %v519_v14 = vrot.slane %v405_v7, 1  ;;  %v745_v15 = vsel %vm667_vm1, %v743_v10, %v744_v11 }
  0x4d   : > { %802 = vrot.lane.b32.xlu2 %v737_v29, %s2787_s27 }
  0x4e   : > { %v520_v29 = vsel %vm490_vm0, %v517_v55, %v519_v14  ;;  %v3118_v14 = vld [vmem:[%s2845_s25 + $0xc8] sm:$0xff] }
  0x4f   : > { %v709_v32 = vrot.slane %v3118_v14, 2 }
  0x54   : > { %627 = vrot.lane.b32.xlu1 %v563_v30, %s2786_s26  ;;  %587 = vrot.lane.b32.xlu0 %v513_v31, %s2786_s26  ;;  %v3061_v30 = vld [vmem:[%s2845_s25 + $0x90] sm:$0xff]  ;;  %v3064_v31 = vld [vmem:[%s2845_s25 + $0x98] sm:$0xff] }
  0x55   : > { %764 = vrot.lane.b32.xlu2 %v690_v38, %s2787_s27  ;;  %v521_v34 = vrot.slane %v3061_v30, 1  ;;  %v522_v35 = vrot.slane %v3064_v31, 1  ;;  %v3075_v38 = vld [vmem:[%s3844_s3 + $0x30] sm:$0xff]  ;;  %v698_v43 = vrot.slane %v3061_v30, 2 }
  0x56   : > { %1493 = vmatpush.msra.mxu2 %v3075_v38 }
  0x5c   : > { %589 = vrot.lane.b32.xlu1 %v515_v39, %s2786_s26  ;;  %804 = vrot.lane.b32.xlu0 %v740_v40, %s2787_s27  ;;  %v523_v39 = vsel %vm490_vm0, %v521_v34, %v522_v35  ;;  %v747_v40 = vsel %vm667_vm1, %v744_v11, %v746_v36 }
  0x5d   : > { %629 = vrot.lane.b32.xlu2 %v565_v45, %s2786_s26  ;;  %v699_v45 = vrot.slane %v3064_v31, 2 }
  0x5f   : > { %v700_v54 = vsel %vm667_vm1, %v698_v43, %v699_v45  ;;  %v3139_v43 = vld [vmem:[%s2845_s25 + $0xe0] sm:$0xff] }
  0x64   : > { %806 = vrot.lane.b32.xlu1 %v742_v46, %s2787_s27  ;;  %766 = vrot.lane.b32.xlu0 %v692_v47, %s2787_s27  ;;  %v701_v47 = vrot.slane %v408_v42, 2 }
  0x65   : > { %591 = vrot.lane.b32.xlu2 %v518_v62, %s2786_s26  ;;  %v526_v62 = vrot.slane %v3097_v59, 1 }
  0x66   : > { %v702_v56 = vsel %vm667_vm1, %v699_v45, %v701_v47  ;;  %v537_v47 = vrot.slane %v3139_v43, 1 }
  0x67   : > { %v528_v10 = vsel %vm490_vm0, %v526_v62, %v527_v1 }
  0x6c   : > { %768 = vrot.lane.b32.xlu1 %v695_v4, %s2787_s27  ;;  %631 = vrot.lane.b32.xlu0 %v568_v5, %s2786_s26  ;;  %v704_v4 = vrot.slane %v3101_v60, 2  ;;  %v529_v5 = vrot.slane %v411_v61, 1 }
  0x6d   : > { %808 = vrot.lane.b32.xlu2 %v745_v15, %s2787_s27  ;;  %v706_v15 = vrot.slane %v411_v61, 2 }
  0x6e   : > { %v705_v11 = vsel %vm667_vm1, %v703_v3, %v704_v4  ;;  %v530_v12 = vsel %vm490_vm0, %v527_v1, %v529_v5  ;;  %v3165_v3 = vld [vmem:[%s3154_s7] sm:$0xff] }
  0x6f   : > { %v576_v33 = vpop.permute.xlu2 %575  ;;  %v707_v36 = vsel %vm667_vm1, %v704_v4, %v706_v15  ;;  %v3168_v4 = vld [vmem:[%s3154_s7 + $0x8] sm:$0xff] }
  0x70   : > { %v847_v41 = vsel %vm844_vm2, %v2862_v9, %v576_v33  ;;  %v524_v9 = vrot.slane %v408_v42, 1  ;;  %v3136_v42 = vld [vmem:[%s2845_s25 + $0xd8] sm:$0xff] }
  0x72   : > { %v525_v55 = vsel %vm490_vm0, %v522_v35, %v524_v9  ;;  %v536_v9 = vrot.slane %v3136_v42, 1 }
  0x74   : > { %633 = vrot.lane.b32.xlu1 %v570_v28, %s2786_s26  ;;  %593 = vrot.lane.b32.xlu0 %v520_v29, %s2786_s26  ;;  %v532_v28 = vrot.slane %v3118_v14, 1  ;;  %v708_v29 = vrot.slane %v3115_v13, 2 }
  0x75   : > { %770 = vrot.lane.b32.xlu2 %v697_v37, %s2787_s27 }
  0x77   : > { %v753_v44 = vpop.permute.xlu2 %752 }
  0x78   : > { %v3089_v46 = vsel %vm877_vm3, %v847_v41, %v753_v44  ;;  %v414_v41 = vld [vmem:[%s2845_s25 + $0xd0] sm:$0x3] }
  0x79   : > { %2648 = vmatmul.msk.f32.vlgmr.msra.gmra.mxu1 %vm917_vm4, %v3089_v46  ;;  %v711_v45 = vrot.slane %v414_v41, 2  ;;  %v534_v1 = vrot.slane %v414_v41, 1 }
  0x7b   : > { %v712_v62 = vsel %vm667_vm1, %v709_v32, %v711_v45  ;;  %v535_v5 = vsel %vm490_vm0, %v532_v28, %v534_v1 }
  0x7c   : > { %595 = vrot.lane.b32.xlu1 %v523_v39, %s2786_s26  ;;  %810 = vrot.lane.b32.xlu0 %v747_v40, %s2787_s27  ;;  %v533_v39 = vsel %vm490_vm0, %v531_v25, %v532_v28  ;;  %v710_v40 = vsel %vm667_vm1, %v708_v29, %v709_v32 }
  0x7d   : > { %772 = vrot.lane.b32.xlu2 %v700_v54, %s2787_s27 }
  0x7f   : > { %v757_v63 = vpop.permute.xlu2 %756 }
  0x84   : > { %597 = vrot.lane.b32.xlu0 %v525_v55, %s2786_s26  ;;  %774 = vrot.lane.b32.xlu1 %v702_v56, %s2787_s27 }
  0x85   : > { %599 = vrot.lane.b32.xlu2 %v528_v10, %s2786_s26  ;;  %v1205_v10 = vrot.slane %v3165_v3, 2 }
  0x86   : > { %v574_v6 = vpop.permute.xlu1 %573  ;;  %v572_v7 = vpop.permute.xlu0 %571 }
  0x87   : > { %v755_v24 = vpop.permute.xlu2 %754  ;;  %v845_v33 = vsel %vm844_vm2, %v2852_v2, %v572_v7  ;;  %v846_v44 = vsel %vm844_vm2, %v2848_v0, %v574_v6  ;;  %v714_v7 = vrot.slane %v3139_v43, 2 }
  0x8c   : > { %776 = vrot.lane.b32.xlu0 %v705_v11, %s2787_s27  ;;  %601 = vrot.lane.b32.xlu1 %v530_v12, %s2786_s26  ;;  %v1206_v11 = vrot.slane %v3168_v4, 2 }
  0x8d   : > { %778 = vrot.lane.b32.xlu2 %v707_v36, %s2787_s27  ;;  %v417_v36 = vld [vmem:[%s2845_s25 + $0xe8] sm:$0x3] }
  0x8e   : > { %v751_v34 = vpop.permute.xlu1 %750  ;;  %v749_v35 = vpop.permute.xlu0 %748 }
  0x8f   : > { %v878_v37 = vsel %vm877_vm3, %v845_v33, %v749_v35  ;;  %v759_v2 = vpop.permute.xlu2 %758  ;;  %v879_v61 = vsel %vm877_vm3, %v846_v44, %v751_v34  ;;  %v1207_v33 = vsel %vm667_vm1, %v1205_v10, %v1206_v11  ;;  %v1195_v34 = vrot.slane %v3168_v4, 1  ;;  %v438_v35 = vld [vmem:[%s3154_s7 + $0x10] sm:$0x3]  ;;  %v3243_v10 = vld [vmem:[%s2845_s25 + $0x108] sm:$0xff] }
  0x90   : > { %2613 = vmatmul.msk.f32.vlgmr.msra.gmra.mxu0 %vm917_vm4, %v878_v37  ;;  %v716_v37 = vrot.slane %v417_v36, 2  ;;  %v1208_v1 = vrot.slane %v438_v35, 2 }
  0x92   : > { %v717_v45 = vsel %vm667_vm1, %v714_v7, %v716_v37 }
  0x94   : > { %603 = vrot.lane.b32.xlu0 %v533_v39, %s2786_s26  ;;  %780 = vrot.lane.b32.xlu1 %v710_v40, %s2787_s27 }
  0x95   : > { %605 = vrot.lane.b32.xlu2 %v535_v5, %s2786_s26 }
  0x96   : > { %v620_v54 = vpop.permute.xlu1 %619  ;;  %v580_v55 = vpop.permute.xlu0 %579 }
  0x97   : > { %v849_v56 = vsel %vm844_vm2, %v2881_v20, %v580_v55  ;;  %v538_v20 = vsel %vm490_vm0, %v536_v9, %v537_v47  ;;  %v869_v6 = vsel %vm844_vm2, %v2874_v18, %v620_v54  ;;  %v3179_v12 = vpop.permute.xlu2 %623  ;;  %v3216_v9 = vld [vmem:[%s2845_s25 + $0xf0] sm:$0xff]  ;;  %v3219_v54 = vld [vmem:[%s2845_s25 + $0xf8] sm:$0xff] }
  0x98   : > { %2614 = vmatmul.msk.f32.gmra.mxu0 %vm917_vm4, %v879_v61  ;;  %v3158_v0 = vsel %vm877_vm3, %v849_v56, %v757_v63  ;;  %v713_v63 = vrot.slane %v3136_v42, 2  ;;  %v542_v56 = vrot.slane %v3219_v54, 1  ;;  %v718_v61 = vrot.slane %v3216_v9, 2 }
  0x99   : > { %2683 = vmatmul.msk.f32.vlgmr.msra.gmra.mxu2 %vm917_vm4, %v3158_v0 }
  0x9a   : > { %v715_v32 = vsel %vm667_vm1, %v713_v63, %v714_v7  ;;  %v420_v7 = vld [vmem:[%s2845_s25 + $0x100] sm:$0x3] }
  0x9c   : > { %782 = vrot.lane.b32.xlu0 %v712_v62, %s2787_s27  ;;  %607 = vrot.lane.b32.xlu1 %v538_v20, %s2786_s26  ;;  %v719_v62 = vrot.slane %v3219_v54, 2 }
  0x9e   : > { %v578_v15 = vpop.permute.xlu1 %577  ;;  %v797_v18 = vpop.permute.xlu0 %796 }
  0x9f   : > { %v848_v25 = vsel %vm844_vm2, %v2859_v8, %v578_v15  ;;  %v3185_v28 = vsel %vm877_vm3, %v869_v6, %v797_v18  ;;  %v1194_v8 = vrot.slane %v3165_v3, 1  ;;  %v586_v41 = vpop.permute.xlu2 %585  ;;  %v720_v6 = vsel %vm667_vm1, %v718_v61, %v719_v62  ;;  %v3246_v15 = vld [vmem:[%s2845_s25 + $0x110] sm:$0xff] }
  0xa0   : > { %2615 = vmatmul.msk.f32.gmra.mxu0 %vm917_vm4, %v3089_v46  ;;  %2637 = vmatmul.msk.f32.vlgmr.msra.gmra.mxu3 %vm917_vm4, %v3185_v28  ;;  %v881_v29 = vsel %vm877_vm3, %v848_v25, %v755_v24  ;;  %v1197_v24 = vrot.slane %v438_v35, 1  ;;  %v1209_v18 = vsel %vm667_vm1, %v1206_v11, %v1208_v1  ;;  %v871_v25 = vsel %vm844_vm2, %v2931_v57, %v3179_v12 }
  0xa1   : > { %2649 = vmatmul.msk.f32.gmra.mxu1 %vm917_vm4, %v881_v29  ;;  %2728 = vmatpush.msra.mxu3 %v3049_v26  ;;  %v1196_v46 = vsel %vm490_vm0, %v1194_v8, %v1195_v34  ;;  %v544_v35 = vrot.slane %v420_v7, 1  ;;  %v852_v37 = vsel %vm844_vm2, %v2921_v49, %v586_v41 }
  0xa2   : > { %1199 = vrot.lane.b32.xlu2 %v1196_v46, %s2786_s26  ;;  %v1198_v44 = vsel %vm490_vm0, %v1195_v34, %v1197_v24 }
  0xa3   : > { %2729 = vmatpush.msra.mxu3 %v3054_v27  ;;  %v545_v24 = vsel %vm490_vm0, %v542_v56, %v544_v35 }
  0xa4   : > { %784 = vrot.lane.b32.xlu0 %v715_v32, %s2787_s27  ;;  %1210 = vrot.lane.b32.xlu1 %v1207_v33, %s2787_s27  ;;  %v546_v32 = vrot.slane %v3243_v10, 1  ;;  %v547_v33 = vrot.slane %v3246_v15, 1 }
  0xa5   : > { %2730 = vmatpush.msra.mxu3 %v3075_v38  ;;  %v539_v38 = vrot.slane %v417_v36, 1  ;;  %v423_v36 = vld [vmem:[%s2845_s25 + $0x118] sm:$0x3]  ;;  %s2720_s25 = sadd.s32 408, %s2839_s22 }
  0xa6   : > { %v622_v39 = vpop.permute.xlu1 %621  ;;  %v582_v26 = vpop.permute.xlu0 %581  ;;  %v548_v12 = vsel %vm490_vm0, %v546_v32, %v547_v33  ;;  %s375_s10 = scalar_lea.vmem %s3843_s2, %s2720_s25 }
  0xa7   : > { %v850_v40 = vsel %vm844_vm2, %v2884_v21, %v582_v26  ;;  %v540_v21 = vsel %vm490_vm0, %v537_v47, %v539_v38  ;;  %v870_v55 = vsel %vm844_vm2, %v2878_v19, %v622_v39  ;;  %v803_v63 = vpop.permute.xlu2 %802  ;;  %v549_v39 = vrot.slane %v423_v36, 1 }
  0xa8   : > { %2616 = vmatmul.msk.f32.gmra.mxu0 %vm917_vm4, %v881_v29  ;;  %v883_v27 = vsel %vm877_vm3, %v850_v40, %v759_v2  ;;  %v541_v2 = vrot.slane %v3216_v9, 1  ;;  %v721_v29 = vrot.slane %v420_v7, 2  ;;  %v724_v26 = vrot.slane %v3246_v15, 2  ;;  %v3316_v7 = vld [vmem:[%s375_s10 + $0x8] sm:$0xff] }
  0xa9   : > { %2650 = vmatmul.msk.f32.gmra.mxu1 %vm917_vm4, %v3158_v0  ;;  %2684 = vmatmul.msk.f32.gmra.mxu2 %vm917_vm4, %v883_v27  ;;  %v726_v40 = vrot.slane %v423_v36, 2  ;;  %v550_v41 = vsel %vm490_vm0, %v547_v33, %v549_v39 }
  0xaa   : > { %609 = vrot.lane.b32.xlu2 %v540_v21, %s2786_s26  ;;  %v543_v5 = vsel %vm490_vm0, %v541_v2, %v542_v56  ;;  %v722_v57 = vsel %vm667_vm1, %v719_v62, %v721_v29 }
  0xab   : > { %v727_v21 = vsel %vm667_vm1, %v724_v26, %v726_v40 }
  0xac   : > { %1201 = vrot.lane.b32.xlu0 %v1198_v44, %s2786_s26  ;;  %786 = vrot.lane.b32.xlu1 %v717_v45, %s2787_s27 }
  0xae   : > { %v584_v47 = vpop.permute.xlu1 %583  ;;  %v799_v20 = vpop.permute.xlu0 %798 }
  0xaf   : > { %v3232_v19 = vsel %vm877_vm3, %v870_v55, %v799_v20  ;;  %v765_v46 = vpop.permute.xlu2 %764 }
  0xb0   : > { %2617 = vmatmul.msk.f32.gmra.mxu0 %vm917_vm4, %v3158_v0  ;;  %2638 = vmatmul.msk.f32.gmra.mxu3 %vm917_vm4, %v3232_v19  ;;  %v851_v0 = vsel %vm844_vm2, %v2918_v48, %v584_v47 }
  0xb1   : > { %2651 = vmatmul.msk.f32.gmra.mxu1 %vm917_vm4, %v883_v27 }
  0xb2   : > { %1212 = vrot.lane.b32.xlu2 %v1209_v18, %s2787_s27  ;;  %v1454_v18 = vrot.slane %v3316_v7, 2 }
  0xb4   : > { %611 = vrot.lane.b32.xlu0 %v543_v5, %s2786_s26  ;;  %788 = vrot.lane.b32.xlu1 %v720_v6, %s2787_s27 }
  0xb6   : > { %v801_v11 = vpop.permute.xlu1 %800  ;;  %v761_v34 = vpop.permute.xlu0 %760 }
  0xb7   : > { %v884_v48 = vsel %vm877_vm3, %v851_v0, %v761_v34  ;;  %v3261_v8 = vsel %vm877_vm3, %v871_v25, %v801_v11  ;;  %v630_v2 = vpop.permute.xlu2 %629 }
  0xb8   : > { %2618 = vmatmul.msk.f32.gmra.mxu0 %vm917_vm4, %v883_v27  ;;  %2685 = vmatmul.msk.f32.gmra.mxu2 %vm917_vm4, %v884_v48  ;;  %v874_v25 = vsel %vm844_vm2, %v2961_v17, %v630_v2 }
  0xb9   : > { %2639 = vmatmul.msk.f32.gmra.mxu3 %vm917_vm4, %v3261_v8  ;;  %2652 = vmatmul.msk.f32.gmra.mxu1 %vm917_vm4, %v884_v48 }
  0xba   : > { %613 = vrot.lane.b32.xlu2 %v545_v24, %s2786_s26 }
  0xbc   : > { %790 = vrot.lane.b32.xlu0 %v722_v57, %s2787_s27  ;;  %615 = vrot.lane.b32.xlu1 %v548_v12, %s2786_s26 }
  0xbe   : > { %v763_v27 = vpop.permute.xlu1 %762  ;;  %v626_v44 = vpop.permute.xlu0 %625 }
  0xbf   : > { %v872_v45 = vsel %vm844_vm2, %v2935_v58, %v626_v44  ;;  %v885_v38 = vsel %vm877_vm3, %v852_v37, %v763_v27  ;;  %v723_v58 = vrot.slane %v3243_v10, 2  ;;  %v592_v6 = vpop.permute.xlu2 %591 }
  0xc0   : > { %2619 = vmatmul.msk.f32.gmra.mxu0 %vm917_vm4, %v884_v48  ;;  %2686 = vmatmul.msk.f32.gmra.mxu2 %vm917_vm4, %v885_v38  ;;  %v3284_v49 = vsel %vm877_vm3, %v872_v45, %v803_v63  ;;  %v3314_v63 = vld [vmem:[%s375_s10] sm:$0xff]  ;;  %v441_v48 = vld [vmem:[%s375_s10 + $0x10] sm:$0x3]  ;;  %v855_v35 = vsel %vm844_vm2, %v2997_v50, %v592_v6 }
  0xc1   : > { %2640 = vmatmul.msk.f32.gmra.mxu3 %vm917_vm4, %v3284_v49  ;;  %2653 = vmatmul.msk.f32.gmra.mxu1 %vm917_vm4, %v885_v38  ;;  %v725_v55 = vsel %vm667_vm1, %v723_v58, %v724_v26  ;;  %v1445_v57 = vrot.slane %v441_v48, 1  ;;  %v1442_v44 = vrot.slane %v3314_v63, 1 }
  0xc2   : > { %792 = vrot.lane.b32.xlu2 %v725_v55, %s2787_s27 }
  0xc4   : > { %617 = vrot.lane.b32.xlu0 %v550_v41, %s2786_s26  ;;  %794 = vrot.lane.b32.xlu1 %v727_v21, %s2787_s27 }
  0xc6   : > { %v628_v56 = vpop.permute.xlu1 %627  ;;  %v588_v61 = vpop.permute.xlu0 %587 }
  0xc7   : > { %v853_v62 = vsel %vm844_vm2, %v2964_v22, %v588_v61  ;;  %v873_v20 = vsel %vm844_vm2, %v2957_v16, %v628_v56  ;;  %v1453_v16 = vrot.slane %v3314_v63, 2  ;;  %v809_v17 = vpop.permute.xlu2 %808 }
  0xc8   : > { %2620 = vmatmul.msk.f32.gmra.mxu0 %vm917_vm4, %v885_v38  ;;  %v886_v47 = vsel %vm877_vm3, %v853_v62, %v765_v46 }
  0xc9   : > { %2654 = vmatmul.msk.f32.gmra.mxu1 %vm917_vm4, %v886_v47  ;;  %2687 = vmatmul.msk.f32.gmra.mxu2 %vm917_vm4, %v886_v47  ;;  %v1455_v29 = vsel %vm667_vm1, %v1453_v16, %v1454_v18 }
  0xcc   : > { %1458 = vrot.lane.b32.xlu0 %v1455_v29, %s2787_s27 }
  0xce   : > { %v590_v1 = vpop.permute.xlu1 %589  ;;  %v805_v5 = vpop.permute.xlu0 %804 }
  0xcf   : > { %v3309_v22 = vsel %vm877_vm3, %v873_v20, %v805_v5  ;;  %v854_v0 = vsel %vm844_vm2, %v2967_v23, %v590_v1  ;;  %v1443_v23 = vrot.slane %v3316_v7, 1  ;;  %v771_v50 = vpop.permute.xlu2 %770 }
  0xd0   : > { %2621 = vmatmul.msk.f32.gmra.mxu0 %vm917_vm4, %v886_v47  ;;  %2641 = vmatmul.msk.f32.gmra.mxu3 %vm917_vm4, %v3309_v22 }
  0xd1   : > { %v1446_v12 = vsel %vm490_vm0, %v1443_v23, %v1445_v57  ;;  %v1444_v45 = vsel %vm490_vm0, %v1442_v44, %v1443_v23 }
  0xd2   : > { %1449 = vrot.lane.b32.xlu1 %v1446_v12, %s2786_s26  ;;  %1447 = vrot.lane.b32.xlu2 %v1444_v45, %s2786_s26 }
  0xd6   : > { %v807_v32 = vpop.permute.xlu1 %806  ;;  %v767_v33 = vpop.permute.xlu0 %766 }
  0xd7   : > { %v887_v11 = vsel %vm877_vm3, %v854_v0, %v767_v33  ;;  %v3328_v34 = vsel %vm877_vm3, %v874_v25, %v807_v32  ;;  %v773_v41 = vpop.permute.xlu2 %772  ;;  %v3402_v32 = vld [vmem:[%s3845_s4] ss:$0 sm:$0xff] }
  0xd8   : > { %2622 = vmatmul.msk.f32.gmra.mxu0 %vm917_vm4, %v887_v11  ;;  %2655 = vmatmul.msk.f32.gmra.mxu1 %vm917_vm4, %v887_v11 }
  0xd9   : > { %2688 = vmatmul.msk.f32.gmra.mxu2 %vm917_vm4, %v887_v11  ;;  %2642 = vmatmul.msk.f32.gmra.mxu3 %vm917_vm4, %v3328_v34 }
  0xde   : > { %v769_v36 = vpop.permute.xlu1 %768  ;;  %v632_v46 = vpop.permute.xlu0 %631 }
  0xdf   : > { %v875_v24 = vsel %vm844_vm2, %v3004_v52, %v632_v46  ;;  %v888_v37 = vsel %vm877_vm3, %v855_v35, %v769_v36  ;;  %v600_v61 = vpop.permute.xlu2 %599 }
  0xe0   : > { %2656 = vmatmul.msk.f32.gmra.mxu1 %vm917_vm4, %v888_v37  ;;  %2623 = vmatmul.msk.f32.gmra.mxu0 %vm917_vm4, %v888_v37  ;;  %v3346_v39 = vsel %vm877_vm3, %v875_v24, %v809_v17  ;;  %v859_v1 = vsel %vm844_vm2, %v3097_v59, %v600_v61 }
  0xe1   : > { %2689 = vmatmul.msk.f32.gmra.mxu2 %vm917_vm4, %v888_v37  ;;  %2643 = vmatmul.msk.f32.gmra.mxu3 %vm917_vm4, %v3346_v39 }
  0xe6   : > { %v634_v26 = vpop.permute.xlu1 %633  ;;  %v594_v40 = vpop.permute.xlu0 %593 }
  0xe7   : > { %v856_v52 = vsel %vm844_vm2, %v3001_v51, %v594_v40  ;;  %v876_v38 = vsel %vm844_vm2, %v3007_v53, %v634_v26  ;;  %v1456_v53 = vrot.slane %v441_v48, 2 }
  0xe8   : > { %v889_v27 = vsel %vm877_vm3, %v856_v52, %v771_v50 }
  0xe9   : > { %2624 = vmatmul.msk.f32.gmra.mxu0 %vm917_vm4, %v889_v27  ;;  %2657 = vmatmul.msk.f32.gmra.mxu1 %vm917_vm4, %v889_v27  ;;  %v1457_v56 = vsel %vm667_vm1, %v1454_v18, %v1456_v53 }
  0xea   : > { %2690 = vmatmul.msk.f32.gmra.mxu2 %vm917_vm4, %v889_v27  ;;  %1460 = vrot.lane.b32.xlu2 %v1457_v56, %s2787_s27  ;;  %s2721_s27 = sshll.u32 %s3852_s18, 6 }
  0xeb   : > { %s3565_s12 = scalar_lea.vmem %s3846_s5, %s2721_s27 }
  0xee   : > { %v596_v21 = vpop.permute.xlu1 %595  ;;  %v811_v51 = vpop.permute.xlu0 %810 }
  0xef   : > { %v857_v58 = vsel %vm844_vm2, %v3061_v30, %v596_v21  ;;  %v3365_v55 = vsel %vm877_vm3, %v876_v38, %v811_v51 }
  0xf0   : > { %2644 = vmatmul.msk.f32.gmra.mxu3 %vm917_vm4, %v3365_v55  ;;  %v890_v2 = vsel %vm877_vm3, %v857_v58, %v773_v41 }
  0xf1   : > { %2625 = vmatmul.msk.f32.gmra.mxu0 %vm917_vm4, %v890_v2  ;;  %2658 = vmatmul.msk.f32.gmra.mxu1 %vm917_vm4, %v890_v2 }
  0xf2   : > { %2691 = vmatmul.msk.f32.gmra.mxu2 %vm917_vm4, %v890_v2 }
  0xf6   : > { %v598_v30 = vpop.permute.xlu0 %597  ;;  %v775_v62 = vpop.permute.xlu1 %774 }
  0xf7   : > { %v858_v47 = vsel %vm844_vm2, %v3064_v31, %v598_v30  ;;  %v779_v31 = vpop.permute.xlu2 %778  ;;  %v1247_v35 = vpop.f32.mrf.mxu1 }
  0xf8   : > { %2672 = vmatmul.msk.f32.vlgmr.msrb.gmra.mxu3 %vm917_vm4, %v3261_v8  ;;  %v891_v20 = vsel %vm877_vm3, %v858_v47, %v775_v62 }
  0xf9   : > { %2626 = vmatmul.msk.f32.gmra.mxu0 %vm917_vm4, %v891_v20  ;;  %2659 = vmatmul.msk.f32.gmra.mxu1 %vm917_vm4, %v891_v20 }
  0xfa   : > { %2692 = vmatmul.msk.f32.gmra.mxu2 %vm917_vm4, %v891_v20 }
  0xfe   : > { %v777_v5 = vpop.permute.xlu0 %776  ;;  %v602_v6 = vpop.permute.xlu1 %601 }
  0xff   : > { %v892_v16 = vsel %vm877_vm3, %v859_v1, %v777_v5  ;;  %v860_v18 = vsel %vm844_vm2, %v3101_v60, %v602_v6  ;;  %v606_v29 = vpop.permute.xlu2 %605 }
 0x100   : > { %2673 = vmatmul.msk.f32.gmra.mxu3 %vm917_vm4, %v3284_v49  ;;  %v893_v0 = vsel %vm877_vm3, %v860_v18, %v779_v31 }
 0x101   : > { %2627 = vmatmul.msk.f32.gmra.mxu0 %vm917_vm4, %v892_v16  ;;  %2660 = vmatmul.msk.f32.gmra.mxu1 %vm917_vm4, %v892_v16 }
 0x102   : > { %2693 = vmatmul.msk.f32.gmra.mxu2 %vm917_vm4, %v892_v16 }
 0x106   : > { %v604_v59 = vpop.permute.xlu0 %603  ;;  %v781_v25 = vpop.permute.xlu1 %780 }
 0x107   : > { %v861_v60 = vsel %vm844_vm2, %v3115_v13, %v604_v59  ;;  %v1200_v57 = vpop.permute.xlu2 %1199  ;;  %v862_v13 = vsel %vm844_vm2, %v3118_v14, %v606_v29 }
 0x108   : > { %2674 = vmatmul.msk.f32.gmra.mxu3 %vm917_vm4, %v3309_v22  ;;  %v894_v48 = vsel %vm877_vm3, %v861_v60, %v781_v25  ;;  %v1216_v61 = vsel %vm844_vm2, %v3165_v3, %v1200_v57 }
 0x109   : > { %2628 = vmatmul.msk.f32.gmra.mxu0 %vm917_vm4, %v893_v0  ;;  %2661 = vmatmul.msk.f32.gmra.mxu1 %vm917_vm4, %v893_v0 }
 0x10a   : > { %2694 = vmatmul.msk.f32.gmra.mxu2 %vm917_vm4, %v893_v0 }
 0x10d   : > { %v1031_v33 = vpop.f32.mrf.mxu0 }
 0x10e   : > { %v1032_v11 = vadd.f32 %v3402_v32, %v1031_v33  ;;  %v783_v17 = vpop.permute.xlu0 %782  ;;  %v608_v23 = vpop.permute.xlu1 %607 }
 0x10f   : > { %v895_v46 = vsel %vm877_vm3, %v862_v13, %v783_v17  ;;  %v863_v14 = vsel %vm844_vm2, %v3136_v42, %v608_v23  ;;  %v610_v40 = vpop.permute.xlu2 %609 }
 0x110   : > { %1127 = vst.msk [vmem:[#allocation2] sm:$0xff] %vm844_vm2, %v1032_v11  ;;  %2675 = vmatmul.msk.f32.gmra.mxu3 %vm917_vm4, %v3328_v34  ;;  %v864_v56 = vsel %vm844_vm2, %v3139_v43, %v610_v40 }
 0x111   : > { %2629 = vmatmul.msk.f32.gmra.mxu0 %vm917_vm4, %v894_v48  ;;  %2662 = vmatmul.msk.f32.gmra.mxu1 %vm917_vm4, %v894_v48 }
 0x112   : > { %2695 = vmatmul.msk.f32.gmra.mxu2 %vm917_vm4, %v894_v48 }
 0x115   : > { %v1034_v12 = vpop.f32.mrf.mxu0 }
 0x116   : > { %v1035_v36 = vadd.f32 %v3402_v32, %v1034_v12  ;;  %v785_v24 = vpop.permute.xlu0 %784  ;;  %v1211_v50 = vpop.permute.xlu1 %1210 }
 0x117   : > { %v1159_v37 = vld [vmem:[#allocation2] sm:$0xff]  ;;  %v896_v45 = vsel %vm877_vm3, %v863_v14, %v785_v24  ;;  %v1213_v5 = vpop.permute.xlu2 %1212  ;;  %v3446_v16 = vsel %vm877_vm3, %v1216_v61, %v1211_v50 }
 0x118   : > { %v1343_v26 = vadd.f32 %v1247_v35, %v1159_v37  ;;  %1128 = vst.msk [vmem:[#allocation2 + $0x8] sm:$0xff] %vm844_vm2, %v1035_v36  ;;  %2676 = vmatmul.msk.f32.gmra.mxu3 %vm917_vm4, %v3346_v39 }
 0x119   : > { %2630 = vmatmul.msk.f32.gmra.mxu0 %vm917_vm4, %v895_v46  ;;  %2663 = vmatmul.msk.f32.gmra.mxu1 %vm917_vm4, %v895_v46 }
 0x11a   : > { %1375 = vst.msk [vmem:[#allocation2] sm:$0xff] %vm844_vm2, %v1343_v26  ;;  %2696 = vmatmul.msk.f32.gmra.mxu2 %vm917_vm4, %v895_v46 }
 0x11c   : > { %v1495_v58 = vpop.f32.mrf.mxu2 }
 0x11d   : > { %v1037_v52 = vpop.f32.mrf.mxu0 }
 0x11e   : > { %v1038_v27 = vadd.f32 %v3402_v32, %v1037_v52  ;;  %v1250_v44 = vpop.f32.mrf.mxu1  ;;  %v1202_v38 = vpop.permute.xlu0 %1201 }
 0x11f   : > { %v1160_v41 = vld [vmem:[#allocation2 + $0x8] sm:$0xff]  ;;  %v787_v42 = vpop.permute.xlu1 %786  ;;  %v1217_v31 = vsel %vm844_vm2, %v3168_v4, %v1202_v38 }
 0x120   : > { %1129 = vst.msk [vmem:[#allocation2 + $0x10] sm:$0xff] %vm844_vm2, %v1038_v27  ;;  %v1344_v21 = vadd.f32 %v1250_v44, %v1160_v41  ;;  %2677 = vmatmul.msk.f32.gmra.mxu3 %vm917_vm4, %v3365_v55  ;;  %v897_v1 = vsel %vm877_vm3, %v864_v56, %v787_v42  ;;  %v3460_v33 = vsel %vm877_vm3, %v1217_v31, %v1213_v5 }
 0x121   : > { %v1407_v51 = vld [vmem:[#allocation2] sm:$0xff]  ;;  %2631 = vmatmul.msk.f32.gmra.mxu0 %vm917_vm4, %v896_v45  ;;  %2664 = vmatmul.msk.f32.gmra.mxu1 %vm917_vm4, %v896_v45 }
 0x122   : > { %v1591_v2 = vadd.f32 %v1495_v58, %v1407_v51  ;;  %1376 = vst.msk [vmem:[#allocation2 + $0x8] sm:$0xff] %vm844_vm2, %v1344_v21  ;;  %2697 = vmatmul.msk.f32.gmra.mxu2 %vm917_vm4, %v896_v45 }
 0x123   : > { %v1103_v53 = vpop.f32.mrf.mxu3 }
 0x124   : > { %1623 = vst.msk [vmem:[#allocation2] sm:$0xff] %vm844_vm2, %v1591_v2  ;;  %v1104_v30 = vadd.f32 %v3402_v32, %v1103_v53 }
 0x125   : > { %v1040_v62 = vpop.f32.mrf.mxu0 }
 0x126   : > { %1151 = vst.msk [vmem:[#allocation2 + $0xc0] sm:$0xff] %vm844_vm2, %v1104_v30  ;;  %v1041_v47 = vadd.f32 %v3402_v32, %v1040_v62  ;;  %v1253_v20 = vpop.f32.mrf.mxu1  ;;  %v612_v3 = vpop.permute.xlu0 %611 }
 0x127   : > { %v1161_v6 = vld [vmem:[#allocation2 + $0x10] sm:$0xff]  ;;  %v865_v18 = vsel %vm844_vm2, %v3216_v9, %v612_v3  ;;  %v789_v0 = vpop.permute.xlu1 %788  ;;  %v614_v9 = vpop.permute.xlu2 %613 }
 0x128   : > { %1130 = vst.msk [vmem:[#allocation2 + $0x18] sm:$0xff] %vm844_vm2, %v1041_v47  ;;  %v1345_v43 = vadd.f32 %v1253_v20, %v1161_v6  ;;  %2678 = vmatmul.msk.f32.gmra.mxu3 %vm917_vm4, %v3446_v16  ;;  %v898_v17 = vsel %vm877_vm3, %v865_v18, %v789_v0  ;;  %v866_v13 = vsel %vm844_vm2, %v3219_v54, %v614_v9 }
 0x129   : > { %2632 = vmatmul.msk.f32.gmra.mxu0 %vm917_vm4, %v897_v1  ;;  %2665 = vmatmul.msk.f32.gmra.mxu1 %vm917_vm4, %v897_v1  ;;  %v1408_v59 = vld [vmem:[#allocation2 + $0x8] sm:$0xff] }
 0x12a   : > { %1377 = vst.msk [vmem:[#allocation2 + $0x10] sm:$0xff] %vm844_vm2, %v1345_v43  ;;  %2698 = vmatmul.msk.f32.gmra.mxu2 %vm917_vm4, %v897_v1 }
 0x12b   : > { %v1655_v2 = vld [vmem:[#allocation2] sm:$0xff] }
 0x12c   : > { %v1498_v25 = vpop.f32.mrf.mxu2  ;;  %v1687_v62 = vmax.f32 %v1655_v2, 0.0 }
 0x12d   : > { %v1592_v29 = vadd.f32 %v1498_v25, %v1408_v59  ;;  %v1043_v60 = vpop.f32.mrf.mxu0 }
 0x12e   : > { %v1044_v11 = vadd.f32 %v3402_v32, %v1043_v60  ;;  %v1256_v48 = vpop.f32.mrf.mxu1  ;;  %v791_v12 = vpop.permute.xlu0 %790 }
 0x12f   : > { %1624 = vst.msk [vmem:[#allocation2 + $0x8] sm:$0xff] %vm844_vm2, %v1592_v29  ;;  %v1162_v4 = vld [vmem:[#allocation2 + $0x18] sm:$0xff]  ;;  %v899_v37 = vsel %vm877_vm3, %v866_v13, %v791_v12  ;;  %v616_v14 = vpop.permute.xlu1 %615  ;;  %v793_v27 = vpop.permute.xlu2 %792 }
 0x130   : > { %1131 = vst.msk [vmem:[#allocation2 + $0x20] sm:$0xff] %vm844_vm2, %v1044_v11  ;;  %v1346_v23 = vadd.f32 %v1256_v48, %v1162_v4  ;;  %2679 = vmatmul.msk.f32.gmra.mxu3 %vm917_vm4, %v3460_v33  ;;  %v867_v52 = vsel %vm844_vm2, %v3243_v10, %v616_v14 }
 0x131   : > { %2666 = vmatmul.msk.f32.gmra.mxu1 %vm917_vm4, %v898_v17  ;;  %2633 = vmatmul.msk.f32.gmra.mxu0 %vm917_vm4, %v898_v17  ;;  %v1409_v54 = vld [vmem:[#allocation2 + $0x10] sm:$0xff]  ;;  %v900_v51 = vsel %vm877_vm3, %v867_v52, %v793_v27 }
 0x132   : > { %1378 = vst.msk [vmem:[#allocation2 + $0x18] sm:$0xff] %vm844_vm2, %v1346_v23  ;;  %2699 = vmatmul.msk.f32.gmra.mxu2 %vm917_vm4, %v898_v17 }
 0x133   : > { %v1106_v57 = vpop.f32.mrf.mxu3 }
 0x134   : > { %v1107_v35 = vadd.f32 %v3402_v32, %v1106_v57 }
 0x135   : > { %v1046_v36 = vpop.f32.mrf.mxu0 }
 0x136   : > { %1152 = vst.msk [vmem:[#allocation2 + $0xc8] sm:$0xff] %vm844_vm2, %v1107_v35  ;;  %v1047_v46 = vadd.f32 %v3402_v32, %v1046_v36  ;;  %v1259_v24 = vpop.f32.mrf.mxu1  ;;  %v618_v10 = vpop.permute.xlu0 %617  ;;  %v1656_v25 = vld [vmem:[#allocation2 + $0x8] sm:$0xff] }
 0x137   : > { %v1163_v50 = vld [vmem:[#allocation2 + $0x20] sm:$0xff]  ;;  %v868_v61 = vsel %vm844_vm2, %v3246_v15, %v618_v10  ;;  %v795_v30 = vpop.permute.xlu1 %794  ;;  %v1719_v15 = vsel %vm844_vm2, %v1687_v62, -inf  ;;  %v1688_v4 = vmax.f32 %v1656_v25, 0.0 }
 0x138   : > { %1132 = vst.msk [vmem:[#allocation2 + $0x28] sm:$0xff] %vm844_vm2, %v1047_v46  ;;  %v1347_v26 = vadd.f32 %v1259_v24, %v1163_v50  ;;  %2707 = vmatmul.msk.f32.vlgmr.msra.gmra.mxu3 %vm917_vm4, %v3309_v22  ;;  %v901_v31 = vsel %vm877_vm3, %v868_v61, %v795_v30 }
 0x139   : > { %2667 = vmatmul.msk.f32.gmra.mxu1 %vm917_vm4, %v899_v37  ;;  %2634 = vmatmul.msk.f32.gmra.mxu0 %vm917_vm4, %v899_v37  ;;  %v1410_v53 = vld [vmem:[#allocation2 + $0x18] sm:$0xff] }
 0x13a   : > { %1379 = vst.msk [vmem:[#allocation2 + $0x20] sm:$0xff] %vm844_vm2, %v1347_v26  ;;  %2700 = vmatmul.msk.f32.gmra.mxu2 %vm917_vm4, %v899_v37 }
 0x13b   : > { %v1501_v40 = vpop.f32.mrf.mxu2 }
 0x13c   : > { %v1593_v44 = vadd.f32 %v1501_v40, %v1409_v54  ;;  %v1109_v45 = vpop.f32.mrf.mxu3 }
 0x13d   : > { %v1110_v38 = vadd.f32 %v3402_v32, %v1109_v45  ;;  %v1049_v22 = vpop.f32.mrf.mxu0 }
 0x13e   : > { %1625 = vst.msk [vmem:[#allocation2 + $0x10] sm:$0xff] %vm844_vm2, %v1593_v44  ;;  %v1050_v41 = vadd.f32 %v3402_v32, %v1049_v22  ;;  %v1262_v21 = vpop.f32.mrf.mxu1 }
 0x13f   : > { %1153 = vst.msk [vmem:[#allocation2 + $0xd0] sm:$0xff] %vm844_vm2, %v1110_v38  ;;  %v1164_v58 = vld [vmem:[#allocation2 + $0x28] sm:$0xff]  ;;  %v1722_v38 = vsel %vm844_vm2, %v1688_v4, -inf }
 0x140   : > { %1133 = vst.msk [vmem:[#allocation2 + $0x30] sm:$0xff] %vm844_vm2, %v1050_v41  ;;  %v1348_v42 = vadd.f32 %v1262_v21, %v1164_v58  ;;  %2708 = vmatmul.msk.f32.gmra.mxu3 %vm917_vm4, %v3328_v34 }
 0x141   : > { %2668 = vmatmul.msk.f32.gmra.mxu1 %vm917_vm4, %v900_v51  ;;  %2635 = vmatmul.msk.f32.gmra.mxu0 %vm917_vm4, %v900_v51  ;;  %v1411_v9 = vld [vmem:[#allocation2 + $0x20] sm:$0xff] }
 0x142   : > { %1380 = vst.msk [vmem:[#allocation2 + $0x28] sm:$0xff] %vm844_vm2, %v1348_v42  ;;  %2701 = vmatmul.msk.f32.gmra.mxu2 %vm917_vm4, %v900_v51 }
 0x143   : > { %v1504_v56 = vpop.f32.mrf.mxu2 }
 0x144   : > { %v1594_v47 = vadd.f32 %v1504_v56, %v1410_v53  ;;  %v1112_v20 = vpop.f32.mrf.mxu3 }
 0x145   : > { %v1657_v34 = vld [vmem:[#allocation2 + $0x10] sm:$0xff]  ;;  %v1113_v1 = vadd.f32 %v3402_v32, %v1112_v20  ;;  %v1052_v5 = vpop.f32.mrf.mxu0 }
 0x146   : > { %v1689_v6 = vmax.f32 %v1657_v34, 0.0  ;;  %1626 = vst.msk [vmem:[#allocation2 + $0x18] sm:$0xff] %vm844_vm2, %v1594_v47  ;;  %v1053_v43 = vadd.f32 %v3402_v32, %v1052_v5  ;;  %v1265_v3 = vpop.f32.mrf.mxu1 }
 0x147   : > { %1154 = vst.msk [vmem:[#allocation2 + $0xd8] sm:$0xff] %vm844_vm2, %v1113_v1  ;;  %v1165_v18 = vld [vmem:[#allocation2 + $0x30] sm:$0xff] }
 0x148   : > { %v1720_v0 = vsel %vm844_vm2, %v1689_v6, -inf  ;;  %1134 = vst.msk [vmem:[#allocation2 + $0x38] sm:$0xff] %vm844_vm2, %v1053_v43  ;;  %v1349_v59 = vadd.f32 %v1265_v3, %v1165_v18  ;;  %2709 = vmatmul.msk.f32.gmra.mxu3 %vm917_vm4, %v3346_v39 }
 0x149   : > { %v1721_v29 = vmax.f32 %v1719_v15, %v1720_v0  ;;  %2669 = vmatmul.msk.f32.gmra.mxu1 %vm917_vm4, %v901_v31  ;;  %2636 = vmatmul.msk.f32.gmra.mxu0 %vm917_vm4, %v901_v31 }
 0x14a   : > { %1381 = vst.msk [vmem:[#allocation2 + $0x30] sm:$0xff] %vm844_vm2, %v1349_v59  ;;  %2702 = vmatmul.msk.f32.gmra.mxu2 %vm917_vm4, %v901_v31 }
 0x14b   : > { %v1783_v60 = vrot.slane %v1721_v29, 2  ;;  %v1784_v11 = vrot.slane %v1721_v29, 4  ;;  %v1785_v48 = vrot.slane %v1721_v29, 6  ;;  %v1880_v17 = vsel %vm1879_vm5, %v1721_v29, -inf }
 0x14c   : > { %v1881_v23 = vrot.slane %v1880_v17, 4  ;;  %v1507_v57 = vpop.f32.mrf.mxu2 }
 0x14d   : > { %v1887_v39 = vsel %vm1879_vm5, %v1783_v60, -inf  ;;  %v1894_v13 = vsel %vm1879_vm5, %v1784_v11, -inf  ;;  %v1901_v12 = vsel %vm1879_vm5, %v1785_v48, -inf  ;;  %v1658_v35 = vld [vmem:[#allocation2 + $0x18] sm:$0xff]  ;;  %v1595_v36 = vadd.f32 %v1507_v57, %v1411_v9  ;;  %v1055_v46 = vpop.f32.mrf.mxu0 }
 0x14e   : > { %v1882_v24 = vmax.f32 %v1880_v17, %v1881_v23  ;;  %v1888_v37 = vrot.slane %v1887_v39, 4  ;;  %v1895_v50 = vrot.slane %v1894_v13, 4  ;;  %v1902_v26 = vrot.slane %v1901_v12, 4 }
 0x14f   : > { %v1690_v14 = vmax.f32 %v1658_v35, 0.0  ;;  %1627 = vst.msk [vmem:[#allocation2 + $0x20] sm:$0xff] %vm844_vm2, %v1595_v36  ;;  %v1056_v54 = vadd.f32 %v3402_v32, %v1055_v46  ;;  %v1166_v4 = vld [vmem:[#allocation2 + $0x38] sm:$0xff] }
 0x150   : > { %v1883_v40 = vrot.slane %v1882_v24, 2  ;;  %v1889_v52 = vmax.f32 %v1887_v39, %v1888_v37  ;;  %v1896_v27 = vmax.f32 %v1894_v13, %v1895_v50  ;;  %v1903_v44 = vmax.f32 %v1901_v12, %v1902_v26  ;;  %2710 = vmatmul.msk.f32.gmra.mxu3 %vm917_vm4, %v3365_v55  ;;  %v1412_v13 = vld [vmem:[#allocation2 + $0x28] sm:$0xff] }
 0x151   : > { %v1723_v45 = vsel %vm844_vm2, %v1690_v14, -inf  ;;  %1135 = vst.msk [vmem:[#allocation2 + $0x40] sm:$0xff] %vm844_vm2, %v1056_v54  ;;  %2670 = vmatmul.msk.f32.gmra.mxu1 %vm917_vm4, %v3185_v28 }
 0x152   : > { %v1884_v22 = vmax.f32 %v1882_v24, %v1883_v40  ;;  %v1890_v41 = vrot.slane %v1889_v52, 2  ;;  %v1897_v21 = vrot.slane %v1896_v27, 2  ;;  %2703 = vmatmul.msk.f32.gmra.mxu2 %vm917_vm4, %v3185_v28  ;;  %v1724_v51 = vmax.f32 %v1722_v38, %v1723_v45 }
 0x153   : > { %v1115_v58 = vpop.f32.mrf.mxu3  ;;  %v1904_v55 = vrot.slane %v1903_v44, 2 }
 0x154   : > { %v1891_v42 = vmax.f32 %v1889_v52, %v1890_v41  ;;  %v1898_v10 = vmax.f32 %v1896_v27, %v1897_v21  ;;  %v1786_v2 = vrot.slane %v1724_v51, 2  ;;  %v1787_v53 = vrot.slane %v1724_v51, 4 }
 0x155   : > { %v1788_v56 = vrot.slane %v1724_v51, 6  ;;  %v1908_v61 = vsel %vm1879_vm5, %v1724_v51, -inf  ;;  %v1058_v30 = vpop.f32.mrf.mxu0  ;;  %v1268_v62 = vpop.f32.mrf.mxu1  ;;  %v1885_v47 = vrot.slane %v1884_v22, 1  ;;  %v1905_v3 = vmax.f32 %v1903_v44, %v1904_v55 }
 0x156   : > { %v1892_v20 = vrot.slane %v1891_v42, 1  ;;  %v1899_v34 = vrot.slane %v1898_v10, 1  ;;  %v1909_v1 = vrot.slane %v1908_v61, 4  ;;  %v1915_v5 = vsel %vm1879_vm5, %v1786_v2, -inf }
 0x157   : > { %v1922_v28 = vsel %vm1879_vm5, %v1787_v53, -inf  ;;  %v1929_v6 = vsel %vm1879_vm5, %v1788_v56, -inf  ;;  %v1916_v31 = vrot.slane %v1915_v5, 4  ;;  %v1886_v59 = vmax.f32 %v1884_v22, %v1885_v47  ;;  %v1448_v22 = vpop.permute.xlu2 %1447 }
 0x158   : > { %v1893_v43 = vmax.f32 %v1891_v42, %v1892_v20  ;;  %2711 = vmatmul.msk.f32.gmra.mxu3 %vm917_vm4, %v3446_v16  ;;  %v1910_v18 = vmax.f32 %v1908_v61, %v1909_v1  ;;  %v1923_v15 = vrot.slane %v1922_v28, 4  ;;  %v1930_v0 = vrot.slane %v1929_v6, 4  ;;  %v1167_v37 = vld [vmem:[#allocation2 + $0x40] sm:$0xff] }
 0x159   : > { %2671 = vmatmul.msk.f32.gmra.mxu1 %vm917_vm4, %v3232_v19  ;;  %v1917_v25 = vmax.f32 %v1915_v5, %v1916_v31  ;;  %v1116_v29 = vadd.f32 %v3402_v32, %v1115_v58  ;;  %v1059_v60 = vadd.f32 %v3402_v32, %v1058_v30  ;;  %v1900_v11 = vmax.f32 %v1898_v10, %v1899_v34 }
 0x15a   : > { %2704 = vmatmul.msk.f32.gmra.mxu2 %vm917_vm4, %v3232_v19  ;;  %v1911_v48 = vrot.slane %v1910_v18, 2  ;;  %v1924_v17 = vmax.f32 %v1922_v28, %v1923_v15  ;;  %v1931_v16 = vmax.f32 %v1929_v6, %v1930_v0  ;;  %v1906_v23 = vrot.slane %v1905_v3, 1 }
 0x15b   : > { %v2393_v9 = vsel %vm2392_vm6, %v1893_v43, %v1886_v59  ;;  %v1918_v57 = vrot.slane %v1917_v25, 2  ;;  %1155 = vst.msk [vmem:[#allocation2 + $0xe0] sm:$0xff] %vm844_vm2, %v1116_v29  ;;  %v1350_v39 = vadd.f32 %v1268_v62, %v1166_v4  ;;  %v1464_v2 = vsel %vm844_vm2, %v3314_v63, %v1448_v22  ;;  %v1413_v62 = vld [vmem:[#allocation2 + $0x30] sm:$0xff]  ;;  %v1659_v59 = vld [vmem:[#allocation2 + $0x20] sm:$0xff] }
 0x15c   : > { %v1510_v12 = vpop.f32.mrf.mxu2  ;;  %v1118_v35 = vpop.f32.mrf.mxu3  ;;  %v1912_v36 = vmax.f32 %v1910_v18, %v1911_v48  ;;  %v1925_v46 = vrot.slane %v1924_v17, 2  ;;  %v1932_v24 = vrot.slane %v1931_v16, 2  ;;  %1136 = vst.msk [vmem:[#allocation2 + $0x48] sm:$0xff] %vm844_vm2, %v1059_v60  ;;  %v2395_v27 = vsel %vm2394_vm7, %v1900_v11, %v2393_v9 }
 0x15d   : > { %v1596_v19 = vadd.f32 %v1510_v12, %v1412_v13  ;;  %v1271_v50 = vpop.f32.mrf.mxu1  ;;  %v1061_v26 = vpop.f32.mrf.mxu0  ;;  %v1919_v14 = vmax.f32 %v1917_v25, %v1918_v57  ;;  %1382 = vst.msk [vmem:[#allocation2 + $0x38] sm:$0xff] %vm844_vm2, %v1350_v39  ;;  %v1119_v54 = vadd.f32 %v3402_v32, %v1118_v35  ;;  %v1907_v41 = vmax.f32 %v1905_v3, %v1906_v23 }
 0x15e   : > { %v1351_v40 = vadd.f32 %v1271_v50, %v1167_v37  ;;  %v1062_v52 = vadd.f32 %v3402_v32, %v1061_v26  ;;  %v1913_v44 = vrot.slane %v1912_v36, 1  ;;  %v1926_v45 = vmax.f32 %v1924_v17, %v1925_v46  ;;  %v1450_v18 = vpop.permute.xlu1 %1449 }
 0x15f   : > { %v1933_v38 = vmax.f32 %v1931_v16, %v1932_v24  ;;  %1628 = vst.msk [vmem:[#allocation2 + $0x28] sm:$0xff] %vm844_vm2, %v1596_v19  ;;  %v1920_v21 = vrot.slane %v1919_v14, 1  ;;  %v2397_v10 = vsel %vm2396_vm8, %v1907_v41, %v2395_v27  ;;  %v1465_v15 = vsel %vm844_vm2, %v3316_v7, %v1450_v18  ;;  %v1461_v0 = vpop.permute.xlu2 %1460 }
 0x160   : > { %1156 = vst.msk [vmem:[#allocation2 + $0xe8] sm:$0xff] %vm844_vm2, %v1119_v54  ;;  %2712 = vmatmul.msk.f32.gmra.mxu3 %vm917_vm4, %v3460_v33  ;;  %v1914_v51 = vmax.f32 %v1912_v36, %v1913_v44  ;;  %v1927_v58 = vrot.slane %v1926_v45, 1  ;;  %v1459_v33 = vpop.permute.xlu0 %1458  ;;  %v1467_v60 = vsel %vm877_vm3, %v1465_v15, %v1461_v0  ;;  %v1691_v11 = vmax.f32 %v1659_v59, 0.0 }
 0x161   : > { %v1934_v42 = vrot.slane %v1933_v38, 1  ;;  %1383 = vst.msk [vmem:[#allocation2 + $0x40] sm:$0xff] %vm844_vm2, %v1351_v40  ;;  %v1921_v55 = vmax.f32 %v1919_v14, %v1920_v21  ;;  %v1466_v1 = vsel %vm877_vm3, %v1464_v2, %v1459_v33 }
 0x162   : > { %1137 = vst.msk [vmem:[#allocation2 + $0x50] sm:$0xff] %vm844_vm2, %v1062_v52  ;;  %2705 = vmatmul.msk.f32.gmra.mxu2 %vm917_vm4, %v3261_v8  ;;  %v1928_v53 = vmax.f32 %v1926_v45, %v1927_v58  ;;  %v2399_v56 = vsel %vm2398_vm9, %v1914_v51, %v2397_v10  ;;  %v1725_v7 = vsel %vm844_vm2, %v1691_v11, -inf }
 0x163   : > { %v1935_v61 = vmax.f32 %v1933_v38, %v1934_v42  ;;  %v2401_v30 = vsel %vm2400_vm10, %v1921_v55, %v2399_v56  ;;  %v1168_v6 = vld [vmem:[#allocation2 + $0x48] sm:$0xff] }
 0x164   : > { %v1513_v47 = vpop.f32.mrf.mxu2  ;;  %v1121_v8 = vpop.f32.mrf.mxu3  ;;  %v2403_v20 = vsel %vm2402_vm11, %v1928_v53, %v2401_v30  ;;  %v1414_v25 = vld [vmem:[#allocation2 + $0x38] sm:$0xff] }
 0x165   : > { %v1597_v63 = vadd.f32 %v1513_v47, %v1413_v62  ;;  %v1122_v34 = vadd.f32 %v3402_v32, %v1121_v8  ;;  %v2405_v5 = vsel %vm2404_vm12, %v1935_v61, %v2403_v20 }
 0x166   : > { %v1064_v28 = vpop.f32.mrf.mxu0  ;;  %v1274_v43 = vpop.f32.mrf.mxu1  ;;  %2463 = vst.msk [vmem:[%s3565_s12] sm:$0xff] %vm844_vm2, %v2405_v5  ;;  %v1660_v13 = vld [vmem:[#allocation2 + $0x28] sm:$0xff] }
 0x167   : > { %v1065_v3 = vadd.f32 %v3402_v32, %v1064_v28  ;;  %v1352_v31 = vadd.f32 %v1274_v43, %v1168_v6  ;;  %1629 = vst.msk [vmem:[#allocation2 + $0x30] sm:$0xff] %vm844_vm2, %v1597_v63  ;;  %v1692_v14 = vmax.f32 %v1660_v13, 0.0 }
 0x168   : > { %2713 = vmatmul.msk.f32.gmra.mxu3 %vm917_vm4, %v1466_v1  ;;  %1157 = vst.msk [vmem:[#allocation2 + $0xf0] sm:$0xff] %vm844_vm2, %v1122_v34  ;;  %v1415_v50 = vld [vmem:[#allocation2 + $0x40] sm:$0xff] }
 0x169   : > { %1138 = vst.msk [vmem:[#allocation2 + $0x58] sm:$0xff] %vm844_vm2, %v1065_v3  ;;  %v1169_v16 = vld [vmem:[#allocation2 + $0x50] sm:$0xff]  ;;  %v1728_v47 = vsel %vm844_vm2, %v1692_v14, -inf  ;;  %v1183_v34 = vld [vmem:[#allocation2 + $0xc0] sm:$0xff] }
 0x16a   : > { %2706 = vmatmul.msk.f32.gmra.mxu2 %vm917_vm4, %v3284_v49  ;;  %1384 = vst.msk [vmem:[#allocation2 + $0x48] sm:$0xff] %vm844_vm2, %v1352_v31 }
 0x16d   : > { %v1516_v29 = vpop.f32.mrf.mxu2 }
 0x16e   : > { %v1598_v48 = vadd.f32 %v1516_v29, %v1414_v25  ;;  %v1067_v17 = vpop.f32.mrf.mxu0  ;;  %v1277_v4 = vpop.f32.mrf.mxu1  ;;  %v1661_v23 = vld [vmem:[#allocation2 + $0x30] sm:$0xff] }
 0x16f   : > { %v1068_v9 = vadd.f32 %v3402_v32, %v1067_v17  ;;  %v1353_v49 = vadd.f32 %v1277_v4, %v1169_v16  ;;  %v1693_v57 = vmax.f32 %v1661_v23, 0.0 }
 0x170   : > { %1630 = vst.msk [vmem:[#allocation2 + $0x38] sm:$0xff] %vm844_vm2, %v1598_v48  ;;  %2714 = vmatmul.msk.f32.gmra.mxu3 %vm917_vm4, %v1467_v60  ;;  %v1170_v10 = vld [vmem:[#allocation2 + $0x58] sm:$0xff] }
 0x171   : > { %1139 = vst.msk [vmem:[#allocation2 + $0x60] sm:$0xff] %vm844_vm2, %v1068_v9  ;;  %v1726_v39 = vsel %vm844_vm2, %v1693_v57, -inf  ;;  %v1416_v13 = vld [vmem:[#allocation2 + $0x48] sm:$0xff] }
 0x172   : > { %1385 = vst.msk [vmem:[#allocation2 + $0x50] sm:$0xff] %vm844_vm2, %v1353_v49  ;;  %v1727_v12 = vmax.f32 %v1725_v7, %v1726_v39 }
 0x173   : > { %v1124_v35 = vpop.f32.mrf.mxu3 }
 0x174   : > { %v1125_v36 = vadd.f32 %v3402_v32, %v1124_v35  ;;  %v1789_v46 = vrot.slane %v1727_v12, 2  ;;  %v1790_v24 = vrot.slane %v1727_v12, 4  ;;  %v1791_v19 = vrot.slane %v1727_v12, 6 }
 0x175   : > { %v1936_v37 = vsel %vm1879_vm5, %v1727_v12, -inf  ;;  %v1519_v26 = vpop.f32.mrf.mxu2 }
 0x176   : > { %v1937_v54 = vrot.slane %v1936_v37, 4  ;;  %1158 = vst.msk [vmem:[#allocation2 + $0xf8] sm:$0xff] %vm844_vm2, %v1125_v36  ;;  %v1599_v40 = vadd.f32 %v1519_v26, %v1415_v50  ;;  %v1070_v52 = vpop.f32.mrf.mxu0  ;;  %v1280_v27 = vpop.f32.mrf.mxu1  ;;  %v1943_v44 = vsel %vm1879_vm5, %v1789_v46, -inf  ;;  %v1950_v45 = vsel %vm1879_vm5, %v1790_v24, -inf }
 0x177   : > { %v1957_v38 = vsel %vm1879_vm5, %v1791_v19, -inf  ;;  %v1662_v22 = vld [vmem:[#allocation2 + $0x38] sm:$0xff]  ;;  %v1071_v41 = vadd.f32 %v3402_v32, %v1070_v52  ;;  %v1944_v51 = vrot.slane %v1943_v44, 4  ;;  %v1951_v58 = vrot.slane %v1950_v45, 4 }
 0x178   : > { %v1938_v21 = vmax.f32 %v1936_v37, %v1937_v54  ;;  %v1958_v42 = vrot.slane %v1957_v38, 4  ;;  %1631 = vst.msk [vmem:[#allocation2 + $0x40] sm:$0xff] %vm844_vm2, %v1599_v40  ;;  %v1694_v55 = vmax.f32 %v1662_v22, 0.0  ;;  %v1354_v2 = vadd.f32 %v1280_v27, %v1170_v10  ;;  %v1171_v12 = vld [vmem:[#allocation2 + $0x60] sm:$0xff] }
 0x179   : > { %1140 = vst.msk [vmem:[#allocation2 + $0x68] sm:$0xff] %vm844_vm2, %v1071_v41  ;;  %v1945_v53 = vmax.f32 %v1943_v44, %v1944_v51  ;;  %v1952_v56 = vmax.f32 %v1950_v45, %v1951_v58  ;;  %v1417_v10 = vld [vmem:[#allocation2 + $0x50] sm:$0xff] }
 0x17a   : > { %v1939_v33 = vrot.slane %v1938_v21, 2  ;;  %v1959_v61 = vmax.f32 %v1957_v38, %v1958_v42  ;;  %v1729_v30 = vsel %vm844_vm2, %v1694_v55, -inf  ;;  %1386 = vst.msk [vmem:[#allocation2 + $0x58] sm:$0xff] %vm844_vm2, %v1354_v2  ;;  %v1184_v38 = vld [vmem:[#allocation2 + $0xc8] sm:$0xff] }
 0x17b   : > { %v1319_v62 = vpop.f32.mrf.mxu3  ;;  %v1946_v20 = vrot.slane %v1945_v53, 2  ;;  %v1953_v63 = vrot.slane %v1952_v56, 2  ;;  %v1730_v1 = vmax.f32 %v1728_v47, %v1729_v30 }
 0x17c   : > { %v1940_v8 = vmax.f32 %v1938_v21, %v1939_v33  ;;  %v1367_v5 = vadd.f32 %v1319_v62, %v1183_v34  ;;  %v1960_v3 = vrot.slane %v1959_v61, 2 }
 0x17d   : > { %v1522_v28 = vpop.f32.mrf.mxu2  ;;  %v1947_v6 = vmax.f32 %v1945_v53, %v1946_v20  ;;  %v1954_v43 = vmax.f32 %v1952_v56, %v1953_v63  ;;  %v1792_v15 = vrot.slane %v1730_v1, 2  ;;  %v1793_v0 = vrot.slane %v1730_v1, 4 }
 0x17e   : > { %v1073_v31 = vpop.f32.mrf.mxu0  ;;  %v1283_v18 = vpop.f32.mrf.mxu1  ;;  %v1794_v59 = vrot.slane %v1730_v1, 6  ;;  %v1964_v25 = vsel %vm1879_vm5, %v1730_v1, -inf  ;;  %1399 = vst.msk [vmem:[#allocation2 + $0xc0] sm:$0xff] %vm844_vm2, %v1367_v5  ;;  %v1941_v29 = vrot.slane %v1940_v8, 1  ;;  %v1961_v9 = vmax.f32 %v1959_v61, %v1960_v3  ;;  %v1185_v1 = vld [vmem:[#allocation2 + $0xd0] sm:$0xff] }
 0x17f   : > { %v1948_v60 = vrot.slane %v1947_v6, 1  ;;  %v1955_v11 = vrot.slane %v1954_v43, 1  ;;  %v1965_v48 = vrot.slane %v1964_v25, 4  ;;  %v1971_v17 = vsel %vm1879_vm5, %v1792_v15, -inf }
 0x180   : > { %v1978_v16 = vsel %vm1879_vm5, %v1793_v0, -inf  ;;  %v1985_v4 = vsel %vm1879_vm5, %v1794_v59, -inf  ;;  %v1972_v49 = vrot.slane %v1971_v17, 4  ;;  %v1942_v36 = vmax.f32 %v1940_v8, %v1941_v29  ;;  %v1172_v40 = vld [vmem:[#allocation2 + $0x68] sm:$0xff] }
 0x181   : > { %v1949_v23 = vmax.f32 %v1947_v6, %v1948_v60  ;;  %v1966_v57 = vmax.f32 %v1964_v25, %v1965_v48  ;;  %v1979_v7 = vrot.slane %v1978_v16, 4  ;;  %v1986_v39 = vrot.slane %v1985_v4, 4  ;;  %v1418_v15 = vld [vmem:[#allocation2 + $0x58] sm:$0xff] }
 0x182   : > { %v1973_v46 = vmax.f32 %v1971_v17, %v1972_v49  ;;  %v1600_v24 = vadd.f32 %v1522_v28, %v1416_v13  ;;  %v1074_v19 = vadd.f32 %v3402_v32, %v1073_v31  ;;  %v1956_v37 = vmax.f32 %v1954_v43, %v1955_v11 }
 0x183   : > { %v1322_v35 = vpop.f32.mrf.mxu3  ;;  %v1967_v50 = vrot.slane %v1966_v57, 2  ;;  %v1980_v26 = vmax.f32 %v1978_v16, %v1979_v7  ;;  %v1987_v14 = vmax.f32 %v1985_v4, %v1986_v39  ;;  %v1962_v52 = vrot.slane %v1961_v9, 1  ;;  %v1186_v39 = vld [vmem:[#allocation2 + $0xd8] sm:$0xff] }
 0x184   : > { %v2406_v27 = vsel %vm2392_vm6, %v1949_v23, %v1942_v36  ;;  %v1974_v44 = vrot.slane %v1973_v46, 2  ;;  %1632 = vst.msk [vmem:[#allocation2 + $0x48] sm:$0xff] %vm844_vm2, %v1600_v24  ;;  %v1355_v45 = vadd.f32 %v1283_v18, %v1171_v12  ;;  %v1368_v42 = vadd.f32 %v1322_v35, %v1184_v38  ;;  %v1663_v18 = vld [vmem:[#allocation2 + $0x40] sm:$0xff] }
 0x185   : > { %v1525_v54 = vpop.f32.mrf.mxu2  ;;  %v1968_v21 = vmax.f32 %v1966_v57, %v1967_v50  ;;  %v1981_v51 = vrot.slane %v1980_v26, 2  ;;  %v1988_v58 = vrot.slane %v1987_v14, 2  ;;  %1141 = vst.msk [vmem:[#allocation2 + $0x70] sm:$0xff] %vm844_vm2, %v1074_v19  ;;  %v2407_v56 = vsel %vm2394_vm7, %v1956_v37, %v2406_v27 }
 0x186   : > { %v1076_v22 = vpop.f32.mrf.mxu0  ;;  %v1286_v41 = vpop.f32.mrf.mxu1  ;;  %v1975_v55 = vmax.f32 %v1973_v46, %v1974_v44  ;;  %1387 = vst.msk [vmem:[#allocation2 + $0x60] sm:$0xff] %vm844_vm2, %v1355_v45  ;;  %v1601_v2 = vadd.f32 %v1525_v54, %v1417_v10  ;;  %v1963_v47 = vmax.f32 %v1961_v9, %v1962_v52  ;;  %v1695_v9 = vmax.f32 %v1663_v18, 0.0 }
 0x187   : > { %v1077_v33 = vadd.f32 %v3402_v32, %v1076_v22  ;;  %v1356_v53 = vadd.f32 %v1286_v41, %v1172_v40  ;;  %v1969_v61 = vrot.slane %v1968_v21, 1  ;;  %v1982_v30 = vmax.f32 %v1980_v26, %v1981_v51  ;;  %1400 = vst.msk [vmem:[#allocation2 + $0xc8] sm:$0xff] %vm844_vm2, %v1368_v42 }
 0x188   : > { %v1989_v62 = vmax.f32 %v1987_v14, %v1988_v58  ;;  %v1976_v8 = vrot.slane %v1975_v55, 1  ;;  %1633 = vst.msk [vmem:[#allocation2 + $0x50] sm:$0xff] %vm844_vm2, %v1601_v2  ;;  %v2408_v28 = vsel %vm2396_vm8, %v1963_v47, %v2407_v56  ;;  %v1731_v12 = vsel %vm844_vm2, %v1695_v9, -inf }
 0x189   : > { %v1970_v20 = vmax.f32 %v1968_v21, %v1969_v61  ;;  %v1983_v63 = vrot.slane %v1982_v30, 1  ;;  %1142 = vst.msk [vmem:[#allocation2 + $0x78] sm:$0xff] %vm844_vm2, %v1077_v33 }
 0x18a   : > { %v1990_v34 = vrot.slane %v1989_v62, 1  ;;  %v1977_v6 = vmax.f32 %v1975_v55, %v1976_v8  ;;  %1388 = vst.msk [vmem:[#allocation2 + $0x68] sm:$0xff] %vm844_vm2, %v1356_v53  ;;  %v1187_v8 = vld [vmem:[#allocation2 + $0xe0] sm:$0xff] }
 0x18b   : > { %v1325_v5 = vpop.f32.mrf.mxu3  ;;  %v1984_v3 = vmax.f32 %v1982_v30, %v1983_v63  ;;  %v2409_v31 = vsel %vm2398_vm9, %v1970_v20, %v2408_v28  ;;  %v1664_v7 = vld [vmem:[#allocation2 + $0x48] sm:$0xff] }
 0x18c   : > { %v1369_v43 = vadd.f32 %v1325_v5, %v1185_v1  ;;  %v1991_v59 = vmax.f32 %v1989_v62, %v1990_v34  ;;  %v2410_v25 = vsel %vm2400_vm10, %v1977_v6, %v2409_v31  ;;  %v1173_v11 = vld [vmem:[#allocation2 + $0x70] sm:$0xff]  ;;  %v1696_v50 = vmax.f32 %v1664_v7, 0.0 }
 0x18d   : > { %v1528_v0 = vpop.f32.mrf.mxu2  ;;  %v2411_v17 = vsel %vm2402_vm11, %v1984_v3, %v2410_v25  ;;  %v1419_v24 = vld [vmem:[#allocation2 + $0x60] sm:$0xff] }
 0x18e   : > { %1401 = vst.msk [vmem:[#allocation2 + $0xd0] sm:$0xff] %vm844_vm2, %v1369_v43  ;;  %v1602_v29 = vadd.f32 %v1528_v0, %v1418_v15  ;;  %v1079_v60 = vpop.f32.mrf.mxu0  ;;  %v1289_v48 = vpop.f32.mrf.mxu1  ;;  %v2412_v23 = vsel %vm2404_vm12, %v1991_v59, %v2411_v17  ;;  %v1734_v53 = vsel %vm844_vm2, %v1696_v50, -inf }
 0x18f   : > { %v1080_v16 = vadd.f32 %v3402_v32, %v1079_v60  ;;  %v1357_v4 = vadd.f32 %v1289_v48, %v1173_v11  ;;  %2464 = vst.msk [vmem:[%s3565_s12 + $0x8] sm:$0xff] %vm844_vm2, %v2412_v23  ;;  %v1665_v49 = vld [vmem:[#allocation2 + $0x50] sm:$0xff] }
 0x190   : > { %1634 = vst.msk [vmem:[#allocation2 + $0x58] sm:$0xff] %vm844_vm2, %v1602_v29  ;;  %v1697_v57 = vmax.f32 %v1665_v49, 0.0  ;;  %v1174_v37 = vld [vmem:[#allocation2 + $0x78] sm:$0xff] }
 0x191   : > { %1143 = vst.msk [vmem:[#allocation2 + $0x80] sm:$0xff] %vm844_vm2, %v1080_v16 }
 0x192   : > { %1389 = vst.msk [vmem:[#allocation2 + $0x70] sm:$0xff] %vm844_vm2, %v1357_v4  ;;  %v1732_v35 = vsel %vm844_vm2, %v1697_v57, -inf }
 0x193   : > { %v1328_v13 = vpop.f32.mrf.mxu3  ;;  %v1733_v46 = vmax.f32 %v1731_v12, %v1732_v35 }
 0x194   : > { %v1370_v36 = vadd.f32 %v1328_v13, %v1186_v39 }
 0x195   : > { %v1531_v19 = vpop.f32.mrf.mxu2  ;;  %v1795_v40 = vrot.slane %v1733_v46, 2  ;;  %v1796_v52 = vrot.slane %v1733_v46, 4  ;;  %v1797_v27 = vrot.slane %v1733_v46, 6  ;;  %v1992_v44 = vsel %vm1879_vm5, %v1733_v46, -inf }
 0x196   : > { %1402 = vst.msk [vmem:[#allocation2 + $0xd8] sm:$0xff] %vm844_vm2, %v1370_v36  ;;  %v1603_v26 = vadd.f32 %v1531_v19, %v1419_v24  ;;  %v1082_v14 = vpop.f32.mrf.mxu0  ;;  %v1292_v54 = vpop.f32.mrf.mxu1  ;;  %v1993_v38 = vrot.slane %v1992_v44, 4 }
 0x197   : > { %v1666_v45 = vld [vmem:[#allocation2 + $0x58] sm:$0xff]  ;;  %v1083_v41 = vadd.f32 %v3402_v32, %v1082_v14  ;;  %v1358_v21 = vadd.f32 %v1292_v54, %v1174_v37  ;;  %v1999_v51 = vsel %vm1879_vm5, %v1795_v40, -inf  ;;  %v2006_v58 = vsel %vm1879_vm5, %v1796_v52, -inf  ;;  %v1420_v37 = vld [vmem:[#allocation2 + $0x68] sm:$0xff]  ;;  %v3654_v52 = vld [vmem:[%s3845_s4] ss:$0 sm:$0xff] }
 0x198   : > { %v1698_v22 = vmax.f32 %v1666_v45, 0.0  ;;  %1635 = vst.msk [vmem:[#allocation2 + $0x60] sm:$0xff] %vm844_vm2, %v1603_v26  ;;  %v2013_v42 = vsel %vm1879_vm5, %v1797_v27, -inf  ;;  %v1994_v10 = vmax.f32 %v1992_v44, %v1993_v38  ;;  %v2000_v55 = vrot.slane %v1999_v51, 4  ;;  %v1175_v50 = vld [vmem:[#allocation2 + $0x80] sm:$0xff] }
 0x199   : > { %v2007_v2 = vrot.slane %v2006_v58, 4  ;;  %v2014_v33 = vrot.slane %v2013_v42, 4  ;;  %1144 = vst.msk [vmem:[#allocation2 + $0x88] sm:$0xff] %vm844_vm2, %v1083_v41 }
 0x19a   : > { %v1735_v56 = vsel %vm844_vm2, %v1698_v22, -inf  ;;  %1390 = vst.msk [vmem:[#allocation2 + $0x78] sm:$0xff] %vm844_vm2, %v1358_v21  ;;  %v1995_v61 = vrot.slane %v1994_v10, 2  ;;  %v2001_v30 = vmax.f32 %v1999_v51, %v2000_v55  ;;  %v1188_v21 = vld [vmem:[#allocation2 + $0xe8] sm:$0xff]  ;;  %v1421_v55 = vld [vmem:[#allocation2 + $0x70] sm:$0xff] }
 0x19b   : > { %v1331_v32 = vpop.f32.mrf.mxu3  ;;  %v2008_v62 = vmax.f32 %v2006_v58, %v2007_v2  ;;  %v2015_v47 = vmax.f32 %v2013_v42, %v2014_v33  ;;  %v1736_v20 = vmax.f32 %v1734_v53, %v1735_v56 }
 0x19c   : > { %v1371_v63 = vadd.f32 %v1331_v32, %v1187_v8  ;;  %v1996_v1 = vmax.f32 %v1994_v10, %v1995_v61  ;;  %v2002_v5 = vrot.slane %v2001_v30, 2 }
 0x19d   : > { %v1534_v34 = vpop.f32.mrf.mxu2  ;;  %v2009_v28 = vrot.slane %v2008_v62, 2  ;;  %v2016_v6 = vrot.slane %v2015_v47, 2  ;;  %v1798_v31 = vrot.slane %v1736_v20, 2  ;;  %v1799_v18 = vrot.slane %v1736_v20, 4 }
 0x19e   : > { %v1085_v43 = vpop.f32.mrf.mxu0  ;;  %v1295_v3 = vpop.f32.mrf.mxu1  ;;  %v1800_v15 = vrot.slane %v1736_v20, 6  ;;  %v2020_v0 = vsel %vm1879_vm5, %v1736_v20, -inf  ;;  %1403 = vst.msk [vmem:[#allocation2 + $0xe0] sm:$0xff] %vm844_vm2, %v1371_v63  ;;  %v1997_v59 = vrot.slane %v1996_v1, 1  ;;  %v2003_v25 = vmax.f32 %v2001_v30, %v2002_v5 }
 0x19f   : > { %v2010_v29 = vmax.f32 %v2008_v62, %v2009_v28  ;;  %v2021_v60 = vrot.slane %v2020_v0, 4  ;;  %v2027_v11 = vsel %vm1879_vm5, %v1798_v31, -inf  ;;  %v2034_v48 = vsel %vm1879_vm5, %v1799_v18, -inf }
 0x1a0   : > { %v2041_v17 = vsel %vm1879_vm5, %v1800_v15, -inf  ;;  %v2004_v16 = vrot.slane %v2003_v25, 1  ;;  %v2017_v23 = vmax.f32 %v2015_v47, %v2016_v6  ;;  %v2028_v49 = vrot.slane %v2027_v11, 4  ;;  %v1176_v32 = vld [vmem:[#allocation2 + $0x88] sm:$0xff] }
 0x1a1   : > { %v2011_v4 = vrot.slane %v2010_v29, 1  ;;  %v2022_v9 = vmax.f32 %v2020_v0, %v2021_v60  ;;  %v2035_v57 = vrot.slane %v2034_v48, 4  ;;  %v2042_v7 = vrot.slane %v2041_v17, 4  ;;  %v1422_v18 = vld [vmem:[#allocation2 + $0x78] sm:$0xff] }
 0x1a2   : > { %v1998_v13 = vmax.f32 %v1996_v1, %v1997_v59  ;;  %v2005_v12 = vmax.f32 %v2003_v25, %v2004_v16  ;;  %v2029_v46 = vmax.f32 %v2027_v11, %v2028_v49  ;;  %v2018_v14 = vrot.slane %v2017_v23, 1  ;;  %v1667_v11 = vld [vmem:[#allocation2 + $0x60] sm:$0xff] }
 0x1a3   : > { %v1334_v39 = vpop.f32.mrf.mxu3  ;;  %v2012_v35 = vmax.f32 %v2010_v29, %v2011_v4  ;;  %v2023_v36 = vrot.slane %v2022_v9, 2  ;;  %v2036_v24 = vmax.f32 %v2034_v48, %v2035_v57  ;;  %v2043_v19 = vmax.f32 %v2041_v17, %v2042_v7  ;;  %v1190_v7 = vld [vmem:[#allocation2 + $0xf8] sm:$0xff] }
 0x1a4   : > { %v2413_v54 = vsel %vm2392_vm6, %v2005_v12, %v1998_v13  ;;  %v1604_v40 = vadd.f32 %v1534_v34, %v1420_v37  ;;  %v1086_v27 = vadd.f32 %v3654_v52, %v1085_v43  ;;  %v2030_v22 = vrot.slane %v2029_v46, 2  ;;  %v1189_v34 = vld [vmem:[#allocation2 + $0xf0] sm:$0xff] }
 0x1a5   : > { %v1537_v26 = vpop.f32.mrf.mxu2  ;;  %v2024_v38 = vmax.f32 %v2022_v9, %v2023_v36  ;;  %v2037_v41 = vrot.slane %v2036_v24, 2  ;;  %v2414_v51 = vsel %vm2394_vm7, %v2012_v35, %v2413_v54  ;;  %v2044_v58 = vrot.slane %v2043_v19, 2 }
 0x1a6   : > { %v1088_v44 = vpop.f32.mrf.mxu0  ;;  %v1298_v45 = vpop.f32.mrf.mxu1  ;;  %1636 = vst.msk [vmem:[#allocation2 + $0x68] sm:$0xff] %vm844_vm2, %v1604_v40  ;;  %v1359_v42 = vadd.f32 %v1295_v3, %v1175_v50  ;;  %v1372_v10 = vadd.f32 %v1334_v39, %v1188_v21  ;;  %v2031_v33 = vmax.f32 %v2029_v46, %v2030_v22  ;;  %v1605_v56 = vadd.f32 %v1537_v26, %v1421_v55 }
 0x1a7   : > { %v2025_v2 = vrot.slane %v2024_v38, 1  ;;  %v2038_v53 = vmax.f32 %v2036_v24, %v2037_v41  ;;  %1145 = vst.msk [vmem:[#allocation2 + $0x90] sm:$0xff] %vm844_vm2, %v1086_v27  ;;  %v2019_v61 = vmax.f32 %v2017_v23, %v2018_v14  ;;  %v2045_v30 = vmax.f32 %v2043_v19, %v2044_v58 }
 0x1a8   : > { %1391 = vst.msk [vmem:[#allocation2 + $0x80] sm:$0xff] %vm844_vm2, %v1359_v42  ;;  %v1089_v62 = vadd.f32 %v3654_v52, %v1088_v44  ;;  %v1360_v47 = vadd.f32 %v1298_v45, %v1176_v32  ;;  %v2032_v20 = vrot.slane %v2031_v33, 1  ;;  %v1699_v9 = vmax.f32 %v1667_v11, 0.0 }
 0x1a9   : > { %v2026_v8 = vmax.f32 %v2024_v38, %v2025_v2  ;;  %v2039_v63 = vrot.slane %v2038_v53, 1  ;;  %1404 = vst.msk [vmem:[#allocation2 + $0xe8] sm:$0xff] %vm844_vm2, %v1372_v10  ;;  %v2415_v5 = vsel %vm2396_vm8, %v2019_v61, %v2414_v51  ;;  %v2046_v28 = vrot.slane %v2045_v30, 1 }
 0x1aa   : > { %1637 = vst.msk [vmem:[#allocation2 + $0x70] sm:$0xff] %vm844_vm2, %v1605_v56  ;;  %v2033_v43 = vmax.f32 %v2031_v33, %v2032_v20  ;;  %v1737_v46 = vsel %vm844_vm2, %v1699_v9, -inf }
 0x1ab   : > { %v1337_v1 = vpop.f32.mrf.mxu3  ;;  %v2040_v3 = vmax.f32 %v2038_v53, %v2039_v63  ;;  %v2416_v31 = vsel %vm2398_vm9, %v2026_v8, %v2415_v5  ;;  %1146 = vst.msk [vmem:[#allocation2 + $0x98] sm:$0xff] %vm844_vm2, %v1089_v62  ;;  %v2047_v29 = vmax.f32 %v2045_v30, %v2046_v28 }
 0x1ac   : > { %v1373_v6 = vadd.f32 %v1337_v1, %v1189_v34  ;;  %1392 = vst.msk [vmem:[#allocation2 + $0x88] sm:$0xff] %vm844_vm2, %v1360_v47  ;;  %v2417_v60 = vsel %vm2400_vm10, %v2033_v43, %v2416_v31 }
 0x1ad   : > { %v1540_v15 = vpop.f32.mrf.mxu2  ;;  %v2418_v17 = vsel %vm2402_vm11, %v2040_v3, %v2417_v60  ;;  %v1668_v49 = vld [vmem:[#allocation2 + $0x68] sm:$0xff] }
 0x1ae   : > { %v1606_v0 = vadd.f32 %v1540_v15, %v1422_v18  ;;  %v1301_v59 = vpop.f32.mrf.mxu1  ;;  %v1091_v25 = vpop.f32.mrf.mxu0  ;;  %1405 = vst.msk [vmem:[#allocation2 + $0xf0] sm:$0xff] %vm844_vm2, %v1373_v6  ;;  %v1177_v16 = vld [vmem:[#allocation2 + $0x90] sm:$0xff]  ;;  %v2419_v4 = vsel %vm2404_vm12, %v2047_v29, %v2418_v17  ;;  %v1700_v24 = vmax.f32 %v1668_v49, 0.0 }
 0x1af   : > { %v1092_v48 = vadd.f32 %v3654_v52, %v1091_v25  ;;  %v1361_v23 = vadd.f32 %v1301_v59, %v1177_v16  ;;  %2465 = vst.msk [vmem:[%s3565_s12 + $0x10] sm:$0xff] %vm844_vm2, %v2419_v4  ;;  %v1423_v35 = vld [vmem:[#allocation2 + $0x80] sm:$0xff] }
 0x1b0   : > { %1638 = vst.msk [vmem:[#allocation2 + $0x78] sm:$0xff] %vm844_vm2, %v1606_v0  ;;  %v1740_v51 = vsel %vm844_vm2, %v1700_v24, -inf }
 0x1b1   : > { %1147 = vst.msk [vmem:[#allocation2 + $0xa0] sm:$0xff] %vm844_vm2, %v1092_v48  ;;  %v1669_v57 = vld [vmem:[#allocation2 + $0x70] sm:$0xff] }
 0x1b2   : > { %1393 = vst.msk [vmem:[#allocation2 + $0x90] sm:$0xff] %vm844_vm2, %v1361_v23  ;;  %v1701_v13 = vmax.f32 %v1669_v57, 0.0  ;;  %v1178_v50 = vld [vmem:[#allocation2 + $0x98] sm:$0xff] }
 0x1b3   : > { %v1340_v39 = vpop.f32.mrf.mxu3 }
 0x1b4   : > { %v1374_v12 = vadd.f32 %v1340_v39, %v1190_v7  ;;  %v1738_v19 = vsel %vm844_vm2, %v1701_v13, -inf }
 0x1b5   : > { %v1543_v36 = vpop.f32.mrf.mxu2  ;;  %v1739_v54 = vmax.f32 %v1737_v46, %v1738_v19 }
 0x1b6   : > { %1406 = vst.msk [vmem:[#allocation2 + $0xf8] sm:$0xff] %vm844_vm2, %v1374_v12  ;;  %v1607_v37 = vadd.f32 %v1543_v36, %v1423_v35  ;;  %v1304_v26 = vpop.f32.mrf.mxu1  ;;  %v1094_v14 = vpop.f32.mrf.mxu0 }
 0x1b7   : > { %v1670_v40 = vld [vmem:[#allocation2 + $0x78] sm:$0xff]  ;;  %v1362_v27 = vadd.f32 %v1304_v26, %v1178_v50  ;;  %v1095_v44 = vadd.f32 %v3654_v52, %v1094_v14  ;;  %v1801_v38 = vrot.slane %v1739_v54, 2  ;;  %v1802_v22 = vrot.slane %v1739_v54, 4 }
 0x1b8   : > { %v1702_v45 = vmax.f32 %v1670_v40, 0.0  ;;  %1639 = vst.msk [vmem:[#allocation2 + $0x80] sm:$0xff] %vm844_vm2, %v1607_v37  ;;  %v1803_v41 = vrot.slane %v1739_v54, 6  ;;  %v2048_v21 = vsel %vm1879_vm5, %v1739_v54, -inf }
 0x1b9   : > { %1394 = vst.msk [vmem:[#allocation2 + $0x98] sm:$0xff] %vm844_vm2, %v1362_v27  ;;  %v2049_v58 = vrot.slane %v2048_v21, 4  ;;  %v2055_v10 = vsel %vm1879_vm5, %v1801_v38, -inf  ;;  %v2062_v55 = vsel %vm1879_vm5, %v1802_v22, -inf  ;;  %v1431_v22 = vld [vmem:[#allocation2 + $0xc0] sm:$0xff] }
 0x1ba   : > { %v1741_v42 = vsel %vm844_vm2, %v1702_v45, -inf  ;;  %1148 = vst.msk [vmem:[#allocation2 + $0xa8] sm:$0xff] %vm844_vm2, %v1095_v44  ;;  %v2069_v2 = vsel %vm1879_vm5, %v1803_v41, -inf  ;;  %v2056_v32 = vrot.slane %v2055_v10, 4  ;;  %v2063_v61 = vrot.slane %v2062_v55, 4  ;;  %v1424_v41 = vld [vmem:[#allocation2 + $0x88] sm:$0xff] }
 0x1bb   : > { %v1742_v33 = vmax.f32 %v1740_v51, %v1741_v42  ;;  %v1567_v53 = vpop.f32.mrf.mxu3  ;;  %v2050_v56 = vmax.f32 %v2048_v21, %v2049_v58  ;;  %v2070_v30 = vrot.slane %v2069_v2, 4  ;;  %v1179_v21 = vld [vmem:[#allocation2 + $0xa0] sm:$0xff] }
 0x1bc   : > { %v2057_v1 = vmax.f32 %v2055_v10, %v2056_v32  ;;  %v2064_v5 = vmax.f32 %v2062_v55, %v2063_v61  ;;  %v1615_v42 = vadd.f32 %v1567_v53, %v1431_v22  ;;  %v1432_v32 = vld [vmem:[#allocation2 + $0xc8] sm:$0xff] }
 0x1bd   : > { %v1804_v62 = vrot.slane %v1742_v33, 2  ;;  %v1805_v47 = vrot.slane %v1742_v33, 4  ;;  %v1806_v8 = vrot.slane %v1742_v33, 6  ;;  %v2076_v20 = vsel %vm1879_vm5, %v1742_v33, -inf  ;;  %v1546_v63 = vpop.f32.mrf.mxu2 }
 0x1be   : > { %v2051_v34 = vrot.slane %v2050_v56, 2  ;;  %v2071_v28 = vmax.f32 %v2069_v2, %v2070_v30  ;;  %v1307_v6 = vpop.f32.mrf.mxu1  ;;  %v2077_v43 = vrot.slane %v2076_v20, 4  ;;  %v2058_v0 = vrot.slane %v2057_v1, 2  ;;  %v1097_v9 = vpop.f32.mrf.mxu0  ;;  %1647 = vst.msk [vmem:[#allocation2 + $0xc0] sm:$0xff] %vm844_vm2, %v1615_v42 }
 0x1bf   : > { %v2083_v3 = vsel %vm1879_vm5, %v1804_v62, -inf  ;;  %v2090_v31 = vsel %vm1879_vm5, %v1805_v47, -inf  ;;  %v2097_v18 = vsel %vm1879_vm5, %v1806_v8, -inf  ;;  %v2065_v59 = vrot.slane %v2064_v5, 2 }
 0x1c0   : > { %v2052_v15 = vmax.f32 %v2050_v56, %v2051_v34  ;;  %v2072_v25 = vrot.slane %v2071_v28, 2  ;;  %v2078_v29 = vmax.f32 %v2076_v20, %v2077_v43  ;;  %v2084_v60 = vrot.slane %v2083_v3, 4 }
 0x1c1   : > { %v2091_v11 = vrot.slane %v2090_v31, 4  ;;  %v2098_v48 = vrot.slane %v2097_v18, 4  ;;  %v2059_v16 = vmax.f32 %v2057_v1, %v2058_v0  ;;  %v2066_v4 = vmax.f32 %v2064_v5, %v2065_v59  ;;  %v1180_v8 = vld [vmem:[#allocation2 + $0xa8] sm:$0xff] }
 0x1c2   : > { %v2053_v17 = vrot.slane %v2052_v15, 1  ;;  %v2073_v23 = vmax.f32 %v2071_v28, %v2072_v25  ;;  %v2079_v49 = vrot.slane %v2078_v29, 2  ;;  %v2085_v57 = vmax.f32 %v2083_v3, %v2084_v60 }
 0x1c3   : > { %v2092_v7 = vmax.f32 %v2090_v31, %v2091_v11  ;;  %v2099_v39 = vmax.f32 %v2097_v18, %v2098_v48  ;;  %v1570_v13 = vpop.f32.mrf.mxu3  ;;  %v2060_v12 = vrot.slane %v2059_v16, 1  ;;  %v2067_v35 = vrot.slane %v2066_v4, 1  ;;  %v1433_v18 = vld [vmem:[#allocation2 + $0xd0] sm:$0xff]  ;;  %v1426_v11 = vld [vmem:[#allocation2 + $0x98] sm:$0xff] }
 0x1c4   : > { %v2074_v36 = vrot.slane %v2073_v23, 1  ;;  %v2080_v46 = vmax.f32 %v2078_v29, %v2079_v49  ;;  %v2086_v24 = vrot.slane %v2085_v57, 2  ;;  %v2054_v26 = vmax.f32 %v2052_v15, %v2053_v17  ;;  %v1671_v17 = vld [vmem:[#allocation2 + $0x80] sm:$0xff] }
 0x1c5   : > { %v2093_v19 = vrot.slane %v2092_v7, 2  ;;  %v2100_v37 = vrot.slane %v2099_v39, 2  ;;  %v1549_v50 = vpop.f32.mrf.mxu2  ;;  %v2061_v14 = vmax.f32 %v2059_v16, %v2060_v12  ;;  %v2068_v54 = vmax.f32 %v2066_v4, %v2067_v35  ;;  %v1434_v16 = vld [vmem:[#allocation2 + $0xd8] sm:$0xff] }
 0x1c6   : > { %v1310_v40 = vpop.f32.mrf.mxu1  ;;  %v2081_v27 = vrot.slane %v2080_v46, 1  ;;  %v2087_v44 = vmax.f32 %v2085_v57, %v2086_v24  ;;  %v2075_v51 = vmax.f32 %v2073_v23, %v2074_v36  ;;  %v1608_v10 = vadd.f32 %v1546_v63, %v1424_v41  ;;  %v1425_v63 = vld [vmem:[#allocation2 + $0x90] sm:$0xff]  ;;  %v1100_v43 = vpop.f32.mrf.mxu0  ;;  %v1679_v23 = vld [vmem:[#allocation2 + $0xc0] sm:$0xff] }
 0x1c7   : > { %v2094_v45 = vmax.f32 %v2092_v7, %v2093_v19  ;;  %v2101_v38 = vmax.f32 %v2099_v39, %v2100_v37  ;;  %v2420_v58 = vsel %vm2392_vm6, %v2061_v14, %v2054_v26  ;;  %v1363_v62 = vadd.f32 %v1307_v6, %v1179_v21 }
 0x1c8   : > { %v2421_v55 = vsel %vm2394_vm7, %v2068_v54, %v2420_v58  ;;  %v2082_v2 = vmax.f32 %v2080_v46, %v2081_v27  ;;  %v2088_v33 = vrot.slane %v2087_v44, 1  ;;  %v1616_v47 = vadd.f32 %v1570_v13, %v1432_v32  ;;  %1640 = vst.msk [vmem:[#allocation2 + $0x88] sm:$0xff] %vm844_vm2, %v1608_v10  ;;  %v1435_v58 = vld [vmem:[#allocation2 + $0xe0] sm:$0xff] }
 0x1c9   : > { %v2095_v56 = vrot.slane %v2094_v45, 1  ;;  %v2422_v61 = vsel %vm2396_vm8, %v2075_v51, %v2421_v55  ;;  %v2102_v30 = vrot.slane %v2101_v38, 1  ;;  %v1098_v53 = vadd.f32 %v3654_v52, %v1097_v9  ;;  %1395 = vst.msk [vmem:[#allocation2 + $0xa0] sm:$0xff] %vm844_vm2, %v1363_v62 }
 0x1ca   : > { %v2089_v20 = vmax.f32 %v2087_v44, %v2088_v33  ;;  %v2423_v1 = vsel %vm2398_vm9, %v2082_v2, %v2422_v61  ;;  %v1609_v28 = vadd.f32 %v1549_v50, %v1425_v63  ;;  %1648 = vst.msk [vmem:[#allocation2 + $0xc8] sm:$0xff] %vm844_vm2, %v1616_v47  ;;  %v1364_v31 = vadd.f32 %v1310_v40, %v1180_v8 }
 0x1cb   : > { %v2096_v34 = vmax.f32 %v2094_v45, %v2095_v56  ;;  %v1573_v5 = vpop.f32.mrf.mxu3  ;;  %v2103_v3 = vmax.f32 %v2101_v38, %v2102_v30  ;;  %1149 = vst.msk [vmem:[#allocation2 + $0xb0] sm:$0xff] %vm844_vm2, %v1098_v53  ;;  %v1101_v60 = vadd.f32 %v3654_v52, %v1100_v43  ;;  %v1703_v49 = vmax.f32 %v1671_v17, 0.0 }
 0x1cc   : > { %v2424_v6 = vsel %vm2400_vm10, %v2089_v20, %v2423_v1  ;;  %v1617_v59 = vadd.f32 %v1573_v5, %v1433_v18  ;;  %1641 = vst.msk [vmem:[#allocation2 + $0x90] sm:$0xff] %vm844_vm2, %v1609_v28  ;;  %v1711_v35 = vmax.f32 %v1679_v23, 0.0 }
 0x1cd   : > { %v1552_v15 = vpop.f32.mrf.mxu2  ;;  %v2425_v0 = vsel %vm2402_vm11, %v2096_v34, %v2424_v6  ;;  %1396 = vst.msk [vmem:[#allocation2 + $0xa8] sm:$0xff] %vm844_vm2, %v1364_v31  ;;  %v1743_v19 = vsel %vm844_vm2, %v1703_v49, -inf }
 0x1ce   : > { %v1313_v25 = vpop.f32.mrf.mxu1  ;;  %v2426_v29 = vsel %vm2404_vm12, %v2103_v3, %v2425_v0  ;;  %v1610_v48 = vadd.f32 %v1552_v15, %v1426_v11  ;;  %1649 = vst.msk [vmem:[#allocation2 + $0xd0] sm:$0xff] %vm844_vm2, %v1617_v59  ;;  %v1755_v40 = vsel %vm844_vm2, %v1711_v35, -inf }
 0x1cf   : > { %2466 = vst.msk [vmem:[%s3565_s12 + $0x18] sm:$0xff] %vm844_vm2, %v2426_v29  ;;  %v3717_v46 = vld [vmem:[#allocation2 + $0x88] sm:$0xff] }
 0x1d0   : > { %1150 = vst.msk [vmem:[#allocation2 + $0xb8] sm:$0xff] %vm844_vm2, %v1101_v60  ;;  %v1427_v52 = vld [vmem:[#allocation2 + $0xa0] sm:$0xff]  ;;  %v1704_v27 = vmax.f32 %v3717_v46, 0.0 }
 0x1d1   : > { %1642 = vst.msk [vmem:[#allocation2 + $0x98] sm:$0xff] %vm844_vm2, %v1610_v48  ;;  %v1680_v29 = vld [vmem:[#allocation2 + $0xc8] sm:$0xff] }
 0x1d2   : > { %v1181_v57 = vld [vmem:[#allocation2 + $0xb0] sm:$0xff] }
 0x1d3   : > { %v1576_v4 = vpop.f32.mrf.mxu3  ;;  %v1673_v39 = vld [vmem:[#allocation2 + $0x90] sm:$0xff]  ;;  %v1365_v13 = vadd.f32 %v1313_v25, %v1181_v57 }
 0x1d4   : > { %v1618_v9 = vadd.f32 %v1576_v4, %v1434_v16  ;;  %v1705_v36 = vmax.f32 %v1673_v39, 0.0  ;;  %v1712_v39 = vmax.f32 %v1680_v29, 0.0 }
 0x1d5   : > { %v1555_v7 = vpop.f32.mrf.mxu2  ;;  %1397 = vst.msk [vmem:[#allocation2 + $0xb0] sm:$0xff] %vm844_vm2, %v1365_v13  ;;  %v1681_v50 = vld [vmem:[#allocation2 + $0xd0] sm:$0xff] }
 0x1d6   : > { %1650 = vst.msk [vmem:[#allocation2 + $0xd8] sm:$0xff] %vm844_vm2, %v1618_v9  ;;  %v1611_v12 = vadd.f32 %v1555_v7, %v1427_v52  ;;  %v1316_v24 = vpop.f32.mrf.mxu1  ;;  %v1744_v37 = vsel %vm844_vm2, %v1705_v36, -inf  ;;  %v1713_v14 = vmax.f32 %v1681_v50, 0.0 }
 0x1d7   : > { %v1745_v26 = vmax.f32 %v1743_v19, %v1744_v37  ;;  %v1182_v54 = vld [vmem:[#allocation2 + $0xb8] sm:$0xff] }
 0x1d8   : > { %1643 = vst.msk [vmem:[#allocation2 + $0xa0] sm:$0xff] %vm844_vm2, %v1611_v12  ;;  %v3725_v44 = vld [vmem:[#allocation2 + $0x98] sm:$0xff]  ;;  %v1366_v45 = vadd.f32 %v1316_v24, %v1182_v54  ;;  %v1756_v10 = vsel %vm844_vm2, %v1713_v14, -inf }
 0x1d9   : > { %v1807_v22 = vrot.slane %v1745_v26, 2  ;;  %v1808_v41 = vrot.slane %v1745_v26, 4  ;;  %v1809_v21 = vrot.slane %v1745_v26, 6  ;;  %v2104_v51 = vsel %vm1879_vm5, %v1745_v26, -inf }
 0x1da   : > { %v2105_v42 = vrot.slane %v2104_v51, 4  ;;  %v1706_v55 = vmax.f32 %v3725_v44, 0.0  ;;  %1398 = vst.msk [vmem:[#allocation2 + $0xb8] sm:$0xff] %vm844_vm2, %v1366_v45  ;;  %v1757_v61 = vmax.f32 %v1755_v40, %v1756_v10  ;;  %v1746_v44 = vsel %vm844_vm2, %v1704_v27, -inf }
 0x1db   : > { %v1579_v38 = vpop.f32.mrf.mxu3  ;;  %v2111_v33 = vsel %vm1879_vm5, %v1807_v22, -inf  ;;  %v2118_v56 = vsel %vm1879_vm5, %v1808_v41, -inf  ;;  %v2125_v32 = vsel %vm1879_vm5, %v1809_v21, -inf }
 0x1dc   : > { %v1619_v2 = vadd.f32 %v1579_v38, %v1435_v58  ;;  %v2106_v30 = vmax.f32 %v2104_v51, %v2105_v42  ;;  %v2112_v62 = vrot.slane %v2111_v33, 4  ;;  %v2119_v47 = vrot.slane %v2118_v56, 4 }
 0x1dd   : > { %v2126_v8 = vrot.slane %v2125_v32, 4  ;;  %v1819_v20 = vrot.slane %v1757_v61, 2  ;;  %v1820_v34 = vrot.slane %v1757_v61, 4  ;;  %v1821_v1 = vrot.slane %v1757_v61, 6  ;;  %v3740_v40 = vpop.f32.mrf.mxu2  ;;  %v1682_v41 = vld [vmem:[#allocation2 + $0xd8] sm:$0xff] }
 0x1de   : > { %1651 = vst.msk [vmem:[#allocation2 + $0xe0] sm:$0xff] %vm844_vm2, %v1619_v2  ;;  %v2216_v53 = vsel %vm1879_vm5, %v1757_v61, -inf  ;;  %v2107_v63 = vrot.slane %v2106_v30, 2  ;;  %v2113_v5 = vmax.f32 %v2111_v33, %v2112_v62  ;;  %v2120_v28 = vmax.f32 %v2118_v56, %v2119_v47 }
 0x1df   : > { %v2127_v43 = vmax.f32 %v2125_v32, %v2126_v8  ;;  %v2217_v3 = vrot.slane %v2216_v53, 4  ;;  %v2223_v6 = vsel %vm1879_vm5, %v1819_v20, -inf  ;;  %v2230_v31 = vsel %vm1879_vm5, %v1820_v34, -inf }
 0x1e0   : > { %v2237_v18 = vsel %vm1879_vm5, %v1821_v1, -inf  ;;  %v2108_v15 = vmax.f32 %v2106_v30, %v2107_v63  ;;  %v2114_v0 = vrot.slane %v2113_v5, 2  ;;  %v2121_v59 = vrot.slane %v2120_v28, 2 }
 0x1e1   : > { %v2128_v25 = vrot.slane %v2127_v43, 2  ;;  %v2218_v60 = vmax.f32 %v2216_v53, %v2217_v3  ;;  %v2224_v11 = vrot.slane %v2223_v6, 4  ;;  %v2231_v48 = vrot.slane %v2230_v31, 4 }
 0x1e2   : > { %v2238_v17 = vrot.slane %v2237_v18, 4  ;;  %v2109_v16 = vrot.slane %v2108_v15, 1  ;;  %v2115_v4 = vmax.f32 %v2113_v5, %v2114_v0  ;;  %v2122_v23 = vmax.f32 %v2120_v28, %v2121_v59 }
 0x1e3   : > { %v2129_v9 = vmax.f32 %v2127_v43, %v2128_v25  ;;  %v2219_v49 = vrot.slane %v2218_v60, 2  ;;  %v2225_v57 = vmax.f32 %v2223_v6, %v2224_v11  ;;  %v2232_v52 = vmax.f32 %v2230_v31, %v2231_v48  ;;  %v3745_v21 = vpop.f32.mrf.mxu3 }
 0x1e4   : > { %v2239_v7 = vmax.f32 %v2237_v18, %v2238_v17  ;;  %v2116_v13 = vrot.slane %v2115_v4, 1  ;;  %v2123_v12 = vrot.slane %v2122_v23, 1  ;;  %v2110_v50 = vmax.f32 %v2108_v15, %v2109_v16 }
 0x1e5   : > { %v2130_v35 = vrot.slane %v2129_v9, 1  ;;  %v2220_v36 = vmax.f32 %v2218_v60, %v2219_v49  ;;  %v2226_v24 = vrot.slane %v2225_v57, 2  ;;  %v2233_v19 = vrot.slane %v2232_v52, 2  ;;  %v1561_v11 = vpop.f32.mrf.mxu2 }
 0x1e6   : > { %v2240_v37 = vrot.slane %v2239_v7, 2  ;;  %v2117_v26 = vmax.f32 %v2115_v4, %v2116_v13  ;;  %v2124_v14 = vmax.f32 %v2122_v23, %v2123_v12  ;;  %v1747_v54 = vsel %vm844_vm2, %v1706_v55, -inf }
 0x1e7   : > { %v2227_v45 = vmax.f32 %v2225_v57, %v2226_v24  ;;  %v2234_v38 = vmax.f32 %v2232_v52, %v2233_v19  ;;  %v1748_v58 = vmax.f32 %v1746_v44, %v1747_v54  ;;  %v1758_v42 = vsel %vm844_vm2, %v1712_v39, -inf }
 0x1e8   : > { %v2241_v22 = vmax.f32 %v2239_v7, %v2240_v37  ;;  %v2427_v51 = vsel %vm2392_vm6, %v2117_v26, %v2110_v50  ;;  %v2131_v10 = vmax.f32 %v2129_v9, %v2130_v35  ;;  %v2221_v2 = vrot.slane %v2220_v36, 1 }
 0x1e9   : > { %v2228_v55 = vrot.slane %v2227_v45, 1  ;;  %v2428_v33 = vsel %vm2394_vm7, %v2124_v14, %v2427_v51  ;;  %v1810_v56 = vrot.slane %v1748_v58, 2  ;;  %v1811_v46 = vrot.slane %v1748_v58, 4 }
 0x1ea   : > { %v1714_v32 = vmax.f32 %v1682_v41, 0.0  ;;  %v2235_v27 = vrot.slane %v2234_v38, 1  ;;  %v2242_v61 = vrot.slane %v2241_v22, 1  ;;  %v1812_v30 = vrot.slane %v1748_v58, 6 }
 0x1eb   : > { %v2132_v62 = vsel %vm1879_vm5, %v1748_v58, -inf  ;;  %v2229_v47 = vmax.f32 %v2227_v45, %v2228_v55  ;;  %v2139_v20 = vsel %vm1879_vm5, %v1810_v56, -inf  ;;  %v2146_v34 = vsel %vm1879_vm5, %v1811_v46, -inf  ;;  %v1585_v23 = vpop.f32.mrf.mxu3 }
 0x1ec   : > { %v2133_v8 = vrot.slane %v2132_v62, 4  ;;  %v2222_v1 = vmax.f32 %v2220_v36, %v2221_v2  ;;  %v2140_v53 = vrot.slane %v2139_v20, 4  ;;  %v2147_v63 = vrot.slane %v2146_v34, 4 }
 0x1ed   : > { %v2153_v5 = vsel %vm1879_vm5, %v1812_v30, -inf  ;;  %v2429_v28 = vsel %vm2396_vm8, %v2131_v10, %v2428_v33  ;;  %v1759_v6 = vsel %vm844_vm2, %v1714_v32, -inf  ;;  %v2236_v31 = vmax.f32 %v2234_v38, %v2235_v27  ;;  %v1428_v27 = vld [vmem:[#allocation2 + $0xa8] sm:$0xff] }
 0x1ee   : > { %v2134_v43 = vmax.f32 %v2132_v62, %v2133_v8  ;;  %v2154_v3 = vrot.slane %v2153_v5, 4  ;;  %v2141_v18 = vmax.f32 %v2139_v20, %v2140_v53  ;;  %v2148_v15 = vmax.f32 %v2146_v34, %v2147_v63  ;;  %v1436_v8 = vld [vmem:[#allocation2 + $0xe8] sm:$0xff]  ;;  %v1564_v20 = vpop.f32.mrf.mxu2 }
 0x1ef   : > { %v1760_v0 = vmax.f32 %v1758_v42, %v1759_v6  ;;  %v3756_v59 = vmax.f32 %v2241_v22, %v2242_v61  ;;  %v2441_v25 = vsel %vm2392_vm6, %v2229_v47, %v2222_v1  ;;  %v1612_v47 = vadd.f32 %v3740_v40, %v1428_v27 }
 0x1f0   : > { %v2135_v29 = vrot.slane %v2134_v43, 2  ;;  %v2155_v60 = vmax.f32 %v2153_v5, %v2154_v3  ;;  %v2142_v48 = vrot.slane %v2141_v18, 2  ;;  %v2149_v17 = vrot.slane %v2148_v15, 2  ;;  %v1429_v5 = vld [vmem:[#allocation2 + $0xb0] sm:$0xff] }
 0x1f1   : > { %v1822_v16 = vrot.slane %v1760_v0, 2  ;;  %v1823_v4 = vrot.slane %v1760_v0, 4  ;;  %v1824_v57 = vrot.slane %v1760_v0, 6  ;;  %v2244_v52 = vsel %vm1879_vm5, %v1760_v0, -inf  ;;  %1644 = vst.msk [vmem:[#allocation2 + $0xa8] sm:$0xff] %vm844_vm2, %v1612_v47 }
 0x1f2   : > { %v2136_v9 = vmax.f32 %v2134_v43, %v2135_v29  ;;  %v2156_v49 = vrot.slane %v2155_v60, 2  ;;  %v2143_v7 = vmax.f32 %v2141_v18, %v2142_v48  ;;  %v2150_v39 = vmax.f32 %v2148_v15, %v2149_v17  ;;  %v1430_v15 = vld [vmem:[#allocation2 + $0xb8] sm:$0xff] }
 0x1f3   : > { %v2245_v13 = vrot.slane %v2244_v52, 4  ;;  %v2251_v12 = vsel %vm1879_vm5, %v1822_v16, -inf  ;;  %v2258_v19 = vsel %vm1879_vm5, %v1823_v4, -inf  ;;  %v2265_v38 = vsel %vm1879_vm5, %v1824_v57, -inf  ;;  %v1588_v43 = vpop.f32.mrf.mxu3  ;;  %v1438_v29 = vld [vmem:[#allocation2 + $0xf8] sm:$0xff]  ;;  %v1683_v57 = vld [vmem:[#allocation2 + $0xe0] sm:$0xff] }
 0x1f4   : > { %v2137_v35 = vrot.slane %v2136_v9, 1  ;;  %v2157_v36 = vmax.f32 %v2155_v60, %v2156_v49  ;;  %v2252_v24 = vrot.slane %v2251_v12, 4  ;;  %v2144_v37 = vrot.slane %v2143_v7, 1  ;;  %v1675_v49 = vld [vmem:[#allocation2 + $0xa0] sm:$0xff] }
 0x1f5   : > { %v2151_v50 = vrot.slane %v2150_v39, 1  ;;  %v2246_v26 = vmax.f32 %v2244_v52, %v2245_v13  ;;  %v2259_v14 = vrot.slane %v2258_v19, 4  ;;  %v2442_v42 = vsel %vm2394_vm7, %v2236_v31, %v2441_v25 }
 0x1f6   : > { %v2138_v54 = vmax.f32 %v2136_v9, %v2137_v35  ;;  %v2158_v44 = vrot.slane %v2157_v36, 1  ;;  %v2253_v45 = vmax.f32 %v2251_v12, %v2252_v24  ;;  %v2145_v22 = vmax.f32 %v2143_v7, %v2144_v37 }
 0x1f7   : > { %v2152_v41 = vmax.f32 %v2150_v39, %v2151_v50  ;;  %v2247_v51 = vrot.slane %v2246_v26, 2  ;;  %v2260_v58 = vmax.f32 %v2258_v19, %v2259_v14  ;;  %v2266_v55 = vrot.slane %v2265_v38, 4 }
 0x1f8   : > { %v2430_v10 = vsel %vm2398_vm9, %v2138_v54, %v2429_v28  ;;  %v2254_v2 = vrot.slane %v2253_v45, 2  ;;  %v2159_v33 = vmax.f32 %v2157_v36, %v2158_v44  ;;  %v1620_v63 = vadd.f32 %v3745_v21, %v1436_v8  ;;  %v1437_v28 = vld [vmem:[#allocation2 + $0xf0] sm:$0xff] }
 0x1f9   : > { %v2431_v56 = vsel %vm2400_vm10, %v2145_v22, %v2430_v10  ;;  %v2248_v46 = vmax.f32 %v2246_v26, %v2247_v51  ;;  %v2261_v32 = vrot.slane %v2260_v58, 2  ;;  %v2267_v62 = vmax.f32 %v2265_v38, %v2266_v55 }
 0x1fa   : > { %v2432_v61 = vsel %vm2402_vm11, %v2152_v41, %v2431_v56  ;;  %v2255_v30 = vmax.f32 %v2253_v45, %v2254_v2  ;;  %v1613_v31 = vadd.f32 %v1561_v11, %v1429_v5  ;;  %v1621_v18 = vadd.f32 %v1585_v23, %v1437_v28  ;;  %1652 = vst.msk [vmem:[#allocation2 + $0xe8] sm:$0xff] %vm844_vm2, %v1620_v63 }
 0x1fb   : > { %v2433_v34 = vsel %vm2404_vm12, %v2159_v33, %v2432_v61  ;;  %v2249_v1 = vrot.slane %v2248_v46, 1  ;;  %v2262_v53 = vmax.f32 %v2260_v58, %v2261_v32  ;;  %v2268_v6 = vrot.slane %v2267_v62, 2 }
 0x1fc   : > { %2467 = vst.msk [vmem:[%s3565_s12 + $0x20] sm:$0xff] %vm844_vm2, %v2433_v34  ;;  %v2256_v3 = vrot.slane %v2255_v30, 1  ;;  %v1614_v25 = vadd.f32 %v1564_v20, %v1430_v15  ;;  %v2443_v60 = vsel %vm2396_vm8, %v3756_v59, %v2442_v42  ;;  %v1622_v17 = vadd.f32 %v1588_v43, %v1438_v29  ;;  %v1676_v20 = vld [vmem:[#allocation2 + $0xa8] sm:$0xff] }
 0x1fd   : > { %v2250_v0 = vmax.f32 %v2248_v46, %v2249_v1  ;;  %v2263_v40 = vrot.slane %v2262_v53, 1  ;;  %v2269_v48 = vmax.f32 %v2267_v62, %v2268_v6  ;;  %1645 = vst.msk [vmem:[#allocation2 + $0xb0] sm:$0xff] %vm844_vm2, %v1613_v31  ;;  %v1707_v7 = vmax.f32 %v1675_v49, 0.0 }
 0x1fe   : > { %v2257_v21 = vmax.f32 %v2255_v30, %v2256_v3  ;;  %1653 = vst.msk [vmem:[#allocation2 + $0xf0] sm:$0xff] %vm844_vm2, %v1621_v18  ;;  %v1715_v39 = vmax.f32 %v1683_v57, 0.0 }
 0x1ff   : > { %v2264_v16 = vmax.f32 %v2262_v53, %v2263_v40  ;;  %v2444_v11 = vsel %vm2398_vm9, %v2250_v0, %v2443_v60  ;;  %v2270_v4 = vrot.slane %v2269_v48, 1  ;;  %1646 = vst.msk [vmem:[#allocation2 + $0xb8] sm:$0xff] %vm844_vm2, %v1614_v25  ;;  %v1749_v19 = vsel %vm844_vm2, %v1707_v7, -inf }
 0x200   : > { %v2445_v23 = vsel %vm2400_vm10, %v2257_v21, %v2444_v11  ;;  %1654 = vst.msk [vmem:[#allocation2 + $0xf8] sm:$0xff] %vm844_vm2, %v1622_v17  ;;  %v1761_v50 = vsel %vm844_vm2, %v1715_v39, -inf  ;;  %v1708_v0 = vmax.f32 %v1676_v20, 0.0 }
 0x201   : > { %v2446_v9 = vsel %vm2402_vm11, %v2264_v16, %v2445_v23  ;;  %v2271_v59 = vmax.f32 %v2269_v48, %v2270_v4  ;;  %v1684_v60 = vld [vmem:[#allocation2 + $0xe8] sm:$0xff] }
 0x202   : > { %v1716_v7 = vmax.f32 %v1684_v60, 0.0 }
 0x203   : > { %v2447_v52 = vsel %vm2404_vm12, %v2271_v59, %v2446_v9 }
 0x204   : > { %2469 = vst.msk [vmem:[%s3565_s12 + $0x30] sm:$0xff] %vm844_vm2, %v2447_v52  ;;  %v1677_v13 = vld [vmem:[#allocation2 + $0xb0] sm:$0xff]  ;;  %v1752_v52 = vsel %vm844_vm2, %v1708_v0, -inf }
 0x205   : > { %v1709_v12 = vmax.f32 %v1677_v13, 0.0  ;;  %v1685_v35 = vld [vmem:[#allocation2 + $0xf0] sm:$0xff] }
 0x206   : > { %v1717_v36 = vmax.f32 %v1685_v35, 0.0  ;;  %v1678_v24 = vld [vmem:[#allocation2 + $0xb8] sm:$0xff] }
 0x207   : > { %v1750_v37 = vsel %vm844_vm2, %v1709_v12, -inf  ;;  %v1710_v44 = vmax.f32 %v1678_v24, 0.0  ;;  %v1686_v57 = vld [vmem:[#allocation2 + $0xf8] sm:$0xff] }
 0x208   : > { %v1751_v26 = vmax.f32 %v1749_v19, %v1750_v37  ;;  %v1762_v14 = vsel %vm844_vm2, %v1717_v36, -inf }
 0x209   : > { %v1763_v54 = vmax.f32 %v1761_v50, %v1762_v14  ;;  %v1753_v16 = vsel %vm844_vm2, %v1710_v44, -inf  ;;  %v1718_v50 = vmax.f32 %v1686_v57, 0.0 }
 0x20a   : > { %v1813_v45 = vrot.slane %v1751_v26, 2  ;;  %v1814_v38 = vrot.slane %v1751_v26, 4  ;;  %v1815_v22 = vrot.slane %v1751_v26, 6  ;;  %v2160_v41 = vsel %vm1879_vm5, %v1751_v26, -inf }
 0x20b   : > { %v2161_v51 = vrot.slane %v2160_v41, 4  ;;  %v1825_v58 = vrot.slane %v1763_v54, 2  ;;  %v1826_v42 = vrot.slane %v1763_v54, 4  ;;  %v1827_v10 = vrot.slane %v1763_v54, 6 }
 0x20c   : > { %v2167_v2 = vsel %vm1879_vm5, %v1813_v45, -inf  ;;  %v2174_v55 = vsel %vm1879_vm5, %v1814_v38, -inf  ;;  %v2181_v33 = vsel %vm1879_vm5, %v1815_v22, -inf  ;;  %v2272_v56 = vsel %vm1879_vm5, %v1763_v54, -inf }
 0x20d   : > { %v2162_v46 = vmax.f32 %v2160_v41, %v2161_v51  ;;  %v2168_v32 = vrot.slane %v2167_v2, 4  ;;  %v2175_v27 = vrot.slane %v2174_v55, 4  ;;  %v2182_v61 = vrot.slane %v2181_v33, 4 }
 0x20e   : > { %v2273_v30 = vrot.slane %v2272_v56, 4  ;;  %v2279_v62 = vsel %vm1879_vm5, %v1825_v58, -inf  ;;  %v2286_v47 = vsel %vm1879_vm5, %v1826_v42, -inf  ;;  %v2293_v8 = vsel %vm1879_vm5, %v1827_v10, -inf }
 0x20f   : > { %v2163_v34 = vrot.slane %v2162_v46, 2  ;;  %v2169_v1 = vmax.f32 %v2167_v2, %v2168_v32  ;;  %v2176_v53 = vmax.f32 %v2174_v55, %v2175_v27  ;;  %v2183_v63 = vmax.f32 %v2181_v33, %v2182_v61 }
 0x210   : > { %v2274_v5 = vmax.f32 %v2272_v56, %v2273_v30  ;;  %v2280_v28 = vrot.slane %v2279_v62, 4  ;;  %v2287_v43 = vrot.slane %v2286_v47, 4  ;;  %v2294_v3 = vrot.slane %v2293_v8, 4 }
 0x211   : > { %v2164_v6 = vmax.f32 %v2162_v46, %v2163_v34  ;;  %v2170_v31 = vrot.slane %v2169_v1, 2  ;;  %v2177_v18 = vrot.slane %v2176_v53, 2  ;;  %v2184_v15 = vrot.slane %v2183_v63, 2 }
 0x212   : > { %v2275_v40 = vrot.slane %v2274_v5, 2  ;;  %v2281_v25 = vmax.f32 %v2279_v62, %v2280_v28  ;;  %v2288_v29 = vmax.f32 %v2286_v47, %v2287_v43  ;;  %v2295_v17 = vmax.f32 %v2293_v8, %v2294_v3 }
 0x213   : > { %v2171_v21 = vmax.f32 %v2169_v1, %v2170_v31  ;;  %v2178_v48 = vmax.f32 %v2176_v53, %v2177_v18  ;;  %v2165_v11 = vrot.slane %v2164_v6, 1  ;;  %v2185_v4 = vmax.f32 %v2183_v63, %v2184_v15 }
 0x214   : > { %v2282_v23 = vrot.slane %v2281_v25, 2  ;;  %v2289_v9 = vrot.slane %v2288_v29, 2  ;;  %v2276_v39 = vmax.f32 %v2274_v5, %v2275_v40  ;;  %v1754_v36 = vmax.f32 %v1752_v52, %v1753_v16 }
 0x215   : > { %v2172_v59 = vrot.slane %v2171_v21, 1  ;;  %v2179_v49 = vrot.slane %v2178_v48, 1  ;;  %v2166_v24 = vmax.f32 %v2164_v6, %v2165_v11  ;;  %v2186_v19 = vrot.slane %v2185_v4, 1 }
 0x216   : > { %v2283_v13 = vmax.f32 %v2281_v25, %v2282_v23  ;;  %v2290_v35 = vmax.f32 %v2288_v29, %v2289_v9  ;;  %v2296_v37 = vrot.slane %v2295_v17, 2  ;;  %v1816_v14 = vrot.slane %v1754_v36, 2 }
 0x217   : > { %v2173_v12 = vmax.f32 %v2171_v21, %v2172_v59  ;;  %v2180_v26 = vmax.f32 %v2178_v48, %v2179_v49  ;;  %v1817_v54 = vrot.slane %v1754_v36, 4  ;;  %v1818_v44 = vrot.slane %v1754_v36, 6 }
 0x218   : > { %v1764_v45 = vsel %vm844_vm2, %v1716_v7, -inf  ;;  %v2277_v22 = vrot.slane %v2276_v39, 1  ;;  %v2284_v41 = vrot.slane %v2283_v13, 1  ;;  %v2291_v51 = vrot.slane %v2290_v35, 1 }
 0x219   : > { %v2434_v38 = vsel %vm2392_vm6, %v2173_v12, %v2166_v24  ;;  %v2188_v58 = vsel %vm1879_vm5, %v1754_v36, -inf  ;;  %v2195_v42 = vsel %vm1879_vm5, %v1816_v14, -inf  ;;  %v2202_v10 = vsel %vm1879_vm5, %v1817_v54, -inf }
 0x21a   : > { %v3805_v2 = vmax.f32 %v2295_v17, %v2296_v37  ;;  %v2189_v55 = vrot.slane %v2188_v58, 4  ;;  %v2196_v33 = vrot.slane %v2195_v42, 4  ;;  %v2203_v56 = vrot.slane %v2202_v10, 4 }
 0x21b   : > { %v2187_v46 = vmax.f32 %v2185_v4, %v2186_v19  ;;  %v2435_v32 = vsel %vm2394_vm7, %v2180_v26, %v2434_v38  ;;  %v2209_v27 = vsel %vm1879_vm5, %v1818_v44, -inf  ;;  %v1765_v61 = vsel %vm844_vm2, %v1718_v50, -inf }
 0x21c   : > { %v2278_v30 = vmax.f32 %v2276_v39, %v2277_v22  ;;  %v2190_v62 = vmax.f32 %v2188_v58, %v2189_v55  ;;  %v2197_v47 = vmax.f32 %v2195_v42, %v2196_v33  ;;  %v2204_v8 = vmax.f32 %v2202_v10, %v2203_v56 }
 0x21d   : > { %v2285_v20 = vmax.f32 %v2283_v13, %v2284_v41  ;;  %v2292_v34 = vmax.f32 %v2290_v35, %v2291_v51  ;;  %v2210_v1 = vrot.slane %v2209_v27, 4  ;;  %v1766_v53 = vmax.f32 %v1764_v45, %v1765_v61 }
 0x21e   : > { %v2436_v63 = vsel %vm2396_vm8, %v2187_v46, %v2435_v32  ;;  %v2191_v5 = vrot.slane %v2190_v62, 2  ;;  %v2198_v28 = vrot.slane %v2197_v47, 2  ;;  %v2205_v43 = vrot.slane %v2204_v8, 2 }
 0x21f   : > { %v2211_v3 = vmax.f32 %v2209_v27, %v2210_v1  ;;  %v1828_v6 = vrot.slane %v1766_v53, 2  ;;  %v1829_v31 = vrot.slane %v1766_v53, 4  ;;  %v1830_v18 = vrot.slane %v1766_v53, 6 }
 0x220   : > { %v2192_v15 = vmax.f32 %v2190_v62, %v2191_v5  ;;  %v2199_v0 = vmax.f32 %v2197_v47, %v2198_v28  ;;  %v2206_v40 = vmax.f32 %v2204_v8, %v2205_v43  ;;  %v2300_v25 = vsel %vm1879_vm5, %v1766_v53, -inf }
 0x221   : > { %v2212_v29 = vrot.slane %v2211_v3, 2  ;;  %v2301_v60 = vrot.slane %v2300_v25, 4  ;;  %v2307_v21 = vsel %vm1879_vm5, %v1828_v6, -inf  ;;  %v2314_v48 = vsel %vm1879_vm5, %v1829_v31, -inf }
 0x222   : > { %v2193_v17 = vrot.slane %v2192_v15, 1  ;;  %v2200_v16 = vrot.slane %v2199_v0, 1  ;;  %v2207_v11 = vrot.slane %v2206_v40, 1  ;;  %v2308_v4 = vrot.slane %v2307_v21, 4 }
 0x223   : > { %v2213_v23 = vmax.f32 %v2211_v3, %v2212_v29  ;;  %v2302_v9 = vmax.f32 %v2300_v25, %v2301_v60  ;;  %v2315_v59 = vrot.slane %v2314_v48, 4  ;;  %v2321_v49 = vsel %vm1879_vm5, %v1830_v18, -inf }
 0x224   : > { %v2194_v57 = vmax.f32 %v2192_v15, %v2193_v17  ;;  %v2201_v52 = vmax.f32 %v2199_v0, %v2200_v16  ;;  %v2208_v7 = vmax.f32 %v2206_v40, %v2207_v11  ;;  %v2309_v39 = vmax.f32 %v2307_v21, %v2308_v4 }
 0x225   : > { %v2214_v13 = vrot.slane %v2213_v23, 1  ;;  %v2303_v12 = vrot.slane %v2302_v9, 2  ;;  %v2316_v35 = vmax.f32 %v2314_v48, %v2315_v59  ;;  %v2322_v36 = vrot.slane %v2321_v49, 4 }
 0x226   : > { %v2298_v24 = vrot.slane %v3805_v2, 1  ;;  %v2448_v19 = vsel %vm2392_vm6, %v2285_v20, %v2278_v30  ;;  %v2437_v37 = vsel %vm2398_vm9, %v2194_v57, %v2436_v63  ;;  %v2310_v50 = vrot.slane %v2309_v39, 2 }
 0x227   : > { %v2215_v26 = vmax.f32 %v2213_v23, %v2214_v13  ;;  %v2438_v14 = vsel %vm2400_vm10, %v2201_v52, %v2437_v37  ;;  %v2304_v54 = vmax.f32 %v2302_v9, %v2303_v12  ;;  %v2317_v44 = vrot.slane %v2316_v35, 2 }
 0x228   : > { %v2439_v45 = vsel %vm2402_vm11, %v2208_v7, %v2438_v14  ;;  %v2311_v38 = vmax.f32 %v2309_v39, %v2310_v50  ;;  %v2323_v22 = vmax.f32 %v2321_v49, %v2322_v36  ;;  %v2449_v41 = vsel %vm2394_vm7, %v2292_v34, %v2448_v19 }
 0x229   : > { %v2440_v51 = vsel %vm2404_vm12, %v2215_v26, %v2439_v45  ;;  %v2305_v58 = vrot.slane %v2304_v54, 1  ;;  %v2318_v42 = vmax.f32 %v2316_v35, %v2317_v44  ;;  %v2299_v10 = vmax.f32 %v3805_v2, %v2298_v24 }
 0x22a   : > { %2468 = vst.msk [vmem:[%s3565_s12 + $0x28] sm:$0xff] %vm844_vm2, %v2440_v51  ;;  %v2312_v55 = vrot.slane %v2311_v38, 1  ;;  %v2324_v33 = vrot.slane %v2323_v22, 2 }
 0x22b   : > { %v2306_v56 = vmax.f32 %v2304_v54, %v2305_v58  ;;  %v2319_v46 = vrot.slane %v2318_v42, 1  ;;  %v2450_v32 = vsel %vm2396_vm8, %v2299_v10, %v2449_v41 }
 0x22c   : > { %v2313_v27 = vmax.f32 %v2311_v38, %v2312_v55  ;;  %v2325_v61 = vmax.f32 %v2323_v22, %v2324_v33 }
 0x22d   : > { %v2320_v30 = vmax.f32 %v2318_v42, %v2319_v46  ;;  %v2451_v62 = vsel %vm2398_vm9, %v2306_v56, %v2450_v32 }
 0x22e   : > { %v2326_v47 = vrot.slane %v2325_v61, 1  ;;  %v2452_v8 = vsel %vm2400_vm10, %v2313_v27, %v2451_v62 }
 0x22f   : > { %v2453_v20 = vsel %vm2402_vm11, %v2320_v30, %v2452_v8 }
 0x230   : > { %v2327_v2 = vmax.f32 %v2325_v61, %v2326_v47 }
 0x232   : > { %v2454_v34 = vsel %vm2404_vm12, %v2327_v2, %v2453_v20 }
 0x233   : > { %2470 = vst.msk [vmem:[%s3565_s12 + $0x38] sm:$0xff] %vm844_vm2, %v2454_v34 }
 0x234 PF: > { %s15_s20 = sadd.s32 1, %s2784_s20   ;;  %s3847_s18 = smov %s2780_s19 }
 0x235   : > { %p12_p5 = scmp.ge.s32.totalorder %s15_s20, 4   ;;  %s3848_s19 = smov %s3850_s21 }
 0x237   :  { %14 = sbr.rel (!%p12_p5) target bundleno = 2 (0x2), region = 78 }

</bundles_post_ra>
